<compile_context>
chip_gen: v6e
topology: v6e:2x2x1
jax: 0.10.0
libtpu: 0.0.40
codegen_flags: <defaults>
</compile_context>

<pallas_src>
import functools

import jax
import jax.numpy as jnp
from jax.experimental import pallas as pl
from jax.experimental.pallas import tpu as pltpu

NEG_SLOPE = 0.01      # torch.nn.LeakyReLU default
LN_EPS = 1e-5         # torch.nn.LayerNorm default


def _leaky_relu(x):
    return jnp.where(x >= 0, x, NEG_SLOPE * x)


def _layer_norm(h):
    # elementwise_affine=False -> no gamma/beta. Two-pass variance (matches torch).
    mean = jnp.mean(h, axis=-1, keepdims=True)
    c = h - mean
    var = jnp.mean(c * c, axis=-1, keepdims=True)
    return c * jax.lax.rsqrt(var + LN_EPS)


def _epilogue(h1, b1_ref, w2_ref, b2_ref, w3t_ref, b3_ref, out_dtype):
    """Finish layer 1 (bias/LN/act), run layer 2 and the Linear(n_hidden, 1) head."""
    h = _leaky_relu(_layer_norm(h1 + b1_ref[...]))
    h = jnp.dot(h.astype(w2_ref.dtype), w2_ref[...],
                preferred_element_type=jnp.float32) + b2_ref[...]
    h = _leaky_relu(_layer_norm(h))
    # Output head as a VPU multiply + lane reduce (w3 is passed transposed, (1, n_hidden)).
    out = jnp.sum(h * w3t_ref[...], axis=-1, keepdims=True) + b3_ref[...]
    return _leaky_relu(out).astype(out_dtype)


def _kernel_fused(x_ref, w1_ref, b1_ref, w2_ref, b2_ref, w3t_ref, b3_ref, o_ref):
    """Single-K-step kernel: whole feature dim per batch tile, no accumulator scratch."""
    h1 = jnp.dot(x_ref[...].astype(w1_ref.dtype), w1_ref[...],
                 preferred_element_type=jnp.float32)
    o_ref[...] = _epilogue(h1, b1_ref, w2_ref, b2_ref, w3t_ref, b3_ref, o_ref.dtype)


def _kernel_ksplit(x_ref, w1_ref, b1_ref, w2_ref, b2_ref, w3t_ref, b3_ref,
                   o_ref, acc_ref, *, tile_k, n_in):
    """K-split kernel: x streamed in (bt, tile_k) tiles; W1 resident, sliced in-kernel."""
    k = pl.program_id(1)

    @pl.when(k == 0)
    def _init():
        acc_ref[...] = jnp.zeros_like(acc_ref)

    xt = x_ref[...]
    if n_in % tile_k != 0:
        # Last K tile extends past n_in: the tail lanes are stale VMEM.  Mask them
        # (stale NaN/Inf times zero-padded W1 rows would still be NaN).
        lane = jax.lax.broadcasted_iota(jnp.int32, xt.shape, 1)
        xt = jnp.where(lane < (n_in - k * tile_k), xt, 0)

    off = pl.multiple_of(k * tile_k, tile_k)
    w1c = w1_ref[pl.ds(off, tile_k), :]      # slice of the *resident* W1 (no re-stream)
    acc_ref[...] += jnp.dot(xt.astype(w1c.dtype), w1c,
                            preferred_element_type=jnp.float32)

    @pl.when(k == pl.num_programs(1) - 1)
    def _finish():
        o_ref[...] = _epilogue(acc_ref[...], b1_ref, w2_ref, b2_ref,
                               w3t_ref, b3_ref, o_ref.dtype)


def _round_up(a, b):
    return ((a + b - 1) // b) * b


def _cdiv(a, b):
    return -(-a // b)


def _vmem_capacity_bytes():
    try:
        return int(pltpu.get_tpu_info().vmem_capacity_bytes)
    except Exception:
        return 64 << 20      # conservative (v7x per-TensorCore VMEM)


def _spec(block_shape, index_map, buffers=None):
    """BlockSpec with optional pipeline depth; falls back if pipeline_mode is unsupported."""
    if buffers is None:
        return pl.BlockSpec(block_shape, index_map)
    try:
        return pl.BlockSpec(block_shape, index_map, pipeline_mode=pl.Buffered(buffers))
    except (TypeError, AttributeError):
        return pl.BlockSpec(block_shape, index_map)


def library_size_encoder(x, params, *, tile_b=256, tile_k=None,
                         compute_dtype=jnp.float32):
    """x: (B, n_input) float32; params: dict w1,b1,w2,b2,w3,b3.

    tile_b: batch rows per grid step (rounded to a multiple of 8).
    tile_k: feature chunk (multiple of 128) to split n_input; None = auto (no split
            unless the resident W1 + streamed x tiles exceed the VMEM budget).
    compute_dtype: matmul input dtype (f32 default; bf16 casts W1/W2 in the wrapper and
            the x tile in the kernel -- f32 accumulation / LayerNorm / activations).
    """
    B, n_in = x.shape
    n_hidden = params["w1"].shape[1]
    csize = jnp.dtype(compute_dtype).itemsize
    xsize = x.dtype.itemsize

    # --- batch tiling: cdiv grid, no padding copy of x ---
    bt = _round_up(max(8, min(tile_b, _round_up(B, 8))), 8)
    nb = _cdiv(B, bt)

    cap = _vmem_capacity_bytes()
    budget = int(cap * 0.7)

    # lane/sublane-padded fixed pieces: w2 + 4 small biases + double-buffered output
    def _need_bytes(tk, split):
        fixed = (n_hidden * n_hidden * csize
                 + 4 * 8 * 128 * 4
                 + 2 * bt * 128 * 4)
        if split:
            pk_ = _round_up(n_in, tk)
            return (fixed
                    + 3 * bt * tk * xsize            # x stream, Buffered(3)
                    + pk_ * n_hidden * csize         # resident W1 (single-buffered)
                    + bt * n_hidden * 4)             # layer-1 accumulator scratch
        return (fixed
                + 2 * bt * n_in * xsize              # x stream, double-buffered
                + n_in * n_hidden * csize)           # resident W1

    # --- feature (K) tiling: avoid the split unless forced by VMEM ---
    if tile_k is None:
        if _need_bytes(n_in, False) <= budget:
            tile_k = n_in
        else:
            tile_k = 2048
            while tile_k > 512 and _need_bytes(tile_k, True) > budget:
                tile_k //= 2
    if tile_k >= n_in:
        tile_k = n_in
    split_k = tile_k < n_in
    if split_k and tile_k % 128 != 0:
        raise ValueError("tile_k must be a multiple of 128 when splitting the feature axis")

    # --- small, grid-invariant operands (x is NOT touched in the wrapper) ---
    w1 = params["w1"].astype(compute_dtype)
    w2 = params["w2"].astype(compute_dtype)
    b1 = params["b1"].reshape(1, n_hidden).astype(jnp.float32)
    b2 = params["b2"].reshape(1, n_hidden).astype(jnp.float32)
    w3t = params["w3"].reshape(-1)[None, :].astype(jnp.float32)   # (1, n_hidden)
    b3 = params["b3"].reshape(1, 1).astype(jnp.float32)

    if not split_k:
        grid = (nb,)
        in_specs = [
            _spec((bt, n_in), lambda i: (i, 0)),                        # x (streamed)
            _spec((n_in, n_hidden), lambda i: (0, 0), buffers=1),       # W1 (resident)
            _spec((1, n_hidden), lambda i: (0, 0), buffers=1),          # b1
            _spec((n_hidden, n_hidden), lambda i: (0, 0), buffers=1),   # w2
            _spec((1, n_hidden), lambda i: (0, 0), buffers=1),          # b2
            _spec((1, n_hidden), lambda i: (0, 0), buffers=1),          # w3^T
            _spec((1, 1), lambda i: (0, 0), buffers=1),                 # b3
        ]
        out_specs = pl.BlockSpec((bt, 1), lambda i: (i, 0))
        scratch = []
        kernel = _kernel_fused
        semantics = ("parallel",)
        need = _need_bytes(n_in, False)
        operands = (x, w1, b1, w2, b2, w3t, b3)
    else:
        pk = _round_up(n_in, tile_k)
        w1p = jnp.pad(w1, ((0, pk - n_in), (0, 0))) if pk != n_in else w1   # tiny one-time pad
        nk = pk // tile_k
        grid = (nb, nk)
        in_specs = [
            _spec((bt, tile_k), lambda i, k: (i, k), buffers=3),            # x (streamed, depth 3)
            _spec((pk, n_hidden), lambda i, k: (0, 0), buffers=1),          # W1 (resident, full K)
            _spec((1, n_hidden), lambda i, k: (0, 0), buffers=1),           # b1
            _spec((n_hidden, n_hidden), lambda i, k: (0, 0), buffers=1),    # w2
            _spec((1, n_hidden), lambda i, k: (0, 0), buffers=1),           # b2
            _spec((1, n_hidden), lambda i, k: (0, 0), buffers=1),           # w3^T
            _spec((1, 1), lambda i, k: (0, 0), buffers=1),                  # b3
        ]
        out_specs = pl.BlockSpec((bt, 1), lambda i, k: (i, 0))
        scratch = [pltpu.VMEM((bt, n_hidden), jnp.float32)]
        kernel = functools.partial(_kernel_ksplit, tile_k=tile_k, n_in=n_in)
        semantics = ("parallel", "arbitrary")
        need = _need_bytes(tile_k, True)
        operands = (x, w1p, b1, w2, b2, w3t, b3)

    # Generation-aware VMEM budget: never request more than physical per-core VMEM.
    vmem_limit = int(min(max(need * 1.25 + (2 << 20), 24 << 20), cap - (6 << 20)))

    out = pl.pallas_call(
        kernel,
        out_shape=jax.ShapeDtypeStruct((B, 1), jnp.float32),
        grid_spec=pltpu.PrefetchScalarGridSpec(
            num_scalar_prefetch=0,
            grid=grid,
            in_specs=in_specs,
            out_specs=out_specs,
            scratch_shapes=scratch),
        compiler_params=pltpu.CompilerParams(
            dimension_semantics=semantics,     # batch axis shards across TCs on v7x
            vmem_limit_bytes=vmem_limit),
    )(*operands)
    return out


def init_params(key, n_input, n_hidden):
    """Deterministic synthetic parameters (torch.nn.Linear-like init)."""
    ks = jax.random.split(key, 6)

    def lin(kw, kb, fan_in, fan_out):
        bound = 1.0 / jnp.sqrt(fan_in)
        w = jax.random.uniform(kw, (fan_in, fan_out), jnp.float32, -bound, bound)
        b = jax.random.uniform(kb, (1, fan_out), jnp.float32, -bound, bound)
        return w, b

    w1, b1 = lin(ks[0], ks[1], n_input, n_hidden)
    w2, b2 = lin(ks[2], ks[3], n_hidden, n_hidden)
    w3, b3 = lin(ks[4], ks[5], n_hidden, 1)
    return dict(w1=w1, b1=b1, w2=w2, b2=b2, w3=w3, b3=b3)


def reference_forward(x, p):
    """Pure-JAX reference matching the PyTorch module semantics."""
    def ln(h):
        mean = jnp.mean(h, axis=-1, keepdims=True)
        var = jnp.mean((h - mean) ** 2, axis=-1, keepdims=True)
        return (h - mean) * jax.lax.rsqrt(var + LN_EPS)

    h = _leaky_relu(ln(x @ p["w1"] + p["b1"]))
    h = _leaky_relu(ln(h @ p["w2"] + p["b2"]))
    return _leaky_relu(h @ p["w3"] + p["b3"])


# TODO(synk): n_cat_list covariate one-hot injection and dropout are omitted because the
# module instantiates them disabled (n_cat_list=None, dropout_rate=0).

if __name__ == "__main__":
    key = jax.random.PRNGKey(0)
    k_x, k_p = jax.random.split(key)

    # Small but non-trivial shapes: batch not a multiple of the tile (exercises the cdiv
    # grid / partial-block path), n_input not a multiple of 128 or of tile_k (exercises
    # the in-kernel K-tail mask), n_hidden=128 as in the module default.
    B, n_input, n_hidden = 300, 384, 128
    x = jax.random.normal(k_x, (B, n_input), jnp.float32)
    params = init_params(k_p, n_input, n_hidden)

    ref = reference_forward(x, params)

    # 1) Auto path (no K split, resident W1, fused kernel).
    out = jax.block_until_ready(library_size_encoder(x, params))
    assert out.shape == (B, 1)
    assert jnp.allclose(out, ref, atol=1e-4, rtol=1e-4), "fused f32 kernel mismatch"

    # 2) Forced K-split path (resident W1 sliced in-kernel, accumulator, tail mask).
    out_ks = jax.block_until_ready(
        library_size_encoder(x, params, tile_b=128, tile_k=256))
    assert out_ks.shape == (B, 1)
    assert jnp.allclose(out_ks, ref, atol=1e-4, rtol=1e-4), "K-split f32 kernel mismatch"

    # 3) bf16 compute path (f32 accumulation / LayerNorm); loose tolerance vs f32 ref.
    out_bf16 = jax.block_until_ready(
        library_size_encoder(x, params, compute_dtype=jnp.bfloat16))
    assert out_bf16.shape == (B, 1)
    assert bool(jnp.all(jnp.isfinite(out_bf16)))
    assert float(jnp.max(jnp.abs(out_bf16 - ref))) < 0.3

    print("KERNEL_OK")
</pallas_src>

<mosaic_0001>
module attributes {stable_mosaic.version = 11 : i64} {
  func.func @_kernel_fused(%arg0: i32, %arg1: memref<256x384xf32, #tpu.memory_space<vmem>>, %arg2: memref<384x128xf32, #tpu.memory_space<vmem>>, %arg3: memref<1x128xf32, #tpu.memory_space<vmem>>, %arg4: memref<128x128xf32, #tpu.memory_space<vmem>>, %arg5: memref<1x128xf32, #tpu.memory_space<vmem>>, %arg6: memref<1x128xf32, #tpu.memory_space<vmem>>, %arg7: memref<1x1xf32, #tpu.memory_space<vmem>>, %arg8: memref<256x1xf32, #tpu.memory_space<vmem>>) attributes {dimension_semantics = [#tpu.dimension_semantics<parallel>], iteration_bounds = array<i64: 2>, scalar_prefetch = 0 : i64, scratch_operands = 0 : i64, tpu.core_type = #tpu.core_type<tc>, window_params = [{transform_indices = @transform_0, window_bounds = array<i64: 256, 384>}, {pipeline_mode = #tpu.pipeline_mode<synchronous>, transform_indices = @transform_1, window_bounds = array<i64: 384, 128>}, {pipeline_mode = #tpu.pipeline_mode<synchronous>, transform_indices = @transform_2, window_bounds = array<i64: 1, 128>}, {pipeline_mode = #tpu.pipeline_mode<synchronous>, transform_indices = @transform_3, window_bounds = array<i64: 128, 128>}, {pipeline_mode = #tpu.pipeline_mode<synchronous>, transform_indices = @transform_4, window_bounds = array<i64: 1, 128>}, {pipeline_mode = #tpu.pipeline_mode<synchronous>, transform_indices = @transform_5, window_bounds = array<i64: 1, 128>}, {pipeline_mode = #tpu.pipeline_mode<synchronous>, transform_indices = @transform_6, window_bounds = array<i64: 1, 1>}, {transform_indices = @transform_7, window_bounds = array<i64: 256, 1>}]} {
    %c0 = arith.constant 0 : index
    %c0_0 = arith.constant 0 : index
    %0 = vector.load %arg1[%c0, %c0_0] : memref<256x384xf32, #tpu.memory_space<vmem>>, vector<256x384xf32>
    %c0_1 = arith.constant 0 : index
    %c0_2 = arith.constant 0 : index
    %1 = vector.load %arg2[%c0_1, %c0_2] : memref<384x128xf32, #tpu.memory_space<vmem>>, vector<384x128xf32>
    %cst = arith.constant dense<0.000000e+00> : vector<256x128xf32>
    %2 = tpu.matmul %0, %1, %cst {dimension_numbers = #tpu.dot_dimension_numbers<[1], [0], [0], [1], [0, 0, 1, 1], [], []>} : vector<256x384xf32>, vector<384x128xf32>, vector<256x128xf32> -> vector<256x128xf32>
    %c0_3 = arith.constant 0 : index
    %c0_4 = arith.constant 0 : index
    %3 = vector.load %arg3[%c0_3, %c0_4] : memref<1x128xf32, #tpu.memory_space<vmem>>, vector<1x128xf32>
    %4 = vector.broadcast %3 : vector<1x128xf32> to vector<256x128xf32>
    %5 = arith.addf %2, %4 : vector<256x128xf32>
    %cst_5 = arith.constant dense<0.000000e+00> : vector<256xf32>
    %6 = vector.multi_reduction <add>, %5, %cst_5 [1] : vector<256x128xf32> to vector<256xf32>
    %7 = vector.shape_cast %6 : vector<256xf32> to vector<256x1xf32>
    %cst_6 = arith.constant 1.280000e+02 : f32
    %8 = vector.broadcast %cst_6 : f32 to vector<256x1xf32>
    %9 = arith.divf %7, %8 : vector<256x1xf32>
    %10 = vector.broadcast %9 : vector<256x1xf32> to vector<256x128xf32>
    %11 = arith.subf %5, %10 : vector<256x128xf32>
    %12 = arith.mulf %11, %11 : vector<256x128xf32>
    %cst_7 = arith.constant dense<0.000000e+00> : vector<256xf32>
    %13 = vector.multi_reduction <add>, %12, %cst_7 [1] : vector<256x128xf32> to vector<256xf32>
    %14 = vector.shape_cast %13 : vector<256xf32> to vector<256x1xf32>
    %cst_8 = arith.constant 1.280000e+02 : f32
    %15 = vector.broadcast %cst_8 : f32 to vector<256x1xf32>
    %16 = arith.divf %14, %15 : vector<256x1xf32>
    %cst_9 = arith.constant 9.99999974E-6 : f32
    %17 = vector.broadcast %cst_9 : f32 to vector<256x1xf32>
    %18 = arith.addf %16, %17 : vector<256x1xf32>
    %19 = math.rsqrt %18 : vector<256x1xf32>
    %20 = vector.broadcast %19 : vector<256x1xf32> to vector<256x128xf32>
    %21 = arith.mulf %11, %20 : vector<256x128xf32>
    %cst_10 = arith.constant 0.000000e+00 : f32
    %22 = vector.broadcast %cst_10 : f32 to vector<256x128xf32>
    %23 = arith.cmpf oge, %21, %22 : vector<256x128xf32>
    %cst_11 = arith.constant 0.00999999977 : f32
    %24 = vector.broadcast %cst_11 : f32 to vector<256x128xf32>
    %25 = arith.mulf %24, %21 : vector<256x128xf32>
    %26 = arith.select %23, %21, %25 : vector<256x128xi1>, vector<256x128xf32>
    %c0_12 = arith.constant 0 : index
    %c0_13 = arith.constant 0 : index
    %27 = vector.load %arg4[%c0_12, %c0_13] : memref<128x128xf32, #tpu.memory_space<vmem>>, vector<128x128xf32>
    %cst_14 = arith.constant dense<0.000000e+00> : vector<256x128xf32>
    %28 = tpu.matmul %26, %27, %cst_14 {dimension_numbers = #tpu.dot_dimension_numbers<[1], [0], [0], [1], [0, 0, 1, 1], [], []>} : vector<256x128xf32>, vector<128x128xf32>, vector<256x128xf32> -> vector<256x128xf32>
    %c0_15 = arith.constant 0 : index
    %c0_16 = arith.constant 0 : index
    %29 = vector.load %arg5[%c0_15, %c0_16] : memref<1x128xf32, #tpu.memory_space<vmem>>, vector<1x128xf32>
    %30 = vector.broadcast %29 : vector<1x128xf32> to vector<256x128xf32>
    %31 = arith.addf %28, %30 : vector<256x128xf32>
    %cst_17 = arith.constant dense<0.000000e+00> : vector<256xf32>
    %32 = vector.multi_reduction <add>, %31, %cst_17 [1] : vector<256x128xf32> to vector<256xf32>
    %33 = vector.shape_cast %32 : vector<256xf32> to vector<256x1xf32>
    %cst_18 = arith.constant 1.280000e+02 : f32
    %34 = vector.broadcast %cst_18 : f32 to vector<256x1xf32>
    %35 = arith.divf %33, %34 : vector<256x1xf32>
    %36 = vector.broadcast %35 : vector<256x1xf32> to vector<256x128xf32>
    %37 = arith.subf %31, %36 : vector<256x128xf32>
    %38 = arith.mulf %37, %37 : vector<256x128xf32>
    %cst_19 = arith.constant dense<0.000000e+00> : vector<256xf32>
    %39 = vector.multi_reduction <add>, %38, %cst_19 [1] : vector<256x128xf32> to vector<256xf32>
    %40 = vector.shape_cast %39 : vector<256xf32> to vector<256x1xf32>
    %cst_20 = arith.constant 1.280000e+02 : f32
    %41 = vector.broadcast %cst_20 : f32 to vector<256x1xf32>
    %42 = arith.divf %40, %41 : vector<256x1xf32>
    %cst_21 = arith.constant 9.99999974E-6 : f32
    %43 = vector.broadcast %cst_21 : f32 to vector<256x1xf32>
    %44 = arith.addf %42, %43 : vector<256x1xf32>
    %45 = math.rsqrt %44 : vector<256x1xf32>
    %46 = vector.broadcast %45 : vector<256x1xf32> to vector<256x128xf32>
    %47 = arith.mulf %37, %46 : vector<256x128xf32>
    %cst_22 = arith.constant 0.000000e+00 : f32
    %48 = vector.broadcast %cst_22 : f32 to vector<256x128xf32>
    %49 = arith.cmpf oge, %47, %48 : vector<256x128xf32>
    %cst_23 = arith.constant 0.00999999977 : f32
    %50 = vector.broadcast %cst_23 : f32 to vector<256x128xf32>
    %51 = arith.mulf %50, %47 : vector<256x128xf32>
    %52 = arith.select %49, %47, %51 : vector<256x128xi1>, vector<256x128xf32>
    %c0_24 = arith.constant 0 : index
    %c0_25 = arith.constant 0 : index
    %53 = vector.load %arg6[%c0_24, %c0_25] : memref<1x128xf32, #tpu.memory_space<vmem>>, vector<1x128xf32>
    %54 = vector.broadcast %53 : vector<1x128xf32> to vector<256x128xf32>
    %55 = arith.mulf %52, %54 : vector<256x128xf32>
    %cst_26 = arith.constant dense<0.000000e+00> : vector<256xf32>
    %56 = vector.multi_reduction <add>, %55, %cst_26 [1] : vector<256x128xf32> to vector<256xf32>
    %57 = vector.shape_cast %56 : vector<256xf32> to vector<256x1xf32>
    %c0_27 = arith.constant 0 : index
    %c0_28 = arith.constant 0 : index
    %58 = vector.load %arg7[%c0_27, %c0_28] : memref<1x1xf32, #tpu.memory_space<vmem>>, vector<1x1xf32>
    %59 = vector.broadcast %58 : vector<1x1xf32> to vector<256x1xf32>
    %60 = arith.addf %57, %59 : vector<256x1xf32>
    %cst_29 = arith.constant 0.000000e+00 : f32
    %61 = vector.broadcast %cst_29 : f32 to vector<256x1xf32>
    %62 = arith.cmpf oge, %60, %61 : vector<256x1xf32>
    %cst_30 = arith.constant 0.00999999977 : f32
    %63 = vector.broadcast %cst_30 : f32 to vector<256x1xf32>
    %64 = arith.mulf %63, %60 : vector<256x1xf32>
    %65 = arith.select %62, %60, %64 : vector<256x1xi1>, vector<256x1xf32>
    %c0_31 = arith.constant 0 : index
    %c0_32 = arith.constant 0 : index
    %66 = vector.load %arg8[%c0_31, %c0_32] : memref<256x1xf32, #tpu.memory_space<vmem>>, vector<256x1xf32>
    tpu.vector_store %arg8[%c0_31, %c0_32], %65 {strides = array<i32>} : memref<256x1xf32, #tpu.memory_space<vmem>>, vector<256x1xf32>,
    return
  }
  func.func @transform_0(%arg0: i32) -> (i32, i32) {
    %c0_i32 = arith.constant 0 : i32
    %c0_i32_0 = arith.constant 0 : i32
    return %arg0, %c0_i32 : i32, i32
  }
  func.func @transform_1(%arg0: i32) -> (i32, i32) {
    %c0_i32 = arith.constant 0 : i32
    %c0_i32_0 = arith.constant 0 : i32
    %c0_i32_1 = arith.constant 0 : i32
    return %c0_i32, %c0_i32_0 : i32, i32
  }
  func.func @transform_2(%arg0: i32) -> (i32, i32) {
    %c0_i32 = arith.constant 0 : i32
    %c0_i32_0 = arith.constant 0 : i32
    %c0_i32_1 = arith.constant 0 : i32
    return %c0_i32, %c0_i32_0 : i32, i32
  }
  func.func @transform_3(%arg0: i32) -> (i32, i32) {
    %c0_i32 = arith.constant 0 : i32
    %c0_i32_0 = arith.constant 0 : i32
    %c0_i32_1 = arith.constant 0 : i32
    return %c0_i32, %c0_i32_0 : i32, i32
  }
  func.func @transform_4(%arg0: i32) -> (i32, i32) {
    %c0_i32 = arith.constant 0 : i32
    %c0_i32_0 = arith.constant 0 : i32
    %c0_i32_1 = arith.constant 0 : i32
    return %c0_i32, %c0_i32_0 : i32, i32
  }
  func.func @transform_5(%arg0: i32) -> (i32, i32) {
    %c0_i32 = arith.constant 0 : i32
    %c0_i32_0 = arith.constant 0 : i32
    %c0_i32_1 = arith.constant 0 : i32
    return %c0_i32, %c0_i32_0 : i32, i32
  }
  func.func @transform_6(%arg0: i32) -> (i32, i32) {
    %c0_i32 = arith.constant 0 : i32
    %c0_i32_0 = arith.constant 0 : i32
    %c0_i32_1 = arith.constant 0 : i32
    return %c0_i32, %c0_i32_0 : i32, i32
  }
  func.func @transform_7(%arg0: i32) -> (i32, i32) {
    %c0_i32 = arith.constant 0 : i32
    %c0_i32_0 = arith.constant 0 : i32
    return %arg0, %c0_i32 : i32, i32
  }
}

</mosaic_0001>

<bundles_post_ra>
// kernel: tpu_custom_call.1
= control target key start
LH: loop header
LB: loop body
LE: loop exit
PB: predicated region body
PF: predicated region fallthrough
CT: control target
= control target key end

     0   :  { %s4714_s0 = inlined_call_operand.hbm [shape: f32[300,384], index: 0, kind: input, shape index: {}]   ;;  %s4715_s1 = inlined_call_operand.hbm [shape: f32[384,128], index: 1, kind: input, shape index: {}]   ;;  %s4716_s2 = inlined_call_operand.vmem [shape: f32[1,128], index: 2, kind: input, shape index: {}]   ;;  %s4717_s3 = inlined_call_operand.hbm [shape: f32[128,128], index: 3, kind: input, shape index: {}]   ;;  %s4718_s4 = inlined_call_operand.vmem [shape: f32[1,128], index: 4, kind: input, shape index: {}]   ;;  %s4719_s5 = inlined_call_operand.vmem [shape: f32[1,128], index: 5, kind: input, shape index: {}]   ;;  %s4720_s6 = inlined_call_operand.<no memory space> [shape: f32[1,1], index: 6, kind: input, shape index: {}]   ;;  %s4721_s7 = inlined_call_operand.vmem [shape: f32[300,1], index: 7, kind: output, shape index: {}]  }
   0x1   :  { %v12_v0 = vstv %s4720_s6 }
   0x2   :  { %13 = vst [vmem:[#allocation2] sm:$0x1] %v12_v0 }
   0x3   :  { %14 = vsyncpa [#allocation4], 0 }
   0x4   :  { %16 = vsyncpa [#allocation4 + $0x1], 0 }
   0x5   :  { %17 = vsyncpa [#allocation6], 0  ;;  %s3513_s26 = smov 0   ;;  %s3515_s27 = smov 0  }
   0x6   :  { %s3517_s28 = smov 0   ;;  %s3519_s29 = smov 0  }
   0x7 LB: > { %s3532_s6 = sadd.s32 4294967295, %s3428_s29   ;;  %s3535_s30 = sadd.s32 1, %s3428_s29   ;;  %s3428_s29 = sphi %s3519_s29, %s4741_s29   ;;  %s3424_s28 = sphi %s3517_s28, %s4740_s28   ;;  %s3420_s27 = sphi %s3515_s27, %s4739_s27   ;;  %s3416_s26 = sphi %s3513_s26, %s4738_s26  }
   0x8   : > { %s27_s8 = ssub.s32 %s3428_s29, %s3535_s30  ;;  %s30_s9 = sadd.s32 1, %s3424_s28 }
   0x9   : > { %p28_p0 = scmp.eq.s32.totalorder %s27_s8, 0  ;;  %p37_p1 = scmp.ne.s32.totalorder %s3424_s28, %s3420_s27 }
   0xa   : > { %p38_p2 = scmp.eq.s32.totalorder %s3428_s29, 0  ;;  %p43_p3 = scmp.ne.s32.totalorder %s3420_s27, %s3416_s26 }
   0xb   : > { %s3545_s10 = scalar_select %p28_p0, %s3424_s28, %s30_s9  }
   0xc   : > { %p3547_p4 = por %p38_p2, %p37_p1  ;;  %p4722_p5 = scmp.eq.s32.totalorder %s3532_s6, 0 }
   0xd   : > { %p193_p6 = scmp.eq.s32.totalorder %s3532_s6, 1  ;;  %p2731_p7 = scmp.ge.s32.totalorder %s3428_s29, 1 }
   0xe   : > { %p3556_p8 = por %p4722_p5, %p43_p3  ;;  %p206_p9 = scmp.lt.s32.totalorder %s3428_s29, 3 }
   0xf   : > { %p3561_p10 = por %p193_p6, %p37_p1  ;;  %s3462_s15 = smov [#allocation5]  }
  0x10   : > { %s4725_s12 = scalar_select %p3556_p8, 1, 0 }
  0x11   : > { %s4726_s13 = scalar_select %p3561_p10, 1, 0 }
  0x12   : > { %p3565_p11 = pnand %p2731_p7, %p206_p9  ;;  %s218_s16 = sshll.u32 %s3462_s15, 4  ;;  %s219_s16 = int_to_ptr.vmem [resolvable:$true] %s218_s16 }
  0x13   : > { %s3463_s18 = smov [#allocation7]   ;;  %s3291_s20 = scalar_lea.vmem %s219_s16, 6144 }
  0x14   : > { %p3038_p12 = pneg %p3565_p11  ;;  %s234_s19 = sshll.u32 %s3463_s18, 4  ;;  %s235_s19 = int_to_ptr.vmem [resolvable:$true] %s234_s19 }
  0x15   : > { %p3292_p1 = scmp.ne.s32.totalorder %s219_s16, %s3291_s20  ;;  %p3299_p6 = scmp.lt.s32.totalorder %s219_s16, %s219_s16 }
  0x16   : > { %p3573_p13 = pnand %p3038_p12, %p4722_p5  ;;  %p3300_p7 = scmp.lt.s32.totalorder %s3291_s20, %s3291_s20 }
  0x18   : > { %p3282_p0 = pneg %p3573_p13  ;;  %p3301_p9 = por %p3300_p7, %p3299_p6 }
  0x1a   : > { %p3294_p2 = pnand %p3292_p1, %p3282_p0 }
  0x1c   : > { %p3295_p3 = pneg %p3294_p2 }
  0x1e   : > { %p3302_p12 = pnand %p3301_p9, %p3295_p3 }
  0x20   : > { %3305 = shalt.err (!%p3302_p12)
}
  0x21   : > { %s3464_s21 = smov 128   ;;  %s3465_s22 = smov 8  }
  0x22   : > { %3041 = dma.hbm_to_vmem [thread:$0]  (!%p3573_p13), %s4715_s1, 6144, %s219_s16, [#allocation6], %s3464_s21, %s3464_s21, %s3465_s22  }
  0x23   : > { %s3317_s25 = scalar_lea.vmem %s235_s19, 2048  ;;  %p3325_p10 = scmp.lt.s32.totalorder %s235_s19, %s235_s19 }
  0x24   : > { %p3318_p5 = scmp.ne.s32.totalorder %s235_s19, %s3317_s25  ;;  %p3326_p8 = scmp.lt.s32.totalorder %s3317_s25, %s3317_s25 }
  0x26   : > { %p3320_p1 = pnand %p3318_p5, %p3282_p0  ;;  %p3327_p6 = por %p3326_p8, %p3325_p10 }
  0x28   : > { %p3321_p2 = pneg %p3320_p1 }
  0x2a   : > { %p3328_p3 = pnand %p3327_p6, %p3321_p2 }
  0x2c   : > { %3331 = shalt.err (!%p3328_p3)
}
  0x2d   : > { %3044 = dma.hbm_to_vmem [thread:$0]  (!%p3573_p13), %s4717_s3, 2048, %s235_s19, [#allocation6], %s3464_s21, %s3464_s21, %s3465_s22  }
  0x2e   : > { %p2734_p7 = scmp.ge.s32.totalorder %s3428_s29, 2 }
  0x30   : > { %253 = sbr.rel (%p2734_p7) target bundleno = 87 (0x57), region = 40 }
  0x35   : > { %256 = sbr.rel (!%p3547_p4) target bundleno = 87 (0x57), region = 44  ;;  %s257_s9 = sand.u32 (%p3547_p4), 1, %s3424_s28  }
  0x36   : > { %s2735_s15 = sshll.u32 (%p3547_p4), %s3428_s29, 5  ;;  %s3026_s16 = smul.u32 (%p3547_p4), 768, %s257_s9 }
  0x37   : > { %s263_s18 = ssub.s32 (%p3547_p4), 38, %s2735_s15  ;;  %s3603_s23 = scalar_lea.sflag (%p3547_p4), [#allocation4], %s257_s9 }
  0x38   : > { %p264_p5 = scmp.lt.s32.totalorder (%p3547_p4), %s263_s18, 32  ;;  %s261_s19 = scalar_lea.vmem (%p3547_p4), [#allocation3], %s3026_s16 }
  0x3a   : > { %s4743_s18 = smov (!%p264_p5, %s263_s18), 32 }
  0x3b   : > { %s3600_s20 = smul.u32 384, %s4743_s18 }
  0x3d   : > { %s269_s17 = ssub.s32 12288, %s3600_s20 }
  0x3e   : > { %270 = vsyncadd %s3603_s23, %s269_s17  ;;  %p2738_p4 = scmp.ne.s32.totalorder %s3600_s20, 0  ;;  %s3027_s11 = smul.u32 12288, %s3428_s29 }
  0x3f   : > { %s276_s21 = sshll.u32 %s261_s19, 4  ;;  %s3336_s29 = scalar_lea.hbm %s4714_s0, 14592  ;;  %s3613_s21 = int_to_ptr.vmem [resolvable:$true] %s276_s21 }
  0x40   : > { %s3611_s25 = scalar_lea.hbm %s4714_s0, %s3027_s11 }
  0x41   : > { %s3332_s26 = scalar_lea.hbm %s3611_s25, %s3600_s20  ;;  %p3337_p0 = scmp.lt.s32.totalorder %s3611_s25, %s4714_s0 }
  0x42   : > { %p3333_p8 = scmp.ne.s32.totalorder %s3611_s25, %s3332_s26  ;;  %p3338_p9 = scmp.lt.s32.totalorder %s3336_s29, %s3332_s26 }
  0x44   : > { %p3334_p10 = pnand %p3333_p8, %p2738_p4  ;;  %p3339_p12 = por %p3338_p9, %p3337_p0 }
  0x46   : > { %p3335_p13 = pneg %p3334_p10 }
  0x48   : > { %p3340_p1 = pnand %p3339_p12, %p3335_p13 }
  0x4a   : > { %3343 = shalt.err (!%p3340_p1)
}
  0x4b   : > { %s3344_s18 = scalar_lea.vmem %s3613_s21, %s3600_s20  ;;  %s3466_s17 = smov [#allocation3]  }
  0x4c   : > { %p3345_p2 = scmp.ne.s32.totalorder %s3613_s21, %s3344_s18  ;;  %s3348_s19 = sshll.u32 %s3466_s17, 4  ;;  %s3349_s19 = int_to_ptr.vmem [resolvable:$false] %s3348_s19 }
  0x4d   : > { %s3350_s11 = scalar_lea.vmem %s3349_s19, 24576  ;;  %p3351_p7 = scmp.lt.s32.totalorder %s3613_s21, %s3349_s19 }
  0x4e   : > { %p3346_p6 = pnand %p3345_p2, %p2738_p4  ;;  %p3352_p5 = scmp.lt.s32.totalorder %s3350_s11, %s3344_s18 }
  0x50   : > { %p3347_p3 = pneg %p3346_p6  ;;  %p3353_p8 = por %p3352_p5, %p3351_p7 }
  0x52   : > { %p3354_p10 = pnand %p3353_p8, %p3347_p3 }
  0x54   : > { %3357 = shalt.err (!%p3354_p10)
}
  0x55   : > { %s3467_s22 = smov 384   ;;  %s3468_s24 = smov 24  }
  0x56   : > { %282 = dma.hbm_to_vmem [thread:$0]  (%p2738_p4), %s3611_s25, %s3600_s20, %s3613_s21, %s3603_s23, %s3467_s22, %s3467_s22, %s3468_s24  }
  0x57 PF: > { %288 = sbr.rel (%p3565_p11) target bundleno = 1483 (0x5cb), region = 48  ;;  %s3642_s26 = sand.u32 (!%p3565_p11), 1, %s3420_s27  }
  0x58   : > { %s3028_s8 = smul.u32 (!%p3565_p11), 768, %s3642_s26  ;;  %s291_s9 = scalar_lea.sflag (!%p3565_p11), [#allocation4], %s3642_s26 }
  0x59   : > { %p4729_p13 = scmp.ne.s32.totalorder (!%p3565_p11), %s4725_s12, 0 }
  0x5a   : > { %s3646_s29 = scalar_lea.vmem (!%p3565_p11), [#allocation3], %s3028_s8 }
  0x5c   : > { %3407 = dma.done.wait (%p4729_p13), %s291_s9, 12288  }
  0x5d   : > { %3409 = vsyncadd (%p4729_p13), %s291_s9, 4294955008  ;;  %p4730_p4 = scmp.eq.s32.totalorder %s3532_s6, 0 }
  0x5f   : > { %3411 = dma.done.wait (%p4730_p4), [#allocation6], 8192   ;;  %p4731_p11 = pmov %p4730_p4 }
  0x60   : > { %v3469_v1 = vmov 0.0   ;;  %v454_v2 = vld [vmem:[#allocation5 + $0x78] sm:$0xff]  ;;  %v453_v3 = vld [vmem:[#allocation5 + $0x70] sm:$0xff]  ;;  %v452_v4 = vld [vmem:[#allocation5 + $0x68] sm:$0xff]  ;;  %s2745_s15 = sshll.u32 %s3642_s26, 8  ;;  %p4732_p0 = scmp.ne.s32.totalorder %s4726_s13, 0 }
  0x61   : > { %3413 = vsyncadd (%p4731_p11), [#allocation6], 4294959104  ;;  %494 = vmatprep.subr.mxu0 %v3469_v1  ;;  %v451_v5 = vld [vmem:[#allocation5 + $0x60] sm:$0xff]  ;;  %v486_v6 = vld [vmem:[#allocation5 + $0x178] sm:$0xff]  ;;  %s4476_s16 = scalar_lea.vmem [#allocation8], %s2745_s15   ;;  %s2751_s18 = sshll.u32 (%p4732_p0), %s3532_s6, 5 }
  0x62   : > { %495 = vmatpush1.msra.mxu0 %v454_v2  ;;  %v450_v7 = vld [vmem:[#allocation5 + $0x58] sm:$0xff]  ;;  %2866 = vmatprep.subr.mxu1 %v486_v6  ;;  %v485_v8 = vld [vmem:[#allocation5 + $0x170] sm:$0xff]  ;;  %v484_v9 = vld [vmem:[#allocation5 + $0x168] sm:$0xff]  ;;  %s2767_s17 = sshll.u32 (%p4732_p0), %s3532_s6, 8  ;;  %s2368_s19 = ssub.s32 (%p4732_p0), 38, %s2751_s18 }
  0x63   : > { %496 = vmatprep.subr.mxu0 %v3469_v1  ;;  %2867 = vmatpush3.msra.mxu1 %v486_v6  ;;  %v449_v10 = vld [vmem:[#allocation5 + $0x50] sm:$0xff]  ;;  %v483_v11 = vld [vmem:[#allocation5 + $0x160] sm:$0xff]  ;;  %v448_v12 = vld [vmem:[#allocation5 + $0x48] sm:$0xff]  ;;  %s4579_s24 = scalar_lea.vmem (%p4732_p0), %s4721_s7, %s2767_s17   ;;  %p2369_p9 = scmp.lt.s32.totalorder (%p4732_p0), %s2368_s19, 32 }
  0x64   : > { %497 = vmatpush1.msra.mxu0 %v453_v3  ;;  %2868 = vmatprep.subr.mxu1 %v485_v8  ;;  %v482_v13 = vld [vmem:[#allocation5 + $0x158] sm:$0xff]  ;;  %v447_v14 = vld [vmem:[#allocation5 + $0x40] sm:$0xff]  ;;  %v481_v15 = vld [vmem:[#allocation5 + $0x150] sm:$0xff] }
  0x65   : > { %498 = vmatprep.subr.mxu0 %v3469_v1  ;;  %2869 = vmatpush3.msra.mxu1 %v485_v8  ;;  %v446_v16 = vld [vmem:[#allocation5 + $0x38] sm:$0xff]  ;;  %v480_v17 = vld [vmem:[#allocation5 + $0x148] sm:$0xff]  ;;  %v445_v18 = vld [vmem:[#allocation5 + $0x30] sm:$0xff] }
  0x66   : > { %499 = vmatpush1.msra.mxu0 %v452_v4  ;;  %2870 = vmatprep.subr.mxu1 %v484_v9  ;;  %v479_v19 = vld [vmem:[#allocation5 + $0x140] sm:$0xff]  ;;  %v444_v20 = vld [vmem:[#allocation5 + $0x28] sm:$0xff]  ;;  %v478_v21 = vld [vmem:[#allocation5 + $0x138] sm:$0xff] }
  0x67   : > { %500 = vmatprep.subr.mxu0 %v3469_v1  ;;  %2871 = vmatpush3.msra.mxu1 %v484_v9  ;;  %v443_v22 = vld [vmem:[#allocation5 + $0x20] sm:$0xff]  ;;  %v477_v23 = vld [vmem:[#allocation5 + $0x130] sm:$0xff]  ;;  %v442_v24 = vld [vmem:[#allocation5 + $0x18] sm:$0xff] }
  0x68   : > { %501 = vmatpush1.msra.mxu0 %v451_v5  ;;  %2872 = vmatprep.subr.mxu1 %v483_v11  ;;  %v476_v25 = vld [vmem:[#allocation5 + $0x128] sm:$0xff]  ;;  %v441_v26 = vld [vmem:[#allocation5 + $0x10] sm:$0xff]  ;;  %v475_v27 = vld [vmem:[#allocation5 + $0x120] sm:$0xff] }
  0x69   : > { %502 = vmatprep.subr.mxu0 %v3469_v1  ;;  %2873 = vmatpush3.msra.mxu1 %v483_v11  ;;  %v440_v28 = vld [vmem:[#allocation5 + $0x8] sm:$0xff]  ;;  %v474_v29 = vld [vmem:[#allocation5 + $0x118] sm:$0xff]  ;;  %v439_v30 = vld [vmem:[#allocation5] sm:$0xff] }
  0x6a   : > { %503 = vmatpush1.msra.mxu0 %v450_v7  ;;  %2874 = vmatprep.subr.mxu1 %v482_v13  ;;  %v473_v31 = vld [vmem:[#allocation5 + $0x110] sm:$0xff]  ;;  %v470_v32 = vld [vmem:[#allocation5 + $0xf8] sm:$0xff]  ;;  %v472_v33 = vld [vmem:[#allocation5 + $0x108] sm:$0xff] }
  0x6b   : > { %504 = vmatprep.subr.mxu0 %v3469_v1  ;;  %2875 = vmatpush3.msra.mxu1 %v482_v13  ;;  %v469_v34 = vld [vmem:[#allocation5 + $0xf0] sm:$0xff]  ;;  %v471_v35 = vld [vmem:[#allocation5 + $0x100] sm:$0xff]  ;;  %v468_v36 = vld [vmem:[#allocation5 + $0xe8] sm:$0xff] }
  0x6c   : > { %505 = vmatpush1.msra.mxu0 %v449_v10  ;;  %2876 = vmatprep.subr.mxu1 %v481_v15  ;;  %v344_v37 = vld [vmem:[%s3646_s29 + $0x8] sm:$0xff]  ;;  %v467_v38 = vld [vmem:[#allocation5 + $0xe0] sm:$0xff]  ;;  %v345_v39 = vld [vmem:[%s3646_s29 + $0x10] sm:$0xff] }
  0x6d   : > { %506 = vmatprep.subr.mxu0 %v3469_v1  ;;  %2877 = vmatpush3.msra.mxu1 %v481_v15  ;;  %v348_v40 = vld [vmem:[%s3646_s29 + $0x28] sm:$0xff]  ;;  %v466_v41 = vld [vmem:[#allocation5 + $0xd8] sm:$0xff]  ;;  %v351_v42 = vld [vmem:[%s3646_s29 + $0x40] sm:$0xff] }
  0x6e   : > { %507 = vmatpush1.msra.mxu0 %v448_v12  ;;  %2878 = vmatprep.subr.mxu1 %v480_v17  ;;  %v465_v43 = vld [vmem:[#allocation5 + $0xd0] sm:$0xff]  ;;  %v354_v44 = vld [vmem:[%s3646_s29 + $0x58] sm:$0xff]  ;;  %v464_v45 = vld [vmem:[#allocation5 + $0xc8] sm:$0xff] }
  0x6f   : > { %508 = vmatprep.subr.mxu0 %v3469_v1  ;;  %2879 = vmatpush3.msra.mxu1 %v480_v17  ;;  %v357_v46 = vld [vmem:[%s3646_s29 + $0x70] sm:$0xff]  ;;  %v463_v47 = vld [vmem:[#allocation5 + $0xc0] sm:$0xff]  ;;  %v360_v48 = vld [vmem:[%s3646_s29 + $0x88] sm:$0xff] }
  0x70   : > { %509 = vmatpush1.msra.mxu0 %v447_v14  ;;  %2880 = vmatprep.subr.mxu1 %v479_v19  ;;  %v462_v49 = vld [vmem:[#allocation5 + $0xb8] sm:$0xff]  ;;  %v363_v50 = vld [vmem:[%s3646_s29 + $0xa0] sm:$0xff]  ;;  %v461_v51 = vld [vmem:[#allocation5 + $0xb0] sm:$0xff] }
  0x71   : > { %510 = vmatprep.subr.mxu0 %v3469_v1  ;;  %2881 = vmatpush3.msra.mxu1 %v479_v19  ;;  %v366_v52 = vld [vmem:[%s3646_s29 + $0xb8] sm:$0xff]  ;;  %v460_v53 = vld [vmem:[#allocation5 + $0xa8] sm:$0xff]  ;;  %v369_v54 = vld [vmem:[%s3646_s29 + $0xd0] sm:$0xff] }
  0x72   : > { %511 = vmatpush1.msra.mxu0 %v446_v16  ;;  %2882 = vmatprep.subr.mxu1 %v478_v21  ;;  %v459_v55 = vld [vmem:[#allocation5 + $0xa0] sm:$0xff]  ;;  %v372_v56 = vld [vmem:[%s3646_s29 + $0xe8] sm:$0xff]  ;;  %v458_v57 = vld [vmem:[#allocation5 + $0x98] sm:$0xff] }
  0x73   : > { %512 = vmatprep.subr.mxu0 %v3469_v1  ;;  %2883 = vmatpush3.msra.mxu1 %v478_v21  ;;  %v375_v58 = vld [vmem:[%s3646_s29 + $0x100] sm:$0xff]  ;;  %v457_v59 = vld [vmem:[#allocation5 + $0x90] sm:$0xff]  ;;  %v378_v60 = vld [vmem:[%s3646_s29 + $0x118] sm:$0xff] }
  0x74   : > { %513 = vmatpush1.msra.mxu0 %v445_v18  ;;  %2884 = vmatprep.subr.mxu1 %v477_v23  ;;  %v456_v61 = vld [vmem:[#allocation5 + $0x88] sm:$0xff]  ;;  %v381_v62 = vld [vmem:[%s3646_s29 + $0x130] sm:$0xff]  ;;  %v455_v63 = vld [vmem:[#allocation5 + $0x80] sm:$0xff] }
  0x75   : > { %514 = vmatprep.subr.mxu0 %v3469_v1  ;;  %2885 = vmatpush3.msra.mxu1 %v477_v23  ;;  %v343_v0 = vld [vmem:[%s3646_s29] sm:$0xff]  ;;  %v384_v2 = vld [vmem:[%s3646_s29 + $0x148] sm:$0xff]  ;;  %v346_v5 = vld [vmem:[%s3646_s29 + $0x18] sm:$0xff] }
  0x76   : > { %515 = vmatpush1.msra.mxu0 %v444_v20  ;;  %2886 = vmatprep.subr.mxu1 %v476_v25  ;;  %v347_v3 = vld [vmem:[%s3646_s29 + $0x20] sm:$0xff]  ;;  %v390_v6 = vld [vmem:[%s3646_s29 + $0x178] sm:$0xff]  ;;  %v393_v8 = vld [vmem:[%s3646_s29 + $0x190] sm:$0xff] }
  0x77   : > { %516 = vmatprep.subr.mxu0 %v3469_v1  ;;  %2887 = vmatpush3.msra.mxu1 %v476_v25  ;;  %v387_v4 = vld [vmem:[%s3646_s29 + $0x160] sm:$0xff]  ;;  %v350_v7 = vld [vmem:[%s3646_s29 + $0x38] sm:$0xff]  ;;  %v396_v9 = vld [vmem:[%s3646_s29 + $0x1a8] sm:$0xff] }
  0x78   : > { %517 = vmatpush1.msra.mxu0 %v443_v22  ;;  %2888 = vmatprep.subr.mxu1 %v475_v27  ;;  %v353_v10 = vld [vmem:[%s3646_s29 + $0x50] sm:$0xff]  ;;  %v399_v11 = vld [vmem:[%s3646_s29 + $0x1c0] sm:$0xff]  ;;  %v352_v12 = vld [vmem:[%s3646_s29 + $0x48] sm:$0xff] }
  0x79   : > { %518 = vmatprep.subr.mxu0 %v3469_v1  ;;  %2889 = vmatpush3.msra.mxu1 %v475_v27  ;;  %v402_v13 = vld [vmem:[%s3646_s29 + $0x1d8] sm:$0xff]  ;;  %v356_v14 = vld [vmem:[%s3646_s29 + $0x68] sm:$0xff]  ;;  %v405_v15 = vld [vmem:[%s3646_s29 + $0x1f0] sm:$0xff] }
  0x7a   : > { %519 = vmatpush1.msra.mxu0 %v442_v24  ;;  %2890 = vmatprep.subr.mxu1 %v474_v29  ;;  %v355_v16 = vld [vmem:[%s3646_s29 + $0x60] sm:$0xff]  ;;  %v408_v17 = vld [vmem:[%s3646_s29 + $0x208] sm:$0xff]  ;;  %v358_v20 = vld [vmem:[%s3646_s29 + $0x78] sm:$0xff] }
  0x7b   : > { %520 = vmatprep.subr.mxu0 %v3469_v1  ;;  %2891 = vmatpush3.msra.mxu1 %v474_v29  ;;  %v359_v18 = vld [vmem:[%s3646_s29 + $0x80] sm:$0xff]  ;;  %v414_v21 = vld [vmem:[%s3646_s29 + $0x238] sm:$0xff]  ;;  %v417_v23 = vld [vmem:[%s3646_s29 + $0x250] sm:$0xff] }
  0x7c   : > { %521 = vmatpush1.msra.mxu0 %v441_v26  ;;  %2892 = vmatprep.subr.mxu1 %v473_v31  ;;  %v411_v19 = vld [vmem:[%s3646_s29 + $0x220] sm:$0xff]  ;;  %v362_v22 = vld [vmem:[%s3646_s29 + $0x98] sm:$0xff]  ;;  %v361_v24 = vld [vmem:[%s3646_s29 + $0x90] sm:$0xff] }
  0x7d   : > { %522 = vmatprep.subr.mxu0 %v3469_v1  ;;  %2893 = vmatpush3.msra.mxu1 %v473_v31  ;;  %v420_v25 = vld [vmem:[%s3646_s29 + $0x268] sm:$0xff]  ;;  %v365_v26 = vld [vmem:[%s3646_s29 + $0xb0] sm:$0xff]  ;;  %v423_v27 = vld [vmem:[%s3646_s29 + $0x280] sm:$0xff] }
  0x7e   : > { %523 = vmatpush1.msra.mxu0 %v440_v28  ;;  %2894 = vmatprep.subr.mxu1 %v472_v33  ;;  %v364_v28 = vld [vmem:[%s3646_s29 + $0xa8] sm:$0xff]  ;;  %v426_v29 = vld [vmem:[%s3646_s29 + $0x298] sm:$0xff]  ;;  %v429_v31 = vld [vmem:[%s3646_s29 + $0x2b0] sm:$0xff] }
  0x7f   : > { %524 = vmatprep.subr.mxu0 %v3469_v1  ;;  %2895 = vmatpush3.msra.mxu1 %v472_v33  ;;  %v432_v33 = vld [vmem:[%s3646_s29 + $0x2c8] sm:$0xff] }
  0x80   : > { %525 = vmatpush1.msra.mxu0 %v439_v30  ;;  %2896 = vmatprep.subr.mxu1 %v471_v35  ;;  %v368_v30 = vld [vmem:[%s3646_s29 + $0xc8] sm:$0xff] }
  0x81   : > { %526 = vmatprep.subr.mxu0 %v3469_v1  ;;  %558 = vmatprep.mubr.f32.mxu0 %v344_v37  ;;  %v438_v37 = vld [vmem:[%s3646_s29 + $0x2f8] sm:$0xff] }
  0x82   : > { %527 = vmatpush2.msra.mxu0 %v470_v32  ;;  %2897 = vmatpush3.msra.mxu1 %v471_v35  ;;  %v367_v32 = vld [vmem:[%s3646_s29 + $0xc0] sm:$0xff] }
  0x83   : > { %528 = vmatprep.subr.mxu0 %v3469_v1  ;;  %2898 = vmatprep.mubr.f32.mxu1 %v345_v39  ;;  %v435_v35 = vld [vmem:[%s3646_s29 + $0x2e0] sm:$0xff]  ;;  %v373_v39 = vld [vmem:[%s3646_s29 + $0xf0] sm:$0xff] }
  0x84   : > { %529 = vmatpush2.msra.mxu0 %v469_v34  ;;  %2899 = vmatmul.mubr.f32.vlgmr.msra.gmra.mxu1 %v348_v40  ;;  %v371_v34 = vld [vmem:[%s3646_s29 + $0xe0] sm:$0xff]  ;;  %v377_v40 = vld [vmem:[%s3646_s29 + $0x110] sm:$0xff] }
  0x85   : > { %530 = vmatprep.subr.mxu0 %v3469_v1  ;;  %2901 = vmatprep.mubr.f32.mxu1 %v351_v42  ;;  %v380_v42 = vld [vmem:[%s3646_s29 + $0x128] sm:$0xff] }
  0x86   : > { %531 = vmatpush2.msra.mxu0 %v468_v36  ;;  %v370_v36 = vld [vmem:[%s3646_s29 + $0xd8] sm:$0xff] }
  0x87   : > { %532 = vmatprep.subr.mxu0 %v3469_v1 }
  0x88   : > { %533 = vmatpush2.msra.mxu0 %v467_v38  ;;  %2902 = vmatmul.mubr.f32.gmra.mxu1 %v354_v44  ;;  %v374_v38 = vld [vmem:[%s3646_s29 + $0xf8] sm:$0xff]  ;;  %v383_v44 = vld [vmem:[%s3646_s29 + $0x140] sm:$0xff] }
  0x89   : > { %534 = vmatprep.subr.mxu0 %v3469_v1  ;;  %2904 = vmatprep.mubr.f32.mxu1 %v357_v46  ;;  %v386_v46 = vld [vmem:[%s3646_s29 + $0x158] sm:$0xff] }
  0x8a   : > { %535 = vmatpush2.msra.mxu0 %v466_v41  ;;  %v376_v41 = vld [vmem:[%s3646_s29 + $0x108] sm:$0xff] }
  0x8b   : > { %536 = vmatprep.subr.mxu0 %v3469_v1 }
  0x8c   : > { %537 = vmatpush2.msra.mxu0 %v465_v43  ;;  %2905 = vmatmul.mubr.f32.gmra.mxu1 %v360_v48  ;;  %v379_v43 = vld [vmem:[%s3646_s29 + $0x120] sm:$0xff]  ;;  %v389_v48 = vld [vmem:[%s3646_s29 + $0x170] sm:$0xff] }
  0x8d   : > { %538 = vmatprep.subr.mxu0 %v3469_v1  ;;  %2907 = vmatprep.mubr.f32.mxu1 %v363_v50  ;;  %v392_v50 = vld [vmem:[%s3646_s29 + $0x188] sm:$0xff] }
  0x8e   : > { %539 = vmatpush2.msra.mxu0 %v464_v45  ;;  %v382_v45 = vld [vmem:[%s3646_s29 + $0x138] sm:$0xff] }
  0x8f   : > { %540 = vmatprep.subr.mxu0 %v3469_v1 }
  0x90   : > { %541 = vmatpush2.msra.mxu0 %v463_v47  ;;  %2908 = vmatmul.mubr.f32.gmra.mxu1 %v366_v52  ;;  %v385_v47 = vld [vmem:[%s3646_s29 + $0x150] sm:$0xff]  ;;  %v395_v52 = vld [vmem:[%s3646_s29 + $0x1a0] sm:$0xff] }
  0x91   : > { %542 = vmatprep.subr.mxu0 %v3469_v1  ;;  %2910 = vmatprep.mubr.f32.mxu1 %v369_v54  ;;  %v398_v54 = vld [vmem:[%s3646_s29 + $0x1b8] sm:$0xff] }
  0x92   : > { %543 = vmatpush2.msra.mxu0 %v462_v49  ;;  %v388_v49 = vld [vmem:[%s3646_s29 + $0x168] sm:$0xff] }
  0x93   : > { %544 = vmatprep.subr.mxu0 %v3469_v1 }
  0x94   : > { %545 = vmatpush2.msra.mxu0 %v461_v51  ;;  %2911 = vmatmul.mubr.f32.gmra.mxu1 %v372_v56  ;;  %v391_v51 = vld [vmem:[%s3646_s29 + $0x180] sm:$0xff]  ;;  %v401_v56 = vld [vmem:[%s3646_s29 + $0x1d0] sm:$0xff] }
  0x95   : > { %546 = vmatprep.subr.mxu0 %v3469_v1  ;;  %2913 = vmatprep.mubr.f32.mxu1 %v375_v58  ;;  %v404_v58 = vld [vmem:[%s3646_s29 + $0x1e8] sm:$0xff] }
  0x96   : > { %547 = vmatpush2.msra.mxu0 %v460_v53  ;;  %v394_v53 = vld [vmem:[%s3646_s29 + $0x198] sm:$0xff] }
  0x97   : > { %548 = vmatprep.subr.mxu0 %v3469_v1 }
  0x98   : > { %549 = vmatpush2.msra.mxu0 %v459_v55  ;;  %2914 = vmatmul.mubr.f32.gmra.mxu1 %v378_v60  ;;  %v397_v55 = vld [vmem:[%s3646_s29 + $0x1b0] sm:$0xff]  ;;  %v407_v60 = vld [vmem:[%s3646_s29 + $0x200] sm:$0xff] }
  0x99   : > { %550 = vmatprep.subr.mxu0 %v3469_v1  ;;  %2916 = vmatprep.mubr.f32.mxu1 %v381_v62  ;;  %v410_v62 = vld [vmem:[%s3646_s29 + $0x218] sm:$0xff] }
  0x9a   : > { %551 = vmatpush2.msra.mxu0 %v458_v57  ;;  %v400_v57 = vld [vmem:[%s3646_s29 + $0x1c8] sm:$0xff] }
  0x9b   : > { %552 = vmatprep.subr.mxu0 %v3469_v1 }
  0x9c   : > { %553 = vmatpush2.msra.mxu0 %v457_v59  ;;  %2917 = vmatmul.mubr.f32.gmra.mxu1 %v384_v2  ;;  %v403_v59 = vld [vmem:[%s3646_s29 + $0x1e0] sm:$0xff]  ;;  %v412_v2 = vld [vmem:[%s3646_s29 + $0x228] sm:$0xff] }
  0x9d   : > { %554 = vmatprep.subr.mxu0 %v3469_v1  ;;  %2919 = vmatprep.mubr.f32.mxu1 %v387_v4  ;;  %v415_v4 = vld [vmem:[%s3646_s29 + $0x240] sm:$0xff] }
  0x9e   : > { %555 = vmatpush2.msra.mxu0 %v456_v61  ;;  %v406_v61 = vld [vmem:[%s3646_s29 + $0x1f8] sm:$0xff] }
  0x9f   : > { %556 = vmatprep.subr.mxu0 %v3469_v1  ;;  %v349_v1 = vld [vmem:[%s3646_s29 + $0x30] sm:$0xff] }
  0xa0   : > { %557 = vmatpush2.msra.mxu0 %v455_v63  ;;  %2920 = vmatmul.mubr.f32.gmra.mxu1 %v390_v6  ;;  %v409_v63 = vld [vmem:[%s3646_s29 + $0x210] sm:$0xff]  ;;  %v418_v6 = vld [vmem:[%s3646_s29 + $0x258] sm:$0xff] }
  0xa1   : > { %559 = vmatmul.mubr.f32.vlgmr.msra.gmra.mxu0 %v343_v0  ;;  %2922 = vmatprep.mubr.f32.mxu1 %v393_v8  ;;  %v413_v0 = vld [vmem:[%s3646_s29 + $0x230] sm:$0xff] }
  0xa2   : > { %563 = vmatprep.mubr.f32.mxu0 %v347_v3  ;;  %v416_v3 = vld [vmem:[%s3646_s29 + $0x248] sm:$0xff]  ;;  %v421_v8 = vld [vmem:[%s3646_s29 + $0x270] sm:$0xff] }
  0xa4   : > { %2923 = vmatmul.mubr.f32.gmra.mxu1 %v396_v9  ;;  %v424_v9 = vld [vmem:[%s3646_s29 + $0x288] sm:$0xff] }
  0xa5   : > { %564 = vmatmul.mubr.f32.gmra.mxu0 %v346_v5  ;;  %2925 = vmatprep.mubr.f32.mxu1 %v399_v11  ;;  %v419_v5 = vld [vmem:[%s3646_s29 + $0x260] sm:$0xff] }
  0xa6   : > { %568 = vmatprep.mubr.f32.mxu0 %v350_v7  ;;  %v422_v7 = vld [vmem:[%s3646_s29 + $0x278] sm:$0xff]  ;;  %v427_v11 = vld [vmem:[%s3646_s29 + $0x2a0] sm:$0xff] }
  0xa8   : > { %2926 = vmatmul.mubr.f32.gmra.mxu1 %v402_v13  ;;  %v430_v13 = vld [vmem:[%s3646_s29 + $0x2b8] sm:$0xff] }
  0xa9   : > { %569 = vmatmul.mubr.f32.gmra.mxu0 %v349_v1  ;;  %2928 = vmatprep.mubr.f32.mxu1 %v405_v15  ;;  %v425_v1 = vld [vmem:[%s3646_s29 + $0x290] sm:$0xff] }
  0xaa   : > { %573 = vmatprep.mubr.f32.mxu0 %v353_v10  ;;  %v428_v10 = vld [vmem:[%s3646_s29 + $0x2a8] sm:$0xff]  ;;  %v433_v15 = vld [vmem:[%s3646_s29 + $0x2d0] sm:$0xff] }
  0xac   : > { %2929 = vmatmul.mubr.f32.gmra.mxu1 %v408_v17  ;;  %v436_v17 = vld [vmem:[%s3646_s29 + $0x2e8] sm:$0xff] }
  0xad   : > { %574 = vmatmul.mubr.f32.gmra.mxu0 %v352_v12  ;;  %2931 = vmatprep.mubr.f32.mxu1 %v411_v19  ;;  %v431_v12 = vld [vmem:[%s3646_s29 + $0x2c0] sm:$0xff]  ;;  %v3787_v19 = vld [vmem:[%s4716_s2] ss:$0 sm:$0xff] }
  0xae   : > { %578 = vmatprep.mubr.f32.mxu0 %v356_v14  ;;  %v434_v14 = vld [vmem:[%s3646_s29 + $0x2d8] sm:$0xff] }
  0xb0   : > { %2932 = vmatmul.mubr.f32.gmra.mxu1 %v414_v21 }
  0xb1   : > { %579 = vmatmul.mubr.f32.gmra.mxu0 %v355_v16  ;;  %2934 = vmatprep.mubr.f32.mxu1 %v417_v23  ;;  %v437_v16 = vld [vmem:[%s3646_s29 + $0x2f0] sm:$0xff] }
  0xb2   : > { %583 = vmatprep.mubr.f32.mxu0 %v359_v18 }
  0xb4   : > { %2935 = vmatmul.mubr.f32.gmra.mxu1 %v420_v25 }
  0xb5   : > { %584 = vmatmul.mubr.f32.gmra.mxu0 %v358_v20  ;;  %2937 = vmatprep.mubr.f32.mxu1 %v423_v27 }
  0xb6   : > { %588 = vmatprep.mubr.f32.mxu0 %v362_v22 }
  0xb8   : > { %2938 = vmatmul.mubr.f32.gmra.mxu1 %v426_v29 }
  0xb9   : > { %589 = vmatmul.mubr.f32.gmra.mxu0 %v361_v24  ;;  %2940 = vmatprep.mubr.f32.mxu1 %v429_v31 }
  0xba   : > { %593 = vmatprep.mubr.f32.mxu0 %v365_v26 }
  0xbc   : > { %2941 = vmatmul.mubr.f32.gmra.mxu1 %v432_v33 }
  0xbd   : > { %594 = vmatmul.mubr.f32.gmra.mxu0 %v364_v28  ;;  %2943 = vmatprep.mubr.f32.mxu1 %v435_v35 }
  0xbe   : > { %598 = vmatprep.mubr.f32.mxu0 %v368_v30 }
  0xc0   : > { %2944 = vmatmul.mubr.f32.gmra.mxu1 %v438_v37 }
  0xc1   : > { %599 = vmatmul.mubr.f32.gmra.mxu0 %v367_v32 }
  0xc2   : > { %603 = vmatprep.mubr.f32.mxu0 %v371_v34 }
  0xc5   : > { %604 = vmatmul.mubr.f32.gmra.mxu0 %v370_v36 }
  0xc6   : > { %608 = vmatprep.mubr.f32.mxu0 %v374_v38 }
  0xc9   : > { %609 = vmatmul.mubr.f32.gmra.mxu0 %v373_v39 }
  0xca   : > { %613 = vmatprep.mubr.f32.mxu0 %v377_v40 }
  0xcd   : > { %614 = vmatmul.mubr.f32.gmra.mxu0 %v376_v41 }
  0xce   : > { %618 = vmatprep.mubr.f32.mxu0 %v380_v42 }
  0xd1   : > { %619 = vmatmul.mubr.f32.gmra.mxu0 %v379_v43 }
  0xd2   : > { %623 = vmatprep.mubr.f32.mxu0 %v383_v44 }
  0xd5   : > { %624 = vmatmul.mubr.f32.gmra.mxu0 %v382_v45 }
  0xd6   : > { %628 = vmatprep.mubr.f32.mxu0 %v386_v46 }
  0xd9   : > { %629 = vmatmul.mubr.f32.gmra.mxu0 %v385_v47 }
  0xda   : > { %633 = vmatprep.mubr.f32.mxu0 %v389_v48 }
  0xdd   : > { %634 = vmatmul.mubr.f32.gmra.mxu0 %v388_v49 }
  0xde   : > { %638 = vmatprep.mubr.f32.mxu0 %v392_v50 }
  0xe1   : > { %639 = vmatmul.mubr.f32.gmra.mxu0 %v391_v51 }
  0xe2   : > { %643 = vmatprep.mubr.f32.mxu0 %v395_v52 }
  0xe5   : > { %644 = vmatmul.mubr.f32.gmra.mxu0 %v394_v53 }
  0xe6   : > { %648 = vmatprep.mubr.f32.mxu0 %v398_v54 }
  0xe9   : > { %649 = vmatmul.mubr.f32.gmra.mxu0 %v397_v55 }
  0xea   : > { %653 = vmatprep.mubr.f32.mxu0 %v401_v56 }
  0xed   : > { %654 = vmatmul.mubr.f32.gmra.mxu0 %v400_v57 }
  0xee   : > { %658 = vmatprep.mubr.f32.mxu0 %v404_v58 }
  0xf1   : > { %659 = vmatmul.mubr.f32.gmra.mxu0 %v403_v59 }
  0xf2   : > { %663 = vmatprep.mubr.f32.mxu0 %v407_v60 }
  0xf5   : > { %664 = vmatmul.mubr.f32.gmra.mxu0 %v406_v61 }
  0xf6   : > { %668 = vmatprep.mubr.f32.mxu0 %v410_v62 }
  0xf9   : > { %669 = vmatmul.mubr.f32.gmra.mxu0 %v409_v63 }
  0xfa   : > { %673 = vmatprep.mubr.f32.mxu0 %v413_v0 }
  0xfd   : > { %674 = vmatmul.mubr.f32.gmra.mxu0 %v412_v2 }
  0xfe   : > { %678 = vmatprep.mubr.f32.mxu0 %v416_v3 }
 0x101   : > { %679 = vmatmul.mubr.f32.gmra.mxu0 %v415_v4 }
 0x102   : > { %683 = vmatprep.mubr.f32.mxu0 %v419_v5 }
 0x105   : > { %684 = vmatmul.mubr.f32.gmra.mxu0 %v418_v6 }
 0x106   : > { %688 = vmatprep.mubr.f32.mxu0 %v422_v7 }
 0x109   : > { %689 = vmatmul.mubr.f32.gmra.mxu0 %v421_v8 }
 0x10a   : > { %693 = vmatprep.mubr.f32.mxu0 %v425_v1 }
 0x10d   : > { %694 = vmatmul.mubr.f32.gmra.mxu0 %v424_v9 }
 0x10e   : > { %698 = vmatprep.mubr.f32.mxu0 %v428_v10 }
 0x111   : > { %699 = vmatmul.mubr.f32.gmra.mxu0 %v427_v11 }
 0x112   : > { %703 = vmatprep.mubr.f32.mxu0 %v431_v12 }
 0x115   : > { %704 = vmatmul.mubr.f32.gmra.mxu0 %v430_v13 }
 0x116   : > { %708 = vmatprep.mubr.f32.mxu0 %v434_v14 }
 0x119   : > { %709 = vmatmul.mubr.f32.gmra.mxu0 %v433_v15 }
 0x11a   : > { %713 = vmatprep.mubr.f32.mxu0 %v437_v16 }
 0x11d   : > { %714 = vmatmul.mubr.f32.gmra.mxu0 %v436_v17 }
 0x144   : > { %v2900_v18 = vpop.f32.mrf.mxu1 }
 0x146   : > { %v785_v21 = vpop.f32.mrf.mxu1 }
 0x148   : > { %v2903_v26 = vpop.f32.mrf.mxu1 }
 0x14a   : > { %v795_v31 = vpop.f32.mrf.mxu1 }
 0x14c   : > { %v2906_v36 = vpop.f32.mrf.mxu1 }
 0x14e   : > { %v805_v41 = vpop.f32.mrf.mxu1 }
 0x150   : > { %v2909_v46 = vpop.f32.mrf.mxu1 }
 0x152   : > { %v815_v51 = vpop.f32.mrf.mxu1 }
 0x154   : > { %v2912_v56 = vpop.f32.mrf.mxu1 }
 0x156   : > { %v825_v61 = vpop.f32.mrf.mxu1 }
 0x158   : > { %v2915_v3 = vpop.f32.mrf.mxu1 }
 0x15a   : > { %v835_v8 = vpop.f32.mrf.mxu1 }
 0x15c   : > { %v2918_v12 = vpop.f32.mrf.mxu1 }
 0x15e   : > { %v845_v17 = vpop.f32.mrf.mxu1 }
 0x161   : > { %v560_v20 = vpop.f32.mrf.mxu0 }
 0x162   : > { %v561_v22 = vadd.f32 %v3787_v19, %v560_v20 }
 0x163   : > { %v562_v23 = vpop.f32.mrf.mxu0 }
 0x164   : > { %v3790_v24 = vadd.f32 %v785_v21, %v561_v22  ;;  %v2921_v23 = vpop.f32.mrf.mxu1 }
 0x165   : > { %v565_v25 = vpop.f32.mrf.mxu0 }
 0x166   : > { %v566_v27 = vadd.f32 %v3787_v19, %v565_v25  ;;  %944 = vadd.xlane.f32.xlu0 %v3790_v24 }
 0x167   : > { %v567_v28 = vpop.f32.mrf.mxu0 }
 0x168   : > { %v3794_v29 = vadd.f32 %v2900_v18, %v566_v27 }
 0x169   : > { %v570_v30 = vpop.f32.mrf.mxu0 }
 0x16a   : > { %v571_v32 = vadd.f32 %v3787_v19, %v570_v30  ;;  %946 = vadd.xlane.f32.xlu0 %v3794_v29  ;;  %v855_v30 = vpop.f32.mrf.mxu1 }
 0x16b   : > { %v572_v33 = vpop.f32.mrf.mxu0 }
 0x16c   : > { %v3798_v34 = vadd.f32 %v795_v31, %v571_v32 }
 0x16d   : > { %v575_v35 = vpop.f32.mrf.mxu0 }
 0x16e   : > { %v576_v37 = vadd.f32 %v3787_v19, %v575_v35  ;;  %948 = vadd.xlane.f32.xlu1 %v3798_v34 }
 0x16f   : > { %v577_v38 = vpop.f32.mrf.mxu0 }
 0x170   : > { %v3802_v39 = vadd.f32 %v2903_v26, %v576_v37 }
 0x171   : > { %v580_v40 = vpop.f32.mrf.mxu0 }
 0x172   : > { %v581_v42 = vadd.f32 %v3787_v19, %v580_v40  ;;  %950 = vadd.xlane.f32.xlu1 %v3802_v39 }
 0x173   : > { %v582_v43 = vpop.f32.mrf.mxu0 }
 0x174   : > { %v3806_v44 = vadd.f32 %v805_v41, %v581_v42 }
 0x175   : > { %v585_v45 = vpop.f32.mrf.mxu0 }
 0x176   : > { %v586_v47 = vadd.f32 %v3787_v19, %v585_v45  ;;  %952 = vadd.xlane.f32.xlu0 %v3806_v44 }
 0x177   : > { %v587_v48 = vpop.f32.mrf.mxu0 }
 0x178   : > { %v3810_v49 = vadd.f32 %v2906_v36, %v586_v47  ;;  %v2924_v36 = vpop.f32.mrf.mxu1 }
 0x179   : > { %v590_v50 = vpop.f32.mrf.mxu0 }
 0x17a   : > { %v591_v52 = vadd.f32 %v3787_v19, %v590_v50  ;;  %954 = vadd.xlane.f32.xlu1 %v3810_v49  ;;  %v865_v42 = vpop.f32.mrf.mxu1 }
 0x17b   : > { %v592_v53 = vpop.f32.mrf.mxu0 }
 0x17c   : > { %v3814_v54 = vadd.f32 %v815_v51, %v591_v52  ;;  %v2927_v48 = vpop.f32.mrf.mxu1 }
 0x17d   : > { %v595_v55 = vpop.f32.mrf.mxu0 }
 0x17e   : > { %v596_v57 = vadd.f32 %v3787_v19, %v595_v55  ;;  %956 = vadd.xlane.f32.xlu0 %v3814_v54  ;;  %v875_v55 = vpop.f32.mrf.mxu1 }
 0x17f   : > { %v597_v58 = vpop.f32.mrf.mxu0 }
 0x180   : > { %v3818_v59 = vadd.f32 %v2909_v46, %v596_v57 }
 0x181   : > { %v600_v60 = vpop.f32.mrf.mxu0 }
 0x182   : > { %v601_v62 = vadd.f32 %v3787_v19, %v600_v60  ;;  %958 = vadd.xlane.f32.xlu1 %v3818_v59 }
 0x183   : > { %v602_v63 = vpop.f32.mrf.mxu0 }
 0x184   : > { %v3822_v0 = vadd.f32 %v825_v61, %v601_v62  ;;  %v2930_v61 = vpop.f32.mrf.mxu1 }
 0x185   : > { %v605_v2 = vpop.f32.mrf.mxu0 }
 0x186   : > { %v606_v4 = vadd.f32 %v3787_v19, %v605_v2  ;;  %960 = vadd.xlane.f32.xlu0 %v3822_v0 }
 0x187   : > { %v607_v5 = vpop.f32.mrf.mxu0 }
 0x188   : > { %v3826_v6 = vadd.f32 %v2912_v56, %v606_v4  ;;  %v885_v4 = vpop.f32.mrf.mxu1 }
 0x189   : > { %v610_v7 = vpop.f32.mrf.mxu0 }
 0x18a   : > { %v611_v1 = vadd.f32 %v3787_v19, %v610_v7  ;;  %962 = vadd.xlane.f32.xlu1 %v3826_v6 }
 0x18b   : > { %v612_v9 = vpop.f32.mrf.mxu0 }
 0x18c   : > { %v3830_v10 = vadd.f32 %v835_v8, %v611_v1  ;;  %v2933_v9 = vpop.f32.mrf.mxu1 }
 0x18d   : > { %v615_v11 = vpop.f32.mrf.mxu0 }
 0x18e   : > { %v616_v13 = vadd.f32 %v3787_v19, %v615_v11  ;;  %964 = vadd.xlane.f32.xlu0 %v3830_v10 }
 0x18f   : > { %v617_v14 = vpop.f32.mrf.mxu0 }
 0x190   : > { %v3834_v15 = vadd.f32 %v2915_v3, %v616_v13 }
 0x191   : > { %v620_v16 = vpop.f32.mrf.mxu0 }
 0x192   : > { %v621_v18 = vadd.f32 %v3787_v19, %v620_v16  ;;  %966 = vadd.xlane.f32.xlu1 %v3834_v15  ;;  %v895_v16 = vpop.f32.mrf.mxu1 }
 0x193   : > { %v622_v20 = vpop.f32.mrf.mxu0 }
 0x194   : > { %v3838_v21 = vadd.f32 %v845_v17, %v621_v18 }
 0x195   : > { %v625_v22 = vpop.f32.mrf.mxu0 }
 0x196   : > { %v626_v25 = vadd.f32 %v3787_v19, %v625_v22  ;;  %968 = vadd.xlane.f32.xlu0 %v3838_v21 }
 0x197   : > { %v627_v26 = vpop.f32.mrf.mxu0 }
 0x198   : > { %v3842_v27 = vadd.f32 %v2918_v12, %v626_v25 }
 0x199   : > { %v630_v28 = vpop.f32.mrf.mxu0 }
 0x19a   : > { %v631_v31 = vadd.f32 %v3787_v19, %v630_v28  ;;  %970 = vadd.xlane.f32.xlu1 %v3842_v27 }
 0x19b   : > { %v632_v32 = vpop.f32.mrf.mxu0 }
 0x19c   : > { %v3846_v33 = vadd.f32 %v855_v30, %v631_v31 }
 0x19d   : > { %v635_v35 = vpop.f32.mrf.mxu0 }
 0x19e   : > { %v636_v37 = vadd.f32 %v3787_v19, %v635_v35  ;;  %972 = vadd.xlane.f32.xlu0 %v3846_v33 }
 0x19f   : > { %v637_v38 = vpop.f32.mrf.mxu0 }
 0x1a0   : > { %v3850_v40 = vadd.f32 %v2921_v23, %v636_v37  ;;  %v2936_v23 = vpop.f32.mrf.mxu1 }
 0x1a1   : > { %v640_v41 = vpop.f32.mrf.mxu0 }
 0x1a2   : > { %v641_v43 = vadd.f32 %v3787_v19, %v640_v41  ;;  %974 = vadd.xlane.f32.xlu1 %v3850_v40  ;;  %v905_v31 = vpop.f32.mrf.mxu1 }
 0x1a3   : > { %v642_v45 = vpop.f32.mrf.mxu0 }
 0x1a4   : > { %v3854_v46 = vadd.f32 %v865_v42, %v641_v43  ;;  %v2939_v38 = vpop.f32.mrf.mxu1 }
 0x1a5   : > { %v645_v47 = vpop.f32.mrf.mxu0 }
 0x1a6   : > { %v646_v50 = vadd.f32 %v3787_v19, %v645_v47  ;;  %976 = vadd.xlane.f32.xlu0 %v3854_v46  ;;  %v915_v47 = vpop.f32.mrf.mxu1 }
 0x1a7   : > { %v647_v51 = vpop.f32.mrf.mxu0 }
 0x1a8   : > { %v3858_v52 = vadd.f32 %v2924_v36, %v646_v50 }
 0x1a9   : > { %v650_v53 = vpop.f32.mrf.mxu0 }
 0x1aa   : > { %v651_v56 = vadd.f32 %v3787_v19, %v650_v53  ;;  %978 = vadd.xlane.f32.xlu1 %v3858_v52 }
 0x1ab   : > { %v652_v57 = vpop.f32.mrf.mxu0 }
 0x1ac   : > { %v3862_v58 = vadd.f32 %v875_v55, %v651_v56  ;;  %v2942_v55 = vpop.f32.mrf.mxu1 }
 0x1ad   : > { %v655_v60 = vpop.f32.mrf.mxu0 }
 0x1ae   : > { %v656_v62 = vadd.f32 %v3787_v19, %v655_v60  ;;  %980 = vadd.xlane.f32.xlu0 %v3862_v58 }
 0x1af   : > { %v657_v63 = vpop.f32.mrf.mxu0 }
 0x1b0   : > { %v3866_v2 = vadd.f32 %v2927_v48, %v656_v62  ;;  %v925_v62 = vpop.f32.mrf.mxu1 }
 0x1b1   : > { %v660_v3 = vpop.f32.mrf.mxu0 }
 0x1b2   : > { %v661_v5 = vadd.f32 %v3787_v19, %v660_v3  ;;  %982 = vadd.xlane.f32.xlu1 %v3866_v2 }
 0x1b3   : > { %v662_v7 = vpop.f32.mrf.mxu0 }
 0x1b4   : > { %v3870_v8 = vadd.f32 %v885_v4, %v661_v5  ;;  %v2945_v7 = vpop.f32.mrf.mxu1 }
 0x1b5   : > { %v665_v1 = vpop.f32.mrf.mxu0 }
 0x1b6   : > { %v666_v11 = vadd.f32 %v3787_v19, %v665_v1  ;;  %984 = vadd.xlane.f32.xlu0 %v3870_v8 }
 0x1b7   : > { %v667_v12 = vpop.f32.mrf.mxu0 }
 0x1b8   : > { %v3874_v13 = vadd.f32 %v2930_v61, %v666_v11 }
 0x1b9   : > { %v670_v14 = vpop.f32.mrf.mxu0 }
 0x1ba   : > { %v671_v17 = vadd.f32 %v3787_v19, %v670_v14  ;;  %986 = vadd.xlane.f32.xlu1 %v3874_v13  ;;  %v935_v14 = vpop.f32.mrf.mxu1 }
 0x1bb   : > { %v672_v18 = vpop.f32.mrf.mxu0 }
 0x1bc   : > { %v3878_v20 = vadd.f32 %v895_v16, %v671_v17 }
 0x1bd   : > { %v675_v22 = vpop.f32.mrf.mxu0 }
 0x1be   : > { %v676_v25 = vadd.f32 %v3787_v19, %v675_v22  ;;  %988 = vadd.xlane.f32.xlu0 %v3878_v20 }
 0x1bf   : > { %v677_v26 = vpop.f32.mrf.mxu0 }
 0x1c0   : > { %v3882_v28 = vadd.f32 %v2933_v9, %v676_v25 }
 0x1c1   : > { %v680_v30 = vpop.f32.mrf.mxu0 }
 0x1c2   : > { %v681_v32 = vadd.f32 %v3787_v19, %v680_v30  ;;  %990 = vadd.xlane.f32.xlu1 %v3882_v28 }
 0x1c3   : > { %v682_v35 = vpop.f32.mrf.mxu0 }
 0x1c4   : > { %v3886_v36 = vadd.f32 %v905_v31, %v681_v32  ;;  %v1408_v35 = vld [vmem:[#allocation7 + $0x78] sm:$0xff] }
 0x1c5   : > { %v685_v37 = vpop.f32.mrf.mxu0  ;;  %2946 = vmatprep.subr.mxu1 %v1408_v35 }
 0x1c6   : > { %v686_v41 = vadd.f32 %v3787_v19, %v685_v37  ;;  %992 = vadd.xlane.f32.xlu0 %v3886_v36  ;;  %v1407_v37 = vld [vmem:[#allocation7 + $0x70] sm:$0xff]  ;;  %2947 = vmatpush3.msra.mxu1 %v1408_v35 }
 0x1c7   : > { %v687_v42 = vpop.f32.mrf.mxu0  ;;  %2948 = vmatprep.subr.mxu1 %v1407_v37 }
 0x1c8   : > { %v3890_v43 = vadd.f32 %v2936_v23, %v686_v41  ;;  %v1406_v42 = vld [vmem:[#allocation7 + $0x68] sm:$0xff]  ;;  %2949 = vmatpush3.msra.mxu1 %v1407_v37 }
 0x1c9   : > { %v690_v45 = vpop.f32.mrf.mxu0  ;;  %2950 = vmatprep.subr.mxu1 %v1406_v42  ;;  %v1398_v37 = vld [vmem:[#allocation7 + $0x28] sm:$0xff] }
 0x1ca   : > { %v691_v48 = vadd.f32 %v3787_v19, %v690_v45  ;;  %994 = vadd.xlane.f32.xlu1 %v3890_v43  ;;  %2951 = vmatpush3.msra.mxu1 %v1406_v42 }
 0x1cb   : > { %v692_v50 = vpop.f32.mrf.mxu0 }
 0x1cc   : > { %v3894_v51 = vadd.f32 %v915_v47, %v691_v48 }
 0x1cd   : > { %v695_v53 = vpop.f32.mrf.mxu0 }
 0x1ce   : > { %v696_v56 = vadd.f32 %v3787_v19, %v695_v53  ;;  %996 = vadd.xlane.f32.xlu0 %v3894_v51 }
 0x1cf   : > { %v697_v57 = vpop.f32.mrf.mxu0 }
 0x1d0   : > { %v3898_v60 = vadd.f32 %v2939_v38, %v696_v56 }
 0x1d1   : > { %v700_v61 = vpop.f32.mrf.mxu0 }
 0x1d2   : > { %v701_v63 = vadd.f32 %v3787_v19, %v700_v61  ;;  %998 = vadd.xlane.f32.xlu1 %v3898_v60 }
 0x1d3   : > { %v702_v3 = vpop.f32.mrf.mxu0 }
 0x1d4   : > { %v3902_v4 = vadd.f32 %v925_v62, %v701_v63  ;;  %v1405_v63 = vld [vmem:[#allocation7 + $0x60] sm:$0xff]  ;;  %v1404_v3 = vld [vmem:[#allocation7 + $0x58] sm:$0xff] }
 0x1d5   : > { %v705_v5 = vpop.f32.mrf.mxu0  ;;  %2952 = vmatprep.subr.mxu1 %v1405_v63 }
 0x1d6   : > { %v706_v1 = vadd.f32 %v3787_v19, %v705_v5  ;;  %1000 = vadd.xlane.f32.xlu0 %v3902_v4  ;;  %2953 = vmatpush3.msra.mxu1 %v1405_v63 }
 0x1d7   : > { %v707_v9 = vpop.f32.mrf.mxu0  ;;  %2954 = vmatprep.subr.mxu1 %v1404_v3 }
 0x1d8   : > { %v3906_v11 = vadd.f32 %v2942_v55, %v706_v1  ;;  %2955 = vmatpush3.msra.mxu1 %v1404_v3  ;;  %v1403_v1 = vld [vmem:[#allocation7 + $0x50] sm:$0xff] }
 0x1d9   : > { %v710_v12 = vpop.f32.mrf.mxu0  ;;  %2956 = vmatprep.subr.mxu1 %v1403_v1 }
 0x1da   : > { %v711_v16 = vadd.f32 %v3787_v19, %v710_v12  ;;  %1002 = vadd.xlane.f32.xlu1 %v3906_v11  ;;  %2957 = vmatpush3.msra.mxu1 %v1403_v1  ;;  %v1402_v12 = vld [vmem:[#allocation7 + $0x48] sm:$0xff] }
 0x1db   : > { %v712_v17 = vpop.f32.mrf.mxu0  ;;  %2958 = vmatprep.subr.mxu1 %v1402_v12 }
 0x1dc   : > { %v3910_v18 = vadd.f32 %v935_v14, %v711_v16  ;;  %2959 = vmatpush3.msra.mxu1 %v1402_v12  ;;  %v1401_v17 = vld [vmem:[#allocation7 + $0x40] sm:$0xff] }
 0x1dd   : > { %v715_v22 = vpop.f32.mrf.mxu0  ;;  %2960 = vmatprep.subr.mxu1 %v1401_v17 }
 0x1de   : > { %v716_v23 = vadd.f32 %v3787_v19, %v715_v22  ;;  %1004 = vadd.xlane.f32.xlu0 %v3910_v18  ;;  %2961 = vmatpush3.msra.mxu1 %v1401_v17 }
 0x1df   : > { %v717_v25 = vpop.f32.mrf.mxu0 }
 0x1e0   : > { %v3914_v26 = vadd.f32 %v2945_v7, %v716_v23  ;;  %v1400_v23 = vld [vmem:[#allocation7 + $0x38] sm:$0xff] }
 0x1e1   : > { %2962 = vmatprep.subr.mxu1 %v1400_v23 }
 0x1e2   : > { %1006 = vadd.xlane.f32.xlu1 %v3914_v26  ;;  %2963 = vmatpush3.msra.mxu1 %v1400_v23 }
 0x1ef   : > { %v945_v30 = vpop.xlane.xlu0 %944 }
 0x1f0   : > { %v1009_v31 = vmul.f32 0.0078125, %v945_v30 }
 0x1f2   : > { %v3918_v32 = vsub.f32 %v3790_v24, %v1009_v31  ;;  %v1399_v31 = vld [vmem:[#allocation7 + $0x30] sm:$0xff] }
 0x1f3   : > { %v947_v38 = vpop.xlane.xlu0 %946  ;;  %2964 = vmatprep.subr.mxu1 %v1399_v31 }
 0x1f4   : > { %v1010_v41 = vmul.f32 0.0078125, %v947_v38  ;;  %v1073_v19 = vmul.f32 %v3918_v32, %v3918_v32  ;;  %2965 = vmatpush3.msra.mxu1 %v1399_v31 }
 0x1f5   : > { %2966 = vmatprep.subr.mxu1 %v1398_v37 }
 0x1f6   : > { %1105 = vadd.xlane.f32.xlu0 %v1073_v19  ;;  %v3923_v45 = vsub.f32 %v3794_v29, %v1010_v41  ;;  %2967 = vmatpush3.msra.mxu1 %v1398_v37  ;;  %v1397_v19 = vld [vmem:[#allocation7 + $0x20] sm:$0xff] }
 0x1f7   : > { %v949_v47 = vpop.xlane.xlu1 %948  ;;  %2968 = vmatprep.subr.mxu1 %v1397_v19 }
 0x1f8   : > { %v1011_v24 = vmul.f32 0.0078125, %v949_v47  ;;  %v1074_v48 = vmul.f32 %v3923_v45, %v3923_v45  ;;  %2969 = vmatpush3.msra.mxu1 %v1397_v19  ;;  %v1396_v47 = vld [vmem:[#allocation7 + $0x18] sm:$0xff] }
 0x1f9   : > { %2970 = vmatprep.subr.mxu1 %v1396_v47 }
 0x1fa   : > { %1107 = vadd.xlane.f32.xlu1 %v1074_v48  ;;  %v3928_v50 = vsub.f32 %v3798_v34, %v1011_v24  ;;  %2971 = vmatpush3.msra.mxu1 %v1396_v47 }
 0x1fb   : > { %v951_v53 = vpop.xlane.xlu1 %950 }
 0x1fc   : > { %v1012_v55 = vmul.f32 0.0078125, %v951_v53  ;;  %v1075_v56 = vmul.f32 %v3928_v50, %v3928_v50  ;;  %v1395_v53 = vld [vmem:[#allocation7 + $0x10] sm:$0xff] }
 0x1fd   : > { %2972 = vmatprep.subr.mxu1 %v1395_v53 }
 0x1fe   : > { %1109 = vadd.xlane.f32.xlu0 %v1075_v56  ;;  %v3933_v29 = vsub.f32 %v3802_v39, %v1012_v55  ;;  %2973 = vmatpush3.msra.mxu1 %v1395_v53  ;;  %v1394_v56 = vld [vmem:[#allocation7 + $0x8] sm:$0xff] }
 0x1ff   : > { %v953_v57 = vpop.xlane.xlu0 %952  ;;  %2974 = vmatprep.subr.mxu1 %v1394_v56 }
 0x200   : > { %v1013_v61 = vmul.f32 0.0078125, %v953_v57  ;;  %v1076_v62 = vmul.f32 %v3933_v29, %v3933_v29  ;;  %2975 = vmatpush3.msra.mxu1 %v1394_v56 }
 0x202   : > { %1111 = vadd.xlane.f32.xlu1 %v1076_v62  ;;  %v3938_v34 = vsub.f32 %v3806_v44, %v1013_v61  ;;  %v1393_v62 = vld [vmem:[#allocation7] sm:$0xff] }
 0x203   : > { %v955_v5 = vpop.xlane.xlu1 %954  ;;  %2976 = vmatprep.subr.mxu1 %v1393_v62 }
 0x204   : > { %v1014_v7 = vmul.f32 0.0078125, %v955_v5  ;;  %v1077_v39 = vmul.f32 %v3938_v34, %v3938_v34  ;;  %2977 = vmatpush3.msra.mxu1 %v1393_v62 }
 0x206   : > { %1113 = vadd.xlane.f32.xlu0 %v1077_v39  ;;  %v3943_v9 = vsub.f32 %v3810_v49, %v1014_v7 }
 0x207   : > { %v957_v14 = vpop.xlane.xlu0 %956 }
 0x208   : > { %v1015_v44 = vmul.f32 0.0078125, %v957_v14  ;;  %v1078_v16 = vmul.f32 %v3943_v9, %v3943_v9 }
 0x20a   : > { %1115 = vadd.xlane.f32.xlu1 %v1078_v16  ;;  %v3948_v22 = vsub.f32 %v3814_v54, %v1015_v44 }
 0x20b   : > { %v959_v25 = vpop.xlane.xlu1 %958 }
 0x20c   : > { %v1016_v49 = vmul.f32 0.0078125, %v959_v25  ;;  %v1079_v30 = vmul.f32 %v3948_v22, %v3948_v22 }
 0x20e   : > { %1117 = vadd.xlane.f32.xlu0 %v1079_v30  ;;  %v3953_v35 = vsub.f32 %v3818_v59, %v1016_v49 }
 0x20f   : > { %v961_v38 = vpop.xlane.xlu0 %960 }
 0x210   : > { %v1017_v54 = vmul.f32 0.0078125, %v961_v38  ;;  %v1080_v41 = vmul.f32 %v3953_v35, %v3953_v35 }
 0x212   : > { %1119 = vadd.xlane.f32.xlu1 %v1080_v41  ;;  %v3958_v42 = vsub.f32 %v3822_v0, %v1017_v54 }
 0x213   : > { %v963_v24 = vpop.xlane.xlu1 %962 }
 0x214   : > { %v1018_v59 = vmul.f32 0.0078125, %v963_v24  ;;  %v1081_v48 = vmul.f32 %v3958_v42, %v3958_v42 }
 0x216   : > { %1121 = vadd.xlane.f32.xlu0 %v1081_v48  ;;  %v3963_v55 = vsub.f32 %v3826_v6, %v1018_v59 }
 0x217   : > { %v965_v57 = vpop.xlane.xlu0 %964 }
 0x218   : > { %v1019_v0 = vmul.f32 0.0078125, %v965_v57  ;;  %v1082_v61 = vmul.f32 %v3963_v55, %v3963_v55 }
 0x21a   : > { %1123 = vadd.xlane.f32.xlu1 %v1082_v61  ;;  %v3968_v63 = vsub.f32 %v3830_v10, %v1019_v0 }
 0x21b   : > { %v967_v3 = vpop.xlane.xlu1 %966 }
 0x21c   : > { %v1020_v5 = vmul.f32 0.0078125, %v967_v3  ;;  %v1083_v6 = vmul.f32 %v3968_v63, %v3968_v63 }
 0x21e   : > { %1125 = vadd.xlane.f32.xlu0 %v1083_v6  ;;  %v3973_v7 = vsub.f32 %v3834_v15, %v1020_v5 }
 0x21f   : > { %v969_v39 = vpop.xlane.xlu0 %968 }
 0x220   : > { %v1021_v1 = vmul.f32 0.0078125, %v969_v39  ;;  %v1084_v12 = vmul.f32 %v3973_v7, %v3973_v7 }
 0x222   : > { %1127 = vadd.xlane.f32.xlu1 %v1084_v12  ;;  %v3978_v14 = vsub.f32 %v3838_v21, %v1021_v1 }
 0x223   : > { %v971_v10 = vpop.xlane.xlu1 %970 }
 0x224   : > { %v1022_v44 = vmul.f32 0.0078125, %v971_v10  ;;  %v1085_v16 = vmul.f32 %v3978_v14, %v3978_v14 }
 0x226   : > { %1129 = vadd.xlane.f32.xlu0 %v1085_v16  ;;  %v3983_v17 = vsub.f32 %v3842_v27, %v1022_v44 }
 0x227   : > { %v973_v15 = vpop.xlane.xlu0 %972 }
 0x228   : > { %v1023_v23 = vmul.f32 0.0078125, %v973_v15  ;;  %v1086_v25 = vmul.f32 %v3983_v17, %v3983_v17 }
 0x22a   : > { %1131 = vadd.xlane.f32.xlu1 %v1086_v25  ;;  %v3988_v49 = vsub.f32 %v3846_v33, %v1023_v23 }
 0x22b   : > { %v975_v21 = vpop.xlane.xlu1 %974 }
 0x22c   : > { %v1024_v30 = vmul.f32 0.0078125, %v975_v21  ;;  %v1087_v31 = vmul.f32 %v3988_v49, %v3988_v49 }
 0x22e   : > { %1133 = vadd.xlane.f32.xlu0 %v1087_v31  ;;  %v3993_v37 = vsub.f32 %v3850_v40, %v1024_v30 }
 0x22f   : > { %v977_v27 = vpop.xlane.xlu0 %976 }
 0x230   : > { %v1025_v38 = vmul.f32 0.0078125, %v977_v27  ;;  %v1088_v54 = vmul.f32 %v3993_v37, %v3993_v37 }
 0x232   : > { %1135 = vadd.xlane.f32.xlu1 %v1088_v54  ;;  %v3998_v41 = vsub.f32 %v3854_v46, %v1025_v38 }
 0x233   : > { %v979_v33 = vpop.xlane.xlu1 %978 }
 0x234   : > { %v1026_v19 = vmul.f32 0.0078125, %v979_v33  ;;  %v1089_v47 = vmul.f32 %v3998_v41, %v3998_v41 }
 0x236   : > { %1137 = vadd.xlane.f32.xlu0 %v1089_v47  ;;  %v4003_v24 = vsub.f32 %v3858_v52, %v1026_v19 }
 0x237   : > { %v981_v40 = vpop.xlane.xlu0 %980 }
 0x238   : > { %v1027_v59 = vmul.f32 0.0078125, %v981_v40  ;;  %v1090_v48 = vmul.f32 %v4003_v24, %v4003_v24 }
 0x23a   : > { %1139 = vadd.xlane.f32.xlu1 %v1090_v48  ;;  %v4008_v53 = vsub.f32 %v3862_v58, %v1027_v59 }
 0x23b   : > { %v983_v46 = vpop.xlane.xlu1 %982 }
 0x23c   : > { %v1028_v56 = vmul.f32 0.0078125, %v983_v46  ;;  %v1091_v57 = vmul.f32 %v4008_v53, %v4008_v53 }
 0x23e   : > { %1141 = vadd.xlane.f32.xlu0 %v1091_v57  ;;  %v4013_v0 = vsub.f32 %v3866_v2, %v1028_v56 }
 0x23f   : > { %v985_v52 = vpop.xlane.xlu0 %984 }
 0x240   : > { %v1029_v61 = vmul.f32 0.0078125, %v985_v52  ;;  %v1092_v62 = vmul.f32 %v4013_v0, %v4013_v0 }
 0x242   : > { %1143 = vadd.xlane.f32.xlu1 %v1092_v62  ;;  %v4018_v3 = vsub.f32 %v3870_v8, %v1029_v61 }
 0x243   : > { %v987_v58 = vpop.xlane.xlu1 %986 }
 0x244   : > { %v1030_v5 = vmul.f32 0.0078125, %v987_v58  ;;  %v1093_v6 = vmul.f32 %v4018_v3, %v4018_v3 }
 0x246   : > { %1145 = vadd.xlane.f32.xlu0 %v1093_v6  ;;  %v4023_v39 = vsub.f32 %v3874_v13, %v1030_v5 }
 0x247   : > { %v989_v2 = vpop.xlane.xlu0 %988 }
 0x248   : > { %v1031_v1 = vmul.f32 0.0078125, %v989_v2  ;;  %v1094_v12 = vmul.f32 %v4023_v39, %v4023_v39 }
 0x24a   : > { %1147 = vadd.xlane.f32.xlu1 %v1094_v12  ;;  %v4028_v10 = vsub.f32 %v3878_v20, %v1031_v1 }
 0x24b   : > { %v991_v8 = vpop.xlane.xlu1 %990 }
 0x24c   : > { %v1032_v44 = vmul.f32 0.0078125, %v991_v8  ;;  %v1095_v16 = vmul.f32 %v4028_v10, %v4028_v10 }
 0x24e   : > { %1149 = vadd.xlane.f32.xlu0 %v1095_v16  ;;  %v4033_v15 = vsub.f32 %v3882_v28, %v1032_v44 }
 0x24f   : > { %v993_v13 = vpop.xlane.xlu0 %992 }
 0x250   : > { %v1033_v23 = vmul.f32 0.0078125, %v993_v13  ;;  %v1096_v25 = vmul.f32 %v4033_v15, %v4033_v15 }
 0x252   : > { %1151 = vadd.xlane.f32.xlu1 %v1096_v25  ;;  %v4038_v21 = vsub.f32 %v3886_v36, %v1033_v23 }
 0x253   : > { %v995_v20 = vpop.xlane.xlu1 %994 }
 0x254   : > { %v1034_v30 = vmul.f32 0.0078125, %v995_v20  ;;  %v1097_v31 = vmul.f32 %v4038_v21, %v4038_v21 }
 0x256   : > { %1153 = vadd.xlane.f32.xlu0 %v1097_v31  ;;  %v4043_v27 = vsub.f32 %v3890_v43, %v1034_v30 }
 0x257   : > { %v997_v28 = vpop.xlane.xlu0 %996 }
 0x258   : > { %v1035_v38 = vmul.f32 0.0078125, %v997_v28  ;;  %v1098_v54 = vmul.f32 %v4043_v27, %v4043_v27 }
 0x25a   : > { %1155 = vadd.xlane.f32.xlu1 %v1098_v54  ;;  %v4048_v33 = vsub.f32 %v3894_v51, %v1035_v38 }
 0x25b   : > { %v999_v36 = vpop.xlane.xlu1 %998 }
 0x25c   : > { %v1036_v19 = vmul.f32 0.0078125, %v999_v36  ;;  %v1099_v47 = vmul.f32 %v4048_v33, %v4048_v33 }
 0x25e   : > { %1157 = vadd.xlane.f32.xlu0 %v1099_v47  ;;  %v4053_v40 = vsub.f32 %v3898_v60, %v1036_v19 }
 0x25f   : > { %v1001_v43 = vpop.xlane.xlu0 %1000 }
 0x260   : > { %v1037_v59 = vmul.f32 0.0078125, %v1001_v43  ;;  %v1100_v48 = vmul.f32 %v4053_v40, %v4053_v40 }
 0x262   : > { %1159 = vadd.xlane.f32.xlu1 %v1100_v48  ;;  %v4058_v46 = vsub.f32 %v3902_v4, %v1037_v59 }
 0x263   : > { %v1003_v51 = vpop.xlane.xlu1 %1002 }
 0x264   : > { %v1038_v56 = vmul.f32 0.0078125, %v1003_v51  ;;  %v1101_v57 = vmul.f32 %v4058_v46, %v4058_v46 }
 0x266   : > { %1161 = vadd.xlane.f32.xlu0 %v1101_v57  ;;  %v4063_v52 = vsub.f32 %v3906_v11, %v1038_v56 }
 0x267   : > { %v1005_v60 = vpop.xlane.xlu0 %1004 }
 0x268   : > { %v1039_v61 = vmul.f32 0.0078125, %v1005_v60  ;;  %v1102_v62 = vmul.f32 %v4063_v52, %v4063_v52 }
 0x26a   : > { %1163 = vadd.xlane.f32.xlu1 %v1102_v62  ;;  %v4068_v58 = vsub.f32 %v3910_v18, %v1039_v61 }
 0x26b   : > { %v1007_v4 = vpop.xlane.xlu1 %1006 }
 0x26c   : > { %v1040_v5 = vmul.f32 0.0078125, %v1007_v4  ;;  %v1103_v6 = vmul.f32 %v4068_v58, %v4068_v58 }
 0x26e   : > { %1165 = vadd.xlane.f32.xlu0 %v1103_v6  ;;  %v4073_v2 = vsub.f32 %v3914_v26, %v1040_v5 }
 0x270   : > { %v1104_v11 = vmul.f32 %v4073_v2, %v4073_v2 }
 0x272   : > { %1167 = vadd.xlane.f32.xlu1 %v1104_v11 }
 0x27f   : > { %v1106_v1 = vpop.xlane.xlu0 %1105 }
 0x280   : > { %v1169_v12 = vmul.f32 0.0078125, %v1106_v1 }
 0x282   : > { %v1201_v8 = vadd.f32 1e-05, %v1169_v12 }
 0x283   : > { %v1108_v44 = vpop.xlane.xlu1 %1107 }
 0x284   : > { %3152 = vrsqrt.f32 %v1201_v8  ;;  %v1170_v18 = vmul.f32 0.0078125, %v1108_v44 }
 0x286   : > { %v1202_v16 = vadd.f32 1e-05, %v1170_v18 }
 0x287   : > { %v1110_v13 = vpop.xlane.xlu0 %1109 }
 0x288   : > { %3154 = vrsqrt.f32 %v1202_v16  ;;  %v1171_v23 = vmul.f32 0.0078125, %v1110_v13 }
 0x28a   : > { %v1203_v25 = vadd.f32 1e-05, %v1171_v23 }
 0x28b   : > { %v1112_v20 = vpop.xlane.xlu1 %1111 }
 0x28c   : > { %3156 = vrsqrt.f32 %v1203_v25  ;;  %v1172_v30 = vmul.f32 0.0078125, %v1112_v20 }
 0x28e   : > { %v1204_v26 = vadd.f32 1e-05, %v1172_v30 }
 0x28f   : > { %v1114_v31 = vpop.xlane.xlu0 %1113 }
 0x290   : > { %3158 = vrsqrt.f32 %v1204_v26  ;;  %v1173_v28 = vmul.f32 0.0078125, %v1114_v31 }
 0x291   : > { %v3153_v38 = vpop.eup %3152 }
 0x292   : > { %v1205_v54 = vadd.f32 1e-05, %v1173_v28  ;;  %v1265_v36 = vmul.f32 %v3153_v38, %v3918_v32 }
 0x293   : > { %v1116_v19 = vpop.xlane.xlu1 %1115 }
 0x294   : > { %3160 = vrsqrt.f32 %v1205_v54  ;;  %v1174_v47 = vmul.f32 0.0078125, %v1116_v19  ;;  %vm1297_vm0 = vcmp.ge.f32.partialorder %v1265_v36, 0.0  ;;  %v1329_v43 = vmul.f32 0.01, %v1265_v36 }
 0x295   : > { %v3155_v59 = vpop.eup %3154 }
 0x296   : > { %v1206_v48 = vadd.f32 1e-05, %v1174_v47  ;;  %v1361_v51 = vsel %vm1297_vm0, %v1265_v36, %v1329_v43  ;;  %v1266_v56 = vmul.f32 %v3155_v59, %v3923_v45 }
 0x297   : > { %2978 = vmatprep.mubr.f32.mxu1 %v1361_v51  ;;  %v1118_v57 = vpop.xlane.xlu0 %1117 }
 0x298   : > { %3162 = vrsqrt.f32 %v1206_v48  ;;  %v1175_v60 = vmul.f32 0.0078125, %v1118_v57  ;;  %vm1298_vm1 = vcmp.ge.f32.partialorder %v1266_v56, 0.0  ;;  %v1330_v61 = vmul.f32 0.01, %v1266_v56 }
 0x299   : > { %v3157_v62 = vpop.eup %3156 }
 0x29a   : > { %v1207_v4 = vadd.f32 1e-05, %v1175_v60  ;;  %v1362_v5 = vsel %vm1298_vm1, %v1266_v56, %v1330_v61  ;;  %v1267_v32 = vmul.f32 %v3157_v62, %v3928_v50 }
 0x29b   : > { %v1120_v6 = vpop.xlane.xlu1 %1119  ;;  %2979 = vmatmul.mubr.f32.vlgmr.msra.gmra.mxu1 %v1362_v5 }
 0x29c   : > { %3164 = vrsqrt.f32 %v1207_v4  ;;  %v1176_v11 = vmul.f32 0.0078125, %v1120_v6  ;;  %vm1299_vm2 = vcmp.ge.f32.partialorder %v1267_v32, 0.0  ;;  %v1331_v1 = vmul.f32 0.01, %v1267_v32 }
 0x29d   : > { %v3159_v12 = vpop.eup %3158 }
 0x29e   : > { %v1208_v8 = vadd.f32 1e-05, %v1176_v11  ;;  %v1363_v45 = vsel %vm1299_vm2, %v1267_v32, %v1331_v1  ;;  %v1268_v44 = vmul.f32 %v3159_v12, %v3933_v29 }
 0x29f   : > { %2981 = vmatprep.mubr.f32.mxu1 %v1363_v45  ;;  %v1122_v18 = vpop.xlane.xlu0 %1121 }
 0x2a0   : > { %3166 = vrsqrt.f32 %v1208_v8  ;;  %v1177_v16 = vmul.f32 0.0078125, %v1122_v18  ;;  %vm1300_vm3 = vcmp.ge.f32.partialorder %v1268_v44, 0.0  ;;  %v1332_v13 = vmul.f32 0.01, %v1268_v44 }
 0x2a1   : > { %v3161_v23 = vpop.eup %3160 }
 0x2a2   : > { %v1209_v25 = vadd.f32 1e-05, %v1177_v16  ;;  %v1364_v50 = vsel %vm1300_vm3, %v1268_v44, %v1332_v13  ;;  %v1269_v20 = vmul.f32 %v3161_v23, %v3938_v34 }
 0x2a3   : > { %v1124_v30 = vpop.xlane.xlu1 %1123  ;;  %2982 = vmatmul.mubr.f32.gmra.mxu1 %v1364_v50 }
 0x2a4   : > { %3168 = vrsqrt.f32 %v1209_v25  ;;  %v1178_v26 = vmul.f32 0.0078125, %v1124_v30  ;;  %vm1301_vm4 = vcmp.ge.f32.partialorder %v1269_v20, 0.0  ;;  %v1333_v31 = vmul.f32 0.01, %v1269_v20 }
 0x2a5   : > { %v3163_v28 = vpop.eup %3162 }
 0x2a6   : > { %v1210_v38 = vadd.f32 1e-05, %v1178_v26  ;;  %v1365_v29 = vsel %vm1301_vm4, %v1269_v20, %v1333_v31  ;;  %v1270_v54 = vmul.f32 %v3163_v28, %v3943_v9 }
 0x2a7   : > { %2984 = vmatprep.mubr.f32.mxu1 %v1365_v29  ;;  %v1126_v36 = vpop.xlane.xlu0 %1125 }
 0x2a8   : > { %3170 = vrsqrt.f32 %v1210_v38  ;;  %v1179_v19 = vmul.f32 0.0078125, %v1126_v36  ;;  %vm1302_vm5 = vcmp.ge.f32.partialorder %v1270_v54, 0.0  ;;  %v1334_v47 = vmul.f32 0.01, %v1270_v54 }
 0x2a9   : > { %v3165_v43 = vpop.eup %3164 }
 0x2aa   : > { %v1211_v59 = vadd.f32 1e-05, %v1179_v19  ;;  %v1366_v34 = vsel %vm1302_vm5, %v1270_v54, %v1334_v47  ;;  %v1271_v48 = vmul.f32 %v3165_v43, %v3948_v22 }
 0x2ab   : > { %v1128_v51 = vpop.xlane.xlu1 %1127  ;;  %2985 = vmatmul.mubr.f32.gmra.mxu1 %v1366_v34 }
 0x2ac   : > { %3172 = vrsqrt.f32 %v1211_v59  ;;  %v1180_v56 = vmul.f32 0.0078125, %v1128_v51  ;;  %vm1303_vm6 = vcmp.ge.f32.partialorder %v1271_v48, 0.0  ;;  %v1335_v57 = vmul.f32 0.01, %v1271_v48 }
 0x2ad   : > { %v3167_v60 = vpop.eup %3166 }
 0x2ae   : > { %v1212_v61 = vadd.f32 1e-05, %v1180_v56  ;;  %v1367_v9 = vsel %vm1303_vm6, %v1271_v48, %v1335_v57  ;;  %v1272_v62 = vmul.f32 %v3167_v60, %v3953_v35 }
 0x2af   : > { %2987 = vmatprep.mubr.f32.mxu1 %v1367_v9  ;;  %v1130_v4 = vpop.xlane.xlu0 %1129 }
 0x2b0   : > { %3174 = vrsqrt.f32 %v1212_v61  ;;  %v1181_v5 = vmul.f32 0.0078125, %v1130_v4  ;;  %vm1304_vm7 = vcmp.ge.f32.partialorder %v1272_v62, 0.0  ;;  %v1336_v32 = vmul.f32 0.01, %v1272_v62 }
 0x2b1   : > { %v3169_v6 = vpop.eup %3168 }
 0x2b2   : > { %v1213_v11 = vadd.f32 1e-05, %v1181_v5  ;;  %v1368_v22 = vsel %vm1304_vm7, %v1272_v62, %v1336_v32  ;;  %v1273_v1 = vmul.f32 %v3169_v6, %v3958_v42 }
 0x2b3   : > { %v1132_v12 = vpop.xlane.xlu1 %1131  ;;  %2988 = vmatmul.mubr.f32.gmra.mxu1 %v1368_v22 }
 0x2b4   : > { %3176 = vrsqrt.f32 %v1213_v11  ;;  %v1182_v8 = vmul.f32 0.0078125, %v1132_v12  ;;  %vm1305_vm8 = vcmp.ge.f32.partialorder %v1273_v1, 0.0  ;;  %v1337_v45 = vmul.f32 0.01, %v1273_v1 }
 0x2b5   : > { %v3171_v44 = vpop.eup %3170 }
 0x2b6   : > { %v1214_v18 = vadd.f32 1e-05, %v1182_v8  ;;  %v1369_v35 = vsel %vm1305_vm8, %v1273_v1, %v1337_v45  ;;  %v1274_v16 = vmul.f32 %v3171_v44, %v3963_v55 }
 0x2b7   : > { %2990 = vmatprep.mubr.f32.mxu1 %v1369_v35  ;;  %v1134_v13 = vpop.xlane.xlu0 %1133 }
 0x2b8   : > { %3178 = vrsqrt.f32 %v1214_v18  ;;  %v1183_v23 = vmul.f32 0.0078125, %v1134_v13  ;;  %vm1306_vm9 = vcmp.ge.f32.partialorder %v1274_v16, 0.0  ;;  %v1338_v25 = vmul.f32 0.01, %v1274_v16 }
 0x2b9   : > { %v3173_v50 = vpop.eup %3172 }
 0x2ba   : > { %v1215_v20 = vadd.f32 1e-05, %v1183_v23  ;;  %v1370_v42 = vsel %vm1306_vm9, %v1274_v16, %v1338_v25  ;;  %v1275_v30 = vmul.f32 %v3173_v50, %v3968_v63 }
 0x2bb   : > { %v1136_v26 = vpop.xlane.xlu1 %1135  ;;  %2991 = vmatmul.mubr.f32.gmra.mxu1 %v1370_v42 }
 0x2bc   : > { %3180 = vrsqrt.f32 %v1215_v20  ;;  %v1184_v31 = vmul.f32 0.0078125, %v1136_v26  ;;  %vm1307_vm10 = vcmp.ge.f32.partialorder %v1275_v30, 0.0  ;;  %v1339_v28 = vmul.f32 0.01, %v1275_v30 }
 0x2bd   : > { %v3175_v38 = vpop.eup %3174 }
 0x2be   : > { %v1216_v29 = vadd.f32 1e-05, %v1184_v31  ;;  %v1371_v55 = vsel %vm1307_vm10, %v1275_v30, %v1339_v28  ;;  %v1276_v54 = vmul.f32 %v3175_v38, %v3973_v7 }
 0x2bf   : > { %2993 = vmatprep.mubr.f32.mxu1 %v1371_v55  ;;  %v1138_v36 = vpop.xlane.xlu0 %1137 }
 0x2c0   : > { %3182 = vrsqrt.f32 %v1216_v29  ;;  %v1185_v19 = vmul.f32 0.0078125, %v1138_v36  ;;  %vm1308_vm11 = vcmp.ge.f32.partialorder %v1276_v54, 0.0  ;;  %v1340_v47 = vmul.f32 0.01, %v1276_v54 }
 0x2c1   : > { %v3177_v43 = vpop.eup %3176 }
 0x2c2   : > { %v1217_v59 = vadd.f32 1e-05, %v1185_v19  ;;  %v1372_v63 = vsel %vm1308_vm11, %v1276_v54, %v1340_v47  ;;  %v1277_v34 = vmul.f32 %v3177_v43, %v3978_v14 }
 0x2c3   : > { %v1140_v48 = vpop.xlane.xlu1 %1139  ;;  %2994 = vmatmul.mubr.f32.gmra.mxu1 %v1372_v63 }
 0x2c4   : > { %3184 = vrsqrt.f32 %v1217_v59  ;;  %v1186_v51 = vmul.f32 0.0078125, %v1140_v48  ;;  %vm1309_vm12 = vcmp.ge.f32.partialorder %v1277_v34, 0.0  ;;  %v1341_v56 = vmul.f32 0.01, %v1277_v34 }
 0x2c5   : > { %v3179_v57 = vpop.eup %3178 }
 0x2c6   : > { %v1218_v60 = vadd.f32 1e-05, %v1186_v51  ;;  %v1373_v7 = vsel %vm1309_vm12, %v1277_v34, %v1341_v56  ;;  %v1278_v61 = vmul.f32 %v3179_v57, %v3983_v17 }
 0x2c7   : > { %2996 = vmatprep.mubr.f32.mxu1 %v1373_v7  ;;  %v1142_v9 = vpop.xlane.xlu0 %1141 }
 0x2c8   : > { %3186 = vrsqrt.f32 %v1218_v60  ;;  %v1187_v62 = vmul.f32 0.0078125, %v1142_v9  ;;  %vm1310_vm13 = vcmp.ge.f32.partialorder %v1278_v61, 0.0  ;;  %v1342_v4 = vmul.f32 0.01, %v1278_v61 }
 0x2c9   : > { %v3181_v5 = vpop.eup %3180 }
 0x2ca   : > { %v1219_v32 = vadd.f32 1e-05, %v1187_v62  ;;  %v1374_v14 = vsel %vm1310_vm13, %v1278_v61, %v1342_v4  ;;  %v1279_v6 = vmul.f32 %v3181_v5, %v3988_v49 }
 0x2cb   : > { %v1144_v11 = vpop.xlane.xlu1 %1143  ;;  %2997 = vmatmul.mubr.f32.gmra.mxu1 %v1374_v14 }
 0x2cc   : > { %3188 = vrsqrt.f32 %v1219_v32  ;;  %v1188_v22 = vmul.f32 0.0078125, %v1144_v11  ;;  %vm1311_vm14 = vcmp.ge.f32.partialorder %v1279_v6, 0.0  ;;  %v1343_v1 = vmul.f32 0.01, %v1279_v6 }
 0x2cd   : > { %v3183_v12 = vpop.eup %3182 }
 0x2ce   : > { %v1220_v8 = vadd.f32 1e-05, %v1188_v22  ;;  %v1375_v17 = vsel %vm1311_vm14, %v1279_v6, %v1343_v1  ;;  %v1280_v45 = vmul.f32 %v3183_v12, %v3993_v37 }
 0x2cf   : > { %2999 = vmatprep.mubr.f32.mxu1 %v1375_v17  ;;  %v1146_v44 = vpop.xlane.xlu0 %1145 }
 0x2d0   : > { %3190 = vrsqrt.f32 %v1220_v8  ;;  %v1189_v18 = vmul.f32 0.0078125, %v1146_v44  ;;  %vm1312_vm15 = vcmp.ge.f32.partialorder %v1280_v45, 0.0  ;;  %v1344_v35 = vmul.f32 0.01, %v1280_v45 }
 0x2d1   : > { %v3185_v16 = vpop.eup %3184 }
 0x2d2   : > { %v1221_v13 = vadd.f32 1e-05, %v1189_v18  ;;  %v1376_v49 = vsel %vm1312_vm15, %v1280_v45, %v1344_v35  ;;  %v1281_v23 = vmul.f32 %v3185_v16, %v3998_v41 }
 0x2d3   : > { %v1148_v25 = vpop.xlane.xlu1 %1147  ;;  %3000 = vmatmul.mubr.f32.gmra.mxu1 %v1376_v49 }
 0x2d4   : > { %3192 = vrsqrt.f32 %v1221_v13  ;;  %v1190_v50 = vmul.f32 0.0078125, %v1148_v25  ;;  %vm1313_vm0 = vcmp.ge.f32.partialorder %v1281_v23, 0.0  ;;  %v1345_v20 = vmul.f32 0.01, %v1281_v23 }
 0x2d5   : > { %v3187_v42 = vpop.eup %3186 }
 0x2d6   : > { %v1222_v30 = vadd.f32 1e-05, %v1190_v50  ;;  %v1377_v37 = vsel %vm1313_vm0, %v1281_v23, %v1345_v20  ;;  %v1282_v26 = vmul.f32 %v3187_v42, %v4003_v24 }
 0x2d7   : > { %3002 = vmatprep.mubr.f32.mxu1 %v1377_v37  ;;  %v1150_v31 = vpop.xlane.xlu0 %1149 }
 0x2d8   : > { %3194 = vrsqrt.f32 %v1222_v30  ;;  %v1191_v28 = vmul.f32 0.0078125, %v1150_v31  ;;  %vm1314_vm1 = vcmp.ge.f32.partialorder %v1282_v26, 0.0  ;;  %v1346_v38 = vmul.f32 0.01, %v1282_v26 }
 0x2d9   : > { %v3189_v29 = vpop.eup %3188 }
 0x2da   : > { %v1223_v55 = vadd.f32 1e-05, %v1191_v28  ;;  %v1378_v41 = vsel %vm1314_vm1, %v1282_v26, %v1346_v38  ;;  %v1283_v54 = vmul.f32 %v3189_v29, %v4008_v53 }
 0x2db   : > { %v1152_v36 = vpop.xlane.xlu1 %1151  ;;  %3003 = vmatmul.mubr.f32.gmra.mxu1 %v1378_v41 }
 0x2dc   : > { %3196 = vrsqrt.f32 %v1223_v55  ;;  %v1192_v19 = vmul.f32 0.0078125, %v1152_v36  ;;  %vm1315_vm2 = vcmp.ge.f32.partialorder %v1283_v54, 0.0  ;;  %v1347_v47 = vmul.f32 0.01, %v1283_v54 }
 0x2dd   : > { %v3191_v43 = vpop.eup %3190 }
 0x2de   : > { %v1224_v59 = vadd.f32 1e-05, %v1192_v19  ;;  %v1379_v24 = vsel %vm1315_vm2, %v1283_v54, %v1347_v47  ;;  %v1284_v63 = vmul.f32 %v3191_v43, %v4013_v0 }
 0x2df   : > { %3005 = vmatprep.mubr.f32.mxu1 %v1379_v24  ;;  %v1154_v34 = vpop.xlane.xlu0 %1153 }
 0x2e0   : > { %3198 = vrsqrt.f32 %v1224_v59  ;;  %v1193_v48 = vmul.f32 0.0078125, %v1154_v34  ;;  %vm1316_vm3 = vcmp.ge.f32.partialorder %v1284_v63, 0.0  ;;  %v1348_v51 = vmul.f32 0.01, %v1284_v63 }
 0x2e1   : > { %v3193_v56 = vpop.eup %3192 }
 0x2e2   : > { %v1225_v57 = vadd.f32 1e-05, %v1193_v48  ;;  %v1380_v53 = vsel %vm1316_vm3, %v1284_v63, %v1348_v51  ;;  %v1285_v60 = vmul.f32 %v3193_v56, %v4018_v3 }
 0x2e3   : > { %v1156_v7 = vpop.xlane.xlu1 %1155  ;;  %3006 = vmatmul.mubr.f32.gmra.mxu1 %v1380_v53 }
 0x2e4   : > { %3200 = vrsqrt.f32 %v1225_v57  ;;  %v1194_v61 = vmul.f32 0.0078125, %v1156_v7  ;;  %vm1317_vm4 = vcmp.ge.f32.partialorder %v1285_v60, 0.0  ;;  %v1349_v9 = vmul.f32 0.01, %v1285_v60 }
 0x2e5   : > { %v3195_v62 = vpop.eup %3194 }
 0x2e6   : > { %v1226_v4 = vadd.f32 1e-05, %v1194_v61  ;;  %v1381_v0 = vsel %vm1317_vm4, %v1285_v60, %v1349_v9  ;;  %v1286_v5 = vmul.f32 %v3195_v62, %v4023_v39 }
 0x2e7   : > { %3008 = vmatprep.mubr.f32.mxu1 %v1381_v0  ;;  %v1158_v32 = vpop.xlane.xlu0 %1157 }
 0x2e8   : > { %3202 = vrsqrt.f32 %v1226_v4  ;;  %v1195_v14 = vmul.f32 0.0078125, %v1158_v32  ;;  %vm1318_vm5 = vcmp.ge.f32.partialorder %v1286_v5, 0.0  ;;  %v1350_v6 = vmul.f32 0.01, %v1286_v5 }
 0x2e9   : > { %v3197_v11 = vpop.eup %3196 }
 0x2ea   : > { %v1227_v22 = vadd.f32 1e-05, %v1195_v14  ;;  %v1382_v3 = vsel %vm1318_vm5, %v1286_v5, %v1350_v6  ;;  %v1287_v1 = vmul.f32 %v3197_v11, %v4028_v10 }
 0x2eb   : > { %v1160_v12 = vpop.xlane.xlu1 %1159  ;;  %3009 = vmatmul.mubr.f32.gmra.mxu1 %v1382_v3 }
 0x2ec   : > { %3204 = vrsqrt.f32 %v1227_v22  ;;  %v1196_v8 = vmul.f32 0.0078125, %v1160_v12  ;;  %vm1319_vm6 = vcmp.ge.f32.partialorder %v1287_v1, 0.0  ;;  %v1351_v17 = vmul.f32 0.01, %v1287_v1 }
 0x2ed   : > { %v3199_v45 = vpop.eup %3198 }
 0x2ee   : > { %v1228_v44 = vadd.f32 1e-05, %v1196_v8  ;;  %v1383_v39 = vsel %vm1319_vm6, %v1287_v1, %v1351_v17  ;;  %v1288_v18 = vmul.f32 %v3199_v45, %v4033_v15 }
 0x2ef   : > { %3011 = vmatprep.mubr.f32.mxu1 %v1383_v39  ;;  %v1162_v35 = vpop.xlane.xlu0 %1161 }
 0x2f0   : > { %3206 = vrsqrt.f32 %v1228_v44  ;;  %v1197_v16 = vmul.f32 0.0078125, %v1162_v35  ;;  %vm1320_vm7 = vcmp.ge.f32.partialorder %v1288_v18, 0.0  ;;  %v1352_v13 = vmul.f32 0.01, %v1288_v18 }
 0x2f1   : > { %v3201_v49 = vpop.eup %3200 }
 0x2f2   : > { %v1229_v23 = vadd.f32 1e-05, %v1197_v16  ;;  %v1384_v10 = vsel %vm1320_vm7, %v1288_v18, %v1352_v13  ;;  %v1289_v25 = vmul.f32 %v3201_v49, %v4038_v21 }
 0x2f3   : > { %v1164_v50 = vpop.xlane.xlu1 %1163  ;;  %3012 = vmatmul.mubr.f32.gmra.mxu1 %v1384_v10 }
 0x2f4   : > { %3208 = vrsqrt.f32 %v1229_v23  ;;  %v1198_v20 = vmul.f32 0.0078125, %v1164_v50  ;;  %vm1321_vm8 = vcmp.ge.f32.partialorder %v1289_v25, 0.0  ;;  %v1353_v42 = vmul.f32 0.01, %v1289_v25 }
 0x2f5   : > { %v3203_v30 = vpop.eup %3202 }
 0x2f6   : > { %v1230_v37 = vadd.f32 1e-05, %v1198_v20  ;;  %v1385_v15 = vsel %vm1321_vm8, %v1289_v25, %v1353_v42  ;;  %v1290_v26 = vmul.f32 %v3203_v30, %v4043_v27 }
 0x2f7   : > { %3014 = vmatprep.mubr.f32.mxu1 %v1385_v15  ;;  %v1166_v31 = vpop.xlane.xlu0 %1165 }
 0x2f8   : > { %3210 = vrsqrt.f32 %v1230_v37  ;;  %v1199_v28 = vmul.f32 0.0078125, %v1166_v31  ;;  %vm1322_vm9 = vcmp.ge.f32.partialorder %v1290_v26, 0.0  ;;  %v1354_v38 = vmul.f32 0.01, %v1290_v26 }
 0x2f9   : > { %v3205_v29 = vpop.eup %3204 }
 0x2fa   : > { %v1231_v55 = vadd.f32 1e-05, %v1199_v28  ;;  %v1386_v21 = vsel %vm1322_vm9, %v1290_v26, %v1354_v38  ;;  %v1291_v41 = vmul.f32 %v3205_v29, %v4048_v33 }
 0x2fb   : > { %v1168_v54 = vpop.xlane.xlu1 %1167  ;;  %3015 = vmatmul.mubr.f32.gmra.mxu1 %v1386_v21 }
 0x2fc   : > { %3212 = vrsqrt.f32 %v1231_v55  ;;  %v1200_v36 = vmul.f32 0.0078125, %v1168_v54  ;;  %vm1323_vm10 = vcmp.ge.f32.partialorder %v1291_v41, 0.0  ;;  %v1355_v19 = vmul.f32 0.01, %v1291_v41 }
 0x2fd   : > { %v3207_v47 = vpop.eup %3206 }
 0x2fe   : > { %v1232_v43 = vadd.f32 1e-05, %v1200_v36  ;;  %v1387_v27 = vsel %vm1323_vm10, %v1291_v41, %v1355_v19  ;;  %v1292_v59 = vmul.f32 %v3207_v47, %v4053_v40 }
 0x2ff   : > { %3017 = vmatprep.mubr.f32.mxu1 %v1387_v27 }
 0x300   : > { %3214 = vrsqrt.f32 %v1232_v43  ;;  %vm1324_vm11 = vcmp.ge.f32.partialorder %v1292_v59, 0.0  ;;  %v1356_v24 = vmul.f32 0.01, %v1292_v59 }
 0x301   : > { %v3209_v63 = vpop.eup %3208 }
 0x302   : > { %v1388_v34 = vsel %vm1324_vm11, %v1292_v59, %v1356_v24  ;;  %v1293_v48 = vmul.f32 %v3209_v63, %v4058_v46 }
 0x303   : > { %3018 = vmatmul.mubr.f32.gmra.mxu1 %v1388_v34 }
 0x304   : > { %vm1325_vm12 = vcmp.ge.f32.partialorder %v1293_v48, 0.0  ;;  %v1357_v33 = vmul.f32 0.01, %v1293_v48 }
 0x305   : > { %v3211_v51 = vpop.eup %3210 }
 0x306   : > { %v1389_v56 = vsel %vm1325_vm12, %v1293_v48, %v1357_v33  ;;  %v1294_v57 = vmul.f32 %v3211_v51, %v4063_v52  ;;  %v4112_v52 = vld [vmem:[%s4718_s4] ss:$0 sm:$0xff] }
 0x307   : > { %3020 = vmatprep.mubr.f32.mxu1 %v1389_v56 }
 0x308   : > { %vm1326_vm13 = vcmp.ge.f32.partialorder %v1294_v57, 0.0  ;;  %v1358_v53 = vmul.f32 0.01, %v1294_v57 }
 0x309   : > { %v3213_v60 = vpop.eup %3212 }
 0x30a   : > { %v1390_v40 = vsel %vm1326_vm13, %v1294_v57, %v1358_v53  ;;  %v1295_v7 = vmul.f32 %v3213_v60, %v4068_v58 }
 0x30b   : > { %3021 = vmatmul.mubr.f32.gmra.mxu1 %v1390_v40 }
 0x30c   : > { %vm1327_vm14 = vcmp.ge.f32.partialorder %v1295_v7, 0.0  ;;  %v1359_v61 = vmul.f32 0.01, %v1295_v7 }
 0x30d   : > { %v3215_v9 = vpop.eup %3214 }
 0x30e   : > { %v1391_v62 = vsel %vm1327_vm14, %v1295_v7, %v1359_v61  ;;  %v1296_v46 = vmul.f32 %v3215_v9, %v4073_v2 }
 0x30f   : > { %3023 = vmatprep.mubr.f32.mxu1 %v1391_v62 }
 0x310   : > { %vm1328_vm15 = vcmp.ge.f32.partialorder %v1296_v46, 0.0  ;;  %v1360_v4 = vmul.f32 0.01, %v1296_v46 }
 0x312   : > { %v1392_v0 = vsel %vm1328_vm15, %v1296_v46, %v1360_v4 }
 0x313   : > { %3024 = vmatmul.mubr.f32.gmra.mxu1 %v1392_v0 }
 0x35b   : > { %v2980_v5 = vpop.f32.mrf.mxu1 }
 0x35c   : > { %v4115_v58 = vadd.f32 %v2980_v5, %v4112_v52 }
 0x35d   : > { %v1482_v32 = vpop.f32.mrf.mxu1 }
 0x35e   : > { %v4118_v14 = vadd.f32 %v4112_v52, %v1482_v32  ;;  %1643 = vadd.xlane.f32.xlu1 %v4115_v58 }
 0x360   : > { %1641 = vadd.xlane.f32.xlu0 %v4118_v14 }
 0x363   : > { %v2983_v2 = vpop.f32.mrf.mxu1 }
 0x364   : > { %v4123_v6 = vadd.f32 %v2983_v2, %v4112_v52 }
 0x365   : > { %v1492_v11 = vpop.f32.mrf.mxu1 }
 0x366   : > { %v4126_v22 = vadd.f32 %v4112_v52, %v1492_v11  ;;  %1647 = vadd.xlane.f32.xlu1 %v4123_v6 }
 0x368   : > { %1645 = vadd.xlane.f32.xlu0 %v4126_v22 }
 0x36b   : > { %v2986_v3 = vpop.f32.mrf.mxu1 }
 0x36c   : > { %v4131_v1 = vadd.f32 %v2986_v3, %v4112_v52 }
 0x36d   : > { %v1502_v12 = vpop.f32.mrf.mxu1 }
 0x36e   : > { %v4134_v8 = vadd.f32 %v4112_v52, %v1502_v12  ;;  %1651 = vadd.xlane.f32.xlu1 %v4131_v1 }
 0x370   : > { %1649 = vadd.xlane.f32.xlu0 %v4134_v8 }
 0x373   : > { %v2989_v17 = vpop.f32.mrf.mxu1 }
 0x374   : > { %v4139_v45 = vadd.f32 %v2989_v17, %v4112_v52 }
 0x375   : > { %v1512_v44 = vpop.f32.mrf.mxu1 }
 0x376   : > { %v4142_v39 = vadd.f32 %v4112_v52, %v1512_v44  ;;  %1655 = vadd.xlane.f32.xlu1 %v4139_v45 }
 0x378   : > { %1653 = vadd.xlane.f32.xlu0 %v4142_v39 }
 0x37b   : > { %v2992_v18 = vpop.f32.mrf.mxu1 }
 0x37c   : > { %v4147_v35 = vadd.f32 %v2992_v18, %v4112_v52 }
 0x37d   : > { %v1522_v16 = vpop.f32.mrf.mxu1 }
 0x37e   : > { %v4150_v13 = vadd.f32 %v4112_v52, %v1522_v16  ;;  %1659 = vadd.xlane.f32.xlu1 %v4147_v35 }
 0x380   : > { %1657 = vadd.xlane.f32.xlu0 %v4150_v13 }
 0x383   : > { %v2995_v49 = vpop.f32.mrf.mxu1 }
 0x384   : > { %v4155_v23 = vadd.f32 %v2995_v49, %v4112_v52 }
 0x385   : > { %v1532_v10 = vpop.f32.mrf.mxu1 }
 0x386   : > { %v4158_v25 = vadd.f32 %v4112_v52, %v1532_v10  ;;  %1663 = vadd.xlane.f32.xlu1 %v4155_v23 }
 0x388   : > { %1661 = vadd.xlane.f32.xlu0 %v4158_v25 }
 0x38b   : > { %v2998_v50 = vpop.f32.mrf.mxu1 }
 0x38c   : > { %v4163_v20 = vadd.f32 %v2998_v50, %v4112_v52 }
 0x38d   : > { %v1542_v42 = vpop.f32.mrf.mxu1 }
 0x38e   : > { %v4166_v30 = vadd.f32 %v4112_v52, %v1542_v42  ;;  %1667 = vadd.xlane.f32.xlu1 %v4163_v20 }
 0x390   : > { %1665 = vadd.xlane.f32.xlu0 %v4166_v30 }
 0x393   : > { %v3001_v37 = vpop.f32.mrf.mxu1 }
 0x394   : > { %v4171_v15 = vadd.f32 %v3001_v37, %v4112_v52 }
 0x395   : > { %v1552_v26 = vpop.f32.mrf.mxu1 }
 0x396   : > { %v4174_v31 = vadd.f32 %v4112_v52, %v1552_v26  ;;  %1671 = vadd.xlane.f32.xlu1 %v4171_v15 }
 0x398   : > { %1669 = vadd.xlane.f32.xlu0 %v4174_v31 }
 0x39b   : > { %v3004_v28 = vpop.f32.mrf.mxu1 }
 0x39c   : > { %v4179_v38 = vadd.f32 %v3004_v28, %v4112_v52 }
 0x39d   : > { %v1562_v29 = vpop.f32.mrf.mxu1 }
 0x39e   : > { %v4182_v55 = vadd.f32 %v4112_v52, %v1562_v29  ;;  %1675 = vadd.xlane.f32.xlu1 %v4179_v38 }
 0x3a0   : > { %1673 = vadd.xlane.f32.xlu0 %v4182_v55 }
 0x3a3   : > { %v3007_v21 = vpop.f32.mrf.mxu1 }
 0x3a4   : > { %v4187_v41 = vadd.f32 %v3007_v21, %v4112_v52 }
 0x3a5   : > { %v1572_v54 = vpop.f32.mrf.mxu1 }
 0x3a6   : > { %v4190_v36 = vadd.f32 %v4112_v52, %v1572_v54  ;;  %1679 = vadd.xlane.f32.xlu1 %v4187_v41 }
 0x3a8   : > { %1677 = vadd.xlane.f32.xlu0 %v4190_v36 }
 0x3ab   : > { %v3010_v19 = vpop.f32.mrf.mxu1 }
 0x3ac   : > { %v4195_v47 = vadd.f32 %v3010_v19, %v4112_v52 }
 0x3ad   : > { %v1582_v43 = vpop.f32.mrf.mxu1 }
 0x3ae   : > { %v4198_v27 = vadd.f32 %v4112_v52, %v1582_v43  ;;  %1683 = vadd.xlane.f32.xlu1 %v4195_v47 }
 0x3b0   : > { %1681 = vadd.xlane.f32.xlu0 %v4198_v27 }
 0x3b3   : > { %v3013_v59 = vpop.f32.mrf.mxu1 }
 0x3b4   : > { %v4203_v24 = vadd.f32 %v3013_v59, %v4112_v52 }
 0x3b5   : > { %v1592_v63 = vpop.f32.mrf.mxu1 }
 0x3b6   : > { %v4206_v34 = vadd.f32 %v4112_v52, %v1592_v63  ;;  %1687 = vadd.xlane.f32.xlu1 %v4203_v24 }
 0x3b8   : > { %1685 = vadd.xlane.f32.xlu0 %v4206_v34 }
 0x3bb   : > { %v3016_v48 = vpop.f32.mrf.mxu1 }
 0x3bc   : > { %v4211_v33 = vadd.f32 %v3016_v48, %v4112_v52 }
 0x3bd   : > { %v1602_v51 = vpop.f32.mrf.mxu1 }
 0x3be   : > { %v4214_v56 = vadd.f32 %v4112_v52, %v1602_v51  ;;  %1691 = vadd.xlane.f32.xlu1 %v4211_v33 }
 0x3c0   : > { %1689 = vadd.xlane.f32.xlu0 %v4214_v56 }
 0x3c3   : > { %v3019_v57 = vpop.f32.mrf.mxu1 }
 0x3c4   : > { %v4219_v53 = vadd.f32 %v3019_v57, %v4112_v52 }
 0x3c5   : > { %v1612_v60 = vpop.f32.mrf.mxu1 }
 0x3c6   : > { %v4222_v40 = vadd.f32 %v4112_v52, %v1612_v60  ;;  %1695 = vadd.xlane.f32.xlu1 %v4219_v53 }
 0x3c8   : > { %1693 = vadd.xlane.f32.xlu0 %v4222_v40 }
 0x3cb   : > { %v3022_v7 = vpop.f32.mrf.mxu1 }
 0x3cc   : > { %v4227_v61 = vadd.f32 %v3022_v7, %v4112_v52 }
 0x3cd   : > { %v1622_v9 = vpop.f32.mrf.mxu1 }
 0x3ce   : > { %v4230_v62 = vadd.f32 %v4112_v52, %v1622_v9  ;;  %1699 = vadd.xlane.f32.xlu1 %v4227_v61 }
 0x3d0   : > { %1697 = vadd.xlane.f32.xlu0 %v4230_v62 }
 0x3d3   : > { %v3025_v46 = vpop.f32.mrf.mxu1 }
 0x3d4   : > { %v4235_v4 = vadd.f32 %v3025_v46, %v4112_v52 }
 0x3d5   : > { %v1632_v0 = vpop.f32.mrf.mxu1 }
 0x3d6   : > { %v4238_v5 = vadd.f32 %v4112_v52, %v1632_v0  ;;  %1703 = vadd.xlane.f32.xlu1 %v4235_v4 }
 0x3d8   : > { %1701 = vadd.xlane.f32.xlu0 %v4238_v5 }
 0x3e7   : > { %v1644_v32 = vpop.xlane.xlu1 %1643 }
 0x3e8   : > { %v1706_v2 = vmul.f32 0.0078125, %v1644_v32 }
 0x3e9   : > { %v1642_v11 = vpop.xlane.xlu0 %1641 }
 0x3ea   : > { %v4243_v3 = vsub.f32 %v4115_v58, %v1706_v2  ;;  %v1705_v12 = vmul.f32 0.0078125, %v1642_v11 }
 0x3ec   : > { %v4246_v17 = vsub.f32 %v4118_v14, %v1705_v12  ;;  %v1770_v44 = vmul.f32 %v4243_v3, %v4243_v3 }
 0x3ee   : > { %1803 = vadd.xlane.f32.xlu1 %v1770_v44  ;;  %v1769_v52 = vmul.f32 %v4246_v17, %v4246_v17 }
 0x3ef   : > { %v1648_v18 = vpop.xlane.xlu1 %1647 }
 0x3f0   : > { %v1708_v16 = vmul.f32 0.0078125, %v1648_v18  ;;  %1801 = vadd.xlane.f32.xlu0 %v1769_v52 }
 0x3f1   : > { %v1646_v49 = vpop.xlane.xlu0 %1645 }
 0x3f2   : > { %v4253_v10 = vsub.f32 %v4123_v6, %v1708_v16  ;;  %v1707_v58 = vmul.f32 0.0078125, %v1646_v49 }
 0x3f4   : > { %v4256_v50 = vsub.f32 %v4126_v22, %v1707_v58  ;;  %v1772_v14 = vmul.f32 %v4253_v10, %v4253_v10 }
 0x3f6   : > { %1807 = vadd.xlane.f32.xlu1 %v1772_v14  ;;  %v1771_v42 = vmul.f32 %v4256_v50, %v4256_v50 }
 0x3f7   : > { %v1652_v37 = vpop.xlane.xlu1 %1651 }
 0x3f8   : > { %v1710_v26 = vmul.f32 0.0078125, %v1652_v37  ;;  %1805 = vadd.xlane.f32.xlu0 %v1771_v42 }
 0x3f9   : > { %v1650_v28 = vpop.xlane.xlu0 %1649 }
 0x3fa   : > { %v4263_v29 = vsub.f32 %v4131_v1, %v1710_v26  ;;  %v1709_v6 = vmul.f32 0.0078125, %v1650_v28 }
 0x3fc   : > { %v4266_v21 = vsub.f32 %v4134_v8, %v1709_v6  ;;  %v1774_v22 = vmul.f32 %v4263_v29, %v4263_v29 }
 0x3fe   : > { %1811 = vadd.xlane.f32.xlu1 %v1774_v22  ;;  %v1773_v54 = vmul.f32 %v4266_v21, %v4266_v21 }
 0x3ff   : > { %v1656_v19 = vpop.xlane.xlu1 %1655 }
 0x400   : > { %v1712_v43 = vmul.f32 0.0078125, %v1656_v19  ;;  %1809 = vadd.xlane.f32.xlu0 %v1773_v54 }
 0x401   : > { %v1654_v59 = vpop.xlane.xlu0 %1653 }
 0x402   : > { %v4273_v63 = vsub.f32 %v4139_v45, %v1712_v43  ;;  %v1711_v1 = vmul.f32 0.0078125, %v1654_v59 }
 0x404   : > { %v4276_v48 = vsub.f32 %v4142_v39, %v1711_v1  ;;  %v1776_v8 = vmul.f32 %v4273_v63, %v4273_v63 }
 0x406   : > { %1815 = vadd.xlane.f32.xlu1 %v1776_v8  ;;  %v1775_v51 = vmul.f32 %v4276_v48, %v4276_v48 }
 0x407   : > { %v1660_v57 = vpop.xlane.xlu1 %1659 }
 0x408   : > { %v1714_v60 = vmul.f32 0.0078125, %v1660_v57  ;;  %1813 = vadd.xlane.f32.xlu0 %v1775_v51 }
 0x409   : > { %v1658_v7 = vpop.xlane.xlu0 %1657 }
 0x40a   : > { %v4283_v9 = vsub.f32 %v4147_v35, %v1714_v60  ;;  %v1713_v45 = vmul.f32 0.0078125, %v1658_v7 }
 0x40c   : > { %v4286_v46 = vsub.f32 %v4150_v13, %v1713_v45  ;;  %v1778_v39 = vmul.f32 %v4283_v9, %v4283_v9 }
 0x40e   : > { %1819 = vadd.xlane.f32.xlu1 %v1778_v39  ;;  %v1777_v0 = vmul.f32 %v4286_v46, %v4286_v46 }
 0x40f   : > { %v1664_v32 = vpop.xlane.xlu1 %1663 }
 0x410   : > { %v1716_v2 = vmul.f32 0.0078125, %v1664_v32  ;;  %1817 = vadd.xlane.f32.xlu0 %v1777_v0 }
 0x411   : > { %v1662_v11 = vpop.xlane.xlu0 %1661 }
 0x412   : > { %v4293_v12 = vsub.f32 %v4155_v23, %v1716_v2  ;;  %v1715_v35 = vmul.f32 0.0078125, %v1662_v11 }
 0x414   : > { %v4296_v44 = vsub.f32 %v4158_v25, %v1715_v35  ;;  %v1780_v13 = vmul.f32 %v4293_v12, %v4293_v12 }
 0x416   : > { %1823 = vadd.xlane.f32.xlu1 %v1780_v13  ;;  %v1779_v52 = vmul.f32 %v4296_v44, %v4296_v44 }
 0x417   : > { %v1668_v18 = vpop.xlane.xlu1 %1667 }
 0x418   : > { %v1718_v16 = vmul.f32 0.0078125, %v1668_v18  ;;  %1821 = vadd.xlane.f32.xlu0 %v1779_v52 }
 0x419   : > { %v1666_v49 = vpop.xlane.xlu0 %1665 }
 0x41a   : > { %v4303_v58 = vsub.f32 %v4163_v20, %v1718_v16  ;;  %v1717_v23 = vmul.f32 0.0078125, %v1666_v49 }
 0x41c   : > { %v4306_v14 = vsub.f32 %v4166_v30, %v1717_v23  ;;  %v1782_v25 = vmul.f32 %v4303_v58, %v4303_v58 }
 0x41e   : > { %1827 = vadd.xlane.f32.xlu1 %v1782_v25  ;;  %v1781_v42 = vmul.f32 %v4306_v14, %v4306_v14 }
 0x41f   : > { %v1672_v37 = vpop.xlane.xlu1 %1671 }
 0x420   : > { %v1720_v26 = vmul.f32 0.0078125, %v1672_v37  ;;  %1825 = vadd.xlane.f32.xlu0 %v1781_v42 }
 0x421   : > { %v1670_v28 = vpop.xlane.xlu0 %1669 }
 0x422   : > { %v4313_v6 = vsub.f32 %v4171_v15, %v1720_v26  ;;  %v1719_v20 = vmul.f32 0.0078125, %v1670_v28 }
 0x424   : > { %v4316_v22 = vsub.f32 %v4174_v31, %v1719_v20  ;;  %v1784_v30 = vmul.f32 %v4313_v6, %v4313_v6 }
 0x426   : > { %1831 = vadd.xlane.f32.xlu1 %v1784_v30  ;;  %v1783_v54 = vmul.f32 %v4316_v22, %v4316_v22 }
 0x427   : > { %v1676_v19 = vpop.xlane.xlu1 %1675 }
 0x428   : > { %v1722_v43 = vmul.f32 0.0078125, %v1676_v19  ;;  %1829 = vadd.xlane.f32.xlu0 %v1783_v54 }
 0x429   : > { %v1674_v59 = vpop.xlane.xlu0 %1673 }
 0x42a   : > { %v4323_v1 = vsub.f32 %v4179_v38, %v1722_v43  ;;  %v1721_v15 = vmul.f32 0.0078125, %v1674_v59 }
 0x42c   : > { %v4326_v8 = vsub.f32 %v4182_v55, %v1721_v15  ;;  %v1786_v31 = vmul.f32 %v4323_v1, %v4323_v1 }
 0x42e   : > { %1835 = vadd.xlane.f32.xlu1 %v1786_v31  ;;  %v1785_v51 = vmul.f32 %v4326_v8, %v4326_v8 }
 0x42f   : > { %v1680_v57 = vpop.xlane.xlu1 %1679 }
 0x430   : > { %v1724_v60 = vmul.f32 0.0078125, %v1680_v57  ;;  %1833 = vadd.xlane.f32.xlu0 %v1785_v51 }
 0x431   : > { %v1678_v7 = vpop.xlane.xlu0 %1677 }
 0x432   : > { %v4333_v45 = vsub.f32 %v4187_v41, %v1724_v60  ;;  %v1723_v38 = vmul.f32 0.0078125, %v1678_v7 }
 0x434   : > { %v4336_v39 = vsub.f32 %v4190_v36, %v1723_v38  ;;  %v1788_v55 = vmul.f32 %v4333_v45, %v4333_v45 }
 0x436   : > { %1839 = vadd.xlane.f32.xlu1 %v1788_v55  ;;  %v1787_v0 = vmul.f32 %v4336_v39, %v4336_v39 }
 0x437   : > { %v1684_v32 = vpop.xlane.xlu1 %1683 }
 0x438   : > { %v1726_v2 = vmul.f32 0.0078125, %v1684_v32  ;;  %1837 = vadd.xlane.f32.xlu0 %v1787_v0 }
 0x439   : > { %v1682_v11 = vpop.xlane.xlu0 %1681 }
 0x43a   : > { %v4343_v35 = vsub.f32 %v4195_v47, %v1726_v2  ;;  %v1725_v41 = vmul.f32 0.0078125, %v1682_v11 }
 0x43c   : > { %v4346_v13 = vsub.f32 %v4198_v27, %v1725_v41  ;;  %v1790_v36 = vmul.f32 %v4343_v35, %v4343_v35 }
 0x43e   : > { %1843 = vadd.xlane.f32.xlu1 %v1790_v36  ;;  %v1789_v52 = vmul.f32 %v4346_v13, %v4346_v13 }
 0x43f   : > { %v1688_v18 = vpop.xlane.xlu1 %1687 }
 0x440   : > { %v1728_v16 = vmul.f32 0.0078125, %v1688_v18  ;;  %1841 = vadd.xlane.f32.xlu0 %v1789_v52 }
 0x441   : > { %v1686_v49 = vpop.xlane.xlu0 %1685 }
 0x442   : > { %v4353_v23 = vsub.f32 %v4203_v24, %v1728_v16  ;;  %v1727_v47 = vmul.f32 0.0078125, %v1686_v49 }
 0x444   : > { %v4356_v25 = vsub.f32 %v4206_v34, %v1727_v47  ;;  %v1792_v27 = vmul.f32 %v4353_v23, %v4353_v23 }
 0x446   : > { %1847 = vadd.xlane.f32.xlu1 %v1792_v27  ;;  %v1791_v42 = vmul.f32 %v4356_v25, %v4356_v25 }
 0x447   : > { %v1692_v37 = vpop.xlane.xlu1 %1691 }
 0x448   : > { %v1730_v26 = vmul.f32 0.0078125, %v1692_v37  ;;  %1845 = vadd.xlane.f32.xlu0 %v1791_v42 }
 0x449   : > { %v1690_v28 = vpop.xlane.xlu0 %1689 }
 0x44a   : > { %v4363_v20 = vsub.f32 %v4211_v33, %v1730_v26  ;;  %v1729_v24 = vmul.f32 0.0078125, %v1690_v28 }
 0x44c   : > { %v4366_v30 = vsub.f32 %v4214_v56, %v1729_v24  ;;  %v1794_v34 = vmul.f32 %v4363_v20, %v4363_v20 }
 0x44e   : > { %1851 = vadd.xlane.f32.xlu1 %v1794_v34  ;;  %v1793_v54 = vmul.f32 %v4366_v30, %v4366_v30 }
 0x44f   : > { %v1696_v19 = vpop.xlane.xlu1 %1695 }
 0x450   : > { %v1732_v43 = vmul.f32 0.0078125, %v1696_v19  ;;  %1849 = vadd.xlane.f32.xlu0 %v1793_v54 }
 0x451   : > { %v1694_v59 = vpop.xlane.xlu0 %1693 }
 0x452   : > { %v4373_v15 = vsub.f32 %v4219_v53, %v1732_v43  ;;  %v1731_v33 = vmul.f32 0.0078125, %v1694_v59 }
 0x454   : > { %v4376_v31 = vsub.f32 %v4222_v40, %v1731_v33  ;;  %v1796_v56 = vmul.f32 %v4373_v15, %v4373_v15 }
 0x456   : > { %1855 = vadd.xlane.f32.xlu1 %v1796_v56  ;;  %v1795_v51 = vmul.f32 %v4376_v31, %v4376_v31 }
 0x457   : > { %v1700_v57 = vpop.xlane.xlu1 %1699 }
 0x458   : > { %v1734_v60 = vmul.f32 0.0078125, %v1700_v57  ;;  %1853 = vadd.xlane.f32.xlu0 %v1795_v51  ;;  %v4406_v57 = vld [vmem:[%s4719_s5] ss:$0 sm:$0xff] }
 0x459   : > { %v1698_v7 = vpop.xlane.xlu0 %1697 }
 0x45a   : > { %v4383_v38 = vsub.f32 %v4227_v61, %v1734_v60  ;;  %v1733_v53 = vmul.f32 0.0078125, %v1698_v7 }
 0x45c   : > { %v4386_v55 = vsub.f32 %v4230_v62, %v1733_v53  ;;  %v1798_v40 = vmul.f32 %v4383_v38, %v4383_v38 }
 0x45e   : > { %1859 = vadd.xlane.f32.xlu1 %v1798_v40  ;;  %v1797_v0 = vmul.f32 %v4386_v55, %v4386_v55 }
 0x45f   : > { %v1704_v32 = vpop.xlane.xlu1 %1703 }
 0x460   : > { %v1736_v2 = vmul.f32 0.0078125, %v1704_v32  ;;  %1857 = vadd.xlane.f32.xlu0 %v1797_v0 }
 0x461   : > { %v1702_v11 = vpop.xlane.xlu0 %1701 }
 0x462   : > { %v4393_v41 = vsub.f32 %v4235_v4, %v1736_v2  ;;  %v1735_v61 = vmul.f32 0.0078125, %v1702_v11 }
 0x464   : > { %v4396_v36 = vsub.f32 %v4238_v5, %v1735_v61  ;;  %v1800_v62 = vmul.f32 %v4393_v41, %v4393_v41 }
 0x466   : > { %1863 = vadd.xlane.f32.xlu1 %v1800_v62  ;;  %v1799_v52 = vmul.f32 %v4396_v36, %v4396_v36 }
 0x468   : > { %1861 = vadd.xlane.f32.xlu0 %v1799_v52 }
 0x477   : > { %v1804_v18 = vpop.xlane.xlu1 %1803 }
 0x478   : > { %v1866_v16 = vmul.f32 0.0078125, %v1804_v18 }
 0x479   : > { %v1802_v49 = vpop.xlane.xlu0 %1801 }
 0x47a   : > { %v1898_v47 = vadd.f32 1e-05, %v1866_v16  ;;  %v1865_v27 = vmul.f32 0.0078125, %v1802_v49 }
 0x47c   : > { %3216 = vrsqrt.f32 %v1898_v47  ;;  %v1897_v4 = vadd.f32 1e-05, %v1865_v27 }
 0x47e   : > { %3218 = vrsqrt.f32 %v1897_v4 }
 0x47f   : > { %v1808_v42 = vpop.xlane.xlu1 %1807 }
 0x480   : > { %v1868_v37 = vmul.f32 0.0078125, %v1808_v42 }
 0x481   : > { %v1806_v5 = vpop.xlane.xlu0 %1805 }
 0x482   : > { %v1900_v26 = vadd.f32 1e-05, %v1868_v37  ;;  %v1867_v28 = vmul.f32 0.0078125, %v1806_v5 }
 0x484   : > { %3220 = vrsqrt.f32 %v1900_v26  ;;  %v1899_v24 = vadd.f32 1e-05, %v1867_v28 }
 0x486   : > { %3222 = vrsqrt.f32 %v1899_v24 }
 0x487   : > { %v1812_v34 = vpop.xlane.xlu1 %1811 }
 0x488   : > { %v1870_v54 = vmul.f32 0.0078125, %v1812_v34 }
 0x489   : > { %v3217_v19 = vpop.eup %3216  ;;  %v1810_v43 = vpop.xlane.xlu0 %1809 }
 0x48a   : > { %v1902_v59 = vadd.f32 1e-05, %v1870_v54  ;;  %v1869_v33 = vmul.f32 0.0078125, %v1810_v43  ;;  %v1962_v56 = vmul.f32 %v3217_v19, %v4243_v3 }
 0x48b   : > { %v3219_v51 = vpop.eup %3218 }
 0x48c   : > { %3224 = vrsqrt.f32 %v1902_v59  ;;  %v1901_v60 = vadd.f32 1e-05, %v1869_v33  ;;  %vm1994_vm0 = vcmp.ge.f32.partialorder %v1962_v56, 0.0  ;;  %v2026_v7 = vmul.f32 0.01, %v1962_v56 }
 0x48d   : > { %v1961_v53 = vmul.f32 %v3219_v51, %v4246_v17 }
 0x48e   : > { %3226 = vrsqrt.f32 %v1901_v60  ;;  %v2058_v40 = vsel %vm1994_vm0, %v1962_v56, %v2026_v7 }
 0x48f   : > { %v1816_v0 = vpop.xlane.xlu1 %1815  ;;  %v2097_v32 = vmul.f32 %v4406_v57, %v2058_v40  ;;  %vm1993_vm1 = vcmp.ge.f32.partialorder %v1961_v53, 0.0  ;;  %v2025_v2 = vmul.f32 0.01, %v1961_v53 }
 0x490   : > { %v1872_v3 = vmul.f32 0.0078125, %v1816_v0 }
 0x491   : > { %v3221_v11 = vpop.eup %3220  ;;  %2130 = vadd.xlane.f32.xlu1 %v2097_v32  ;;  %v1814_v61 = vpop.xlane.xlu0 %1813  ;;  %v2057_v62 = vsel %vm1993_vm1, %v1961_v53, %v2025_v2 }
 0x492   : > { %v1904_v52 = vadd.f32 1e-05, %v1872_v3  ;;  %v1871_v18 = vmul.f32 0.0078125, %v1814_v61  ;;  %v2096_v16 = vmul.f32 %v4406_v57, %v2057_v62  ;;  %v1964_v49 = vmul.f32 %v3221_v11, %v4253_v10 }
 0x493   : > { %v3223_v47 = vpop.eup %3222 }
 0x494   : > { %3228 = vrsqrt.f32 %v1904_v52  ;;  %v1903_v17 = vadd.f32 1e-05, %v1871_v18  ;;  %2128 = vadd.xlane.f32.xlu0 %v2096_v16  ;;  %vm1996_vm2 = vcmp.ge.f32.partialorder %v1964_v49, 0.0  ;;  %v2028_v27 = vmul.f32 0.01, %v1964_v49 }
 0x495   : > { %v1963_v4 = vmul.f32 %v3223_v47, %v4256_v50 }
 0x496   : > { %3230 = vrsqrt.f32 %v1903_v17  ;;  %v2060_v42 = vsel %vm1996_vm2, %v1964_v49, %v2028_v27 }
 0x497   : > { %v1820_v37 = vpop.xlane.xlu1 %1819  ;;  %v2099_v5 = vmul.f32 %v4406_v57, %v2060_v42  ;;  %vm1995_vm3 = vcmp.ge.f32.partialorder %v1963_v4, 0.0  ;;  %v2027_v26 = vmul.f32 0.01, %v1963_v4 }
 0x498   : > { %v1874_v28 = vmul.f32 0.0078125, %v1820_v37 }
 0x499   : > { %v3225_v24 = vpop.eup %3224  ;;  %2134 = vadd.xlane.f32.xlu1 %v2099_v5  ;;  %v1818_v34 = vpop.xlane.xlu0 %1817  ;;  %v2059_v10 = vsel %vm1995_vm3, %v1963_v4, %v2027_v26 }
 0x49a   : > { %v1906_v54 = vadd.f32 1e-05, %v1874_v28  ;;  %v1873_v19 = vmul.f32 0.0078125, %v1818_v34  ;;  %v2098_v43 = vmul.f32 %v4406_v57, %v2059_v10  ;;  %v1966_v59 = vmul.f32 %v3225_v24, %v4263_v29 }
 0x49b   : > { %v3227_v33 = vpop.eup %3226 }
 0x49c   : > { %3232 = vrsqrt.f32 %v1906_v54  ;;  %v1905_v50 = vadd.f32 1e-05, %v1873_v19  ;;  %2132 = vadd.xlane.f32.xlu0 %v2098_v43  ;;  %vm1998_vm4 = vcmp.ge.f32.partialorder %v1966_v59, 0.0  ;;  %v2030_v56 = vmul.f32 0.01, %v1966_v59 }
 0x49d   : > { %v1965_v51 = vmul.f32 %v3227_v33, %v4266_v21 }
 0x49e   : > { %3234 = vrsqrt.f32 %v1905_v50  ;;  %v2062_v60 = vsel %vm1998_vm4, %v1966_v59, %v2030_v56 }
 0x49f   : > { %v1824_v7 = vpop.xlane.xlu1 %1823  ;;  %v2101_v53 = vmul.f32 %v4406_v57, %v2062_v60  ;;  %vm1997_vm5 = vcmp.ge.f32.partialorder %v1965_v51, 0.0  ;;  %v2029_v40 = vmul.f32 0.01, %v1965_v51 }
 0x4a0   : > { %v1876_v0 = vmul.f32 0.0078125, %v1824_v7 }
 0x4a1   : > { %v3229_v32 = vpop.eup %3228  ;;  %2138 = vadd.xlane.f32.xlu1 %v2101_v53  ;;  %v1822_v2 = vpop.xlane.xlu0 %1821  ;;  %v2061_v29 = vsel %vm1997_vm5, %v1965_v51, %v2029_v40 }
 0x4a2   : > { %v1908_v3 = vadd.f32 1e-05, %v1876_v0  ;;  %v1875_v11 = vmul.f32 0.0078125, %v1822_v2  ;;  %v2100_v61 = vmul.f32 %v4406_v57, %v2061_v29  ;;  %v1968_v62 = vmul.f32 %v3229_v32, %v4273_v63 }
 0x4a3   : > { %v3231_v52 = vpop.eup %3230 }
 0x4a4   : > { %3236 = vrsqrt.f32 %v1908_v3  ;;  %v1907_v21 = vadd.f32 1e-05, %v1875_v11  ;;  %2136 = vadd.xlane.f32.xlu0 %v2100_v61  ;;  %vm2000_vm6 = vcmp.ge.f32.partialorder %v1968_v62, 0.0  ;;  %v2032_v18 = vmul.f32 0.01, %v1968_v62 }
 0x4a5   : > { %v1967_v16 = vmul.f32 %v3231_v52, %v4276_v48 }
 0x4a6   : > { %3238 = vrsqrt.f32 %v1907_v21  ;;  %v2064_v49 = vsel %vm2000_vm6, %v1968_v62, %v2032_v18 }
 0x4a7   : > { %v1828_v47 = vpop.xlane.xlu1 %1827  ;;  %v2103_v17 = vmul.f32 %v4406_v57, %v2064_v49  ;;  %vm1999_vm7 = vcmp.ge.f32.partialorder %v1967_v16, 0.0  ;;  %v2031_v27 = vmul.f32 0.01, %v1967_v16 }
 0x4a8   : > { %v1878_v4 = vmul.f32 0.0078125, %v1828_v47 }
 0x4a9   : > { %v3233_v42 = vpop.eup %3232  ;;  %2142 = vadd.xlane.f32.xlu1 %v2103_v17  ;;  %v1826_v37 = vpop.xlane.xlu0 %1825  ;;  %v2063_v63 = vsel %vm1999_vm7, %v1967_v16, %v2031_v27 }
 0x4aa   : > { %v1910_v5 = vadd.f32 1e-05, %v1878_v4  ;;  %v1877_v26 = vmul.f32 0.0078125, %v1826_v37  ;;  %v2102_v28 = vmul.f32 %v4406_v57, %v2063_v63  ;;  %v1970_v24 = vmul.f32 %v3233_v42, %v4283_v9 }
 0x4ab   : > { %v3235_v34 = vpop.eup %3234 }
 0x4ac   : > { %3240 = vrsqrt.f32 %v1910_v5  ;;  %v1909_v48 = vadd.f32 1e-05, %v1877_v26  ;;  %2140 = vadd.xlane.f32.xlu0 %v2102_v28  ;;  %vm2002_vm8 = vcmp.ge.f32.partialorder %v1970_v24, 0.0  ;;  %v2034_v10 = vmul.f32 0.01, %v1970_v24 }
 0x4ad   : > { %v1969_v54 = vmul.f32 %v3235_v34, %v4286_v46 }
 0x4ae   : > { %3242 = vrsqrt.f32 %v1909_v48  ;;  %v2066_v19 = vsel %vm2002_vm8, %v1970_v24, %v2034_v10 }
 0x4af   : > { %v1832_v43 = vpop.xlane.xlu1 %1831  ;;  %v2105_v59 = vmul.f32 %v4406_v57, %v2066_v19  ;;  %vm2001_vm9 = vcmp.ge.f32.partialorder %v1969_v54, 0.0  ;;  %v2033_v33 = vmul.f32 0.01, %v1969_v54 }
 0x4b0   : > { %v1880_v50 = vmul.f32 0.0078125, %v1832_v43 }
 0x4b1   : > { %v3237_v56 = vpop.eup %3236  ;;  %2146 = vadd.xlane.f32.xlu1 %v2105_v59  ;;  %v1830_v51 = vpop.xlane.xlu0 %1829  ;;  %v2065_v9 = vsel %vm2001_vm9, %v1969_v54, %v2033_v33 }
 0x4b2   : > { %v1912_v60 = vadd.f32 1e-05, %v1880_v50  ;;  %v1879_v7 = vmul.f32 0.0078125, %v1830_v51  ;;  %v2104_v53 = vmul.f32 %v4406_v57, %v2065_v9  ;;  %v1972_v40 = vmul.f32 %v3237_v56, %v4293_v12 }
 0x4b3   : > { %v3239_v0 = vpop.eup %3238 }
 0x4b4   : > { %3244 = vrsqrt.f32 %v1912_v60  ;;  %v1911_v46 = vadd.f32 1e-05, %v1879_v7  ;;  %2144 = vadd.xlane.f32.xlu0 %v2104_v53  ;;  %vm2004_vm10 = vcmp.ge.f32.partialorder %v1972_v40, 0.0  ;;  %v2036_v32 = vmul.f32 0.01, %v1972_v40 }
 0x4b5   : > { %v1971_v2 = vmul.f32 %v3239_v0, %v4296_v44 }
 0x4b6   : > { %3246 = vrsqrt.f32 %v1911_v46  ;;  %v2068_v29 = vsel %vm2004_vm10, %v1972_v40, %v2036_v32 }
 0x4b7   : > { %v1836_v3 = vpop.xlane.xlu1 %1835  ;;  %v2107_v11 = vmul.f32 %v4406_v57, %v2068_v29  ;;  %vm2003_vm11 = vcmp.ge.f32.partialorder %v1971_v2, 0.0  ;;  %v2035_v61 = vmul.f32 0.01, %v1971_v2 }
 0x4b8   : > { %v1882_v62 = vmul.f32 0.0078125, %v1836_v3 }
 0x4b9   : > { %v3241_v52 = vpop.eup %3240  ;;  %2150 = vadd.xlane.f32.xlu1 %v2107_v11  ;;  %v1834_v21 = vpop.xlane.xlu0 %1833  ;;  %v2067_v12 = vsel %vm2003_vm11, %v1971_v2, %v2035_v61 }
 0x4ba   : > { %v1914_v18 = vadd.f32 1e-05, %v1882_v62  ;;  %v1881_v16 = vmul.f32 0.0078125, %v1834_v21  ;;  %v2106_v49 = vmul.f32 %v4406_v57, %v2067_v12  ;;  %v1974_v47 = vmul.f32 %v3241_v52, %v4303_v58 }
 0x4bb   : > { %v3243_v17 = vpop.eup %3242 }
 0x4bc   : > { %3248 = vrsqrt.f32 %v1914_v18  ;;  %v1913_v44 = vadd.f32 1e-05, %v1881_v16  ;;  %2148 = vadd.xlane.f32.xlu0 %v2106_v49  ;;  %vm2006_vm12 = vcmp.ge.f32.partialorder %v1974_v47, 0.0  ;;  %v2038_v27 = vmul.f32 0.01, %v1974_v47 }
 0x4bd   : > { %v1973_v4 = vmul.f32 %v3243_v17, %v4306_v14 }
 0x4be   : > { %3250 = vrsqrt.f32 %v1913_v44  ;;  %v2070_v42 = vsel %vm2006_vm12, %v1974_v47, %v2038_v27 }
 0x4bf   : > { %v1840_v37 = vpop.xlane.xlu1 %1839  ;;  %v2109_v63 = vmul.f32 %v4406_v57, %v2070_v42  ;;  %vm2005_vm13 = vcmp.ge.f32.partialorder %v1973_v4, 0.0  ;;  %v2037_v5 = vmul.f32 0.01, %v1973_v4 }
 0x4c0   : > { %v1884_v26 = vmul.f32 0.0078125, %v1840_v37 }
 0x4c1   : > { %v3245_v28 = vpop.eup %3244  ;;  %2154 = vadd.xlane.f32.xlu1 %v2109_v63  ;;  %v1838_v24 = vpop.xlane.xlu0 %1837  ;;  %v2069_v58 = vsel %vm2005_vm13, %v1973_v4, %v2037_v5 }
 0x4c2   : > { %v1916_v34 = vadd.f32 1e-05, %v1884_v26  ;;  %v1883_v48 = vmul.f32 0.0078125, %v1838_v24  ;;  %v2108_v10 = vmul.f32 %v4406_v57, %v2069_v58  ;;  %v1976_v54 = vmul.f32 %v3245_v28, %v4313_v6 }
 0x4c3   : > { %v3247_v19 = vpop.eup %3246 }
 0x4c4   : > { %3252 = vrsqrt.f32 %v1916_v34  ;;  %v1915_v14 = vadd.f32 1e-05, %v1883_v48  ;;  %2152 = vadd.xlane.f32.xlu0 %v2108_v10  ;;  %vm2008_vm14 = vcmp.ge.f32.partialorder %v1976_v54, 0.0  ;;  %v2040_v43 = vmul.f32 0.01, %v1976_v54 }
 0x4c5   : > { %v1975_v59 = vmul.f32 %v3247_v19, %v4316_v22 }
 0x4c6   : > { %3254 = vrsqrt.f32 %v1915_v14  ;;  %v2072_v33 = vsel %vm2008_vm14, %v1976_v54, %v2040_v43 }
 0x4c7   : > { %v1844_v50 = vpop.xlane.xlu1 %1843  ;;  %v2111_v56 = vmul.f32 %v4406_v57, %v2072_v33  ;;  %vm2007_vm15 = vcmp.ge.f32.partialorder %v1975_v59, 0.0  ;;  %v2039_v51 = vmul.f32 0.01, %v1975_v59 }
 0x4c8   : > { %v1886_v9 = vmul.f32 0.0078125, %v1844_v50 }
 0x4c9   : > { %v3249_v60 = vpop.eup %3248  ;;  %2158 = vadd.xlane.f32.xlu1 %v2111_v56  ;;  %v1842_v7 = vpop.xlane.xlu0 %1841  ;;  %v2071_v6 = vsel %vm2007_vm15, %v1975_v59, %v2039_v51 }
 0x4ca   : > { %v1918_v53 = vadd.f32 1e-05, %v1886_v9  ;;  %v1885_v40 = vmul.f32 0.0078125, %v1842_v7  ;;  %v2110_v0 = vmul.f32 %v4406_v57, %v2071_v6  ;;  %v1978_v46 = vmul.f32 %v3249_v60, %v4323_v1 }
 0x4cb   : > { %v3251_v32 = vpop.eup %3250 }
 0x4cc   : > { %3256 = vrsqrt.f32 %v1918_v53  ;;  %v1917_v22 = vadd.f32 1e-05, %v1885_v40  ;;  %2156 = vadd.xlane.f32.xlu0 %v2110_v0  ;;  %vm2010_vm0 = vcmp.ge.f32.partialorder %v1978_v46, 0.0  ;;  %v2042_v2 = vmul.f32 0.01, %v1978_v46 }
 0x4cd   : > { %v1977_v29 = vmul.f32 %v3251_v32, %v4326_v8 }
 0x4ce   : > { %3258 = vrsqrt.f32 %v1917_v22  ;;  %v2074_v3 = vsel %vm2010_vm0, %v1978_v46, %v2042_v2  ;;  %vm2327_vm0 = vcmask 7168  }
 0x4cf   : > { %v1848_v11 = vpop.xlane.xlu1 %1847  ;;  %v2113_v61 = vmul.f32 %v4406_v57, %v2074_v3  ;;  %vm2009_vm1 = vcmp.ge.f32.partialorder %v1977_v29, 0.0  ;;  %v2041_v62 = vmul.f32 0.01, %v1977_v29 }
 0x4d0   : > { %v1888_v52 = vmul.f32 0.0078125, %v1848_v11 }
 0x4d1   : > { %v3253_v21 = vpop.eup %3252  ;;  %2162 = vadd.xlane.f32.xlu1 %v2113_v61  ;;  %v1846_v12 = vpop.xlane.xlu0 %1845  ;;  %v2073_v1 = vsel %vm2009_vm1, %v1977_v29, %v2041_v62 }
 0x4d2   : > { %v1920_v18 = vadd.f32 1e-05, %v1888_v52  ;;  %v1887_v16 = vmul.f32 0.0078125, %v1846_v12  ;;  %v2112_v49 = vmul.f32 %v4406_v57, %v2073_v1  ;;  %v1980_v47 = vmul.f32 %v3253_v21, %v4333_v45 }
 0x4d3   : > { %v3255_v17 = vpop.eup %3254 }
 0x4d4   : > { %3260 = vrsqrt.f32 %v1920_v18  ;;  %v1919_v8 = vadd.f32 1e-05, %v1887_v16  ;;  %2160 = vadd.xlane.f32.xlu0 %v2112_v49  ;;  %vm2012_vm2 = vcmp.ge.f32.partialorder %v1980_v47, 0.0  ;;  %v2044_v44 = vmul.f32 0.01, %v1980_v47 }
 0x4d5   : > { %v1979_v27 = vmul.f32 %v3255_v17, %v4336_v39 }
 0x4d6   : > { %3262 = vrsqrt.f32 %v1919_v8  ;;  %v2076_v4 = vsel %vm2012_vm2, %v1980_v47, %v2044_v44 }
 0x4d7   : > { %v1852_v42 = vpop.xlane.xlu1 %1851  ;;  %v2115_v37 = vmul.f32 %v4406_v57, %v2076_v4  ;;  %vm2011_vm3 = vcmp.ge.f32.partialorder %v1979_v27, 0.0  ;;  %v2043_v63 = vmul.f32 0.01, %v1979_v27 }
 0x4d8   : > { %v1890_v5 = vmul.f32 0.0078125, %v1852_v42 }
 0x4d9   : > { %v3257_v26 = vpop.eup %3256  ;;  %2166 = vadd.xlane.f32.xlu1 %v2115_v37  ;;  %v1850_v28 = vpop.xlane.xlu0 %1849  ;;  %v2075_v45 = vsel %vm2011_vm3, %v1979_v27, %v2043_v63 }
 0x4da   : > { %v1922_v24 = vadd.f32 1e-05, %v1890_v5  ;;  %v1889_v58 = vmul.f32 0.0078125, %v1850_v28  ;;  %v2114_v34 = vmul.f32 %v4406_v57, %v2075_v45  ;;  %v1982_v48 = vmul.f32 %v3257_v26, %v4343_v35 }
 0x4db   : > { %v3259_v10 = vpop.eup %3258 }
 0x4dc   : > { %3264 = vrsqrt.f32 %v1922_v24  ;;  %v1921_v39 = vadd.f32 1e-05, %v1889_v58  ;;  %2164 = vadd.xlane.f32.xlu0 %v2114_v34  ;;  %vm2014_vm4 = vcmp.ge.f32.partialorder %v1982_v48, 0.0  ;;  %v2046_v54 = vmul.f32 0.01, %v1982_v48 }
 0x4dd   : > { %v1981_v19 = vmul.f32 %v3259_v10, %v4346_v13 }
 0x4de   : > { %3266 = vrsqrt.f32 %v1921_v39  ;;  %v2078_v14 = vsel %vm2014_vm4, %v1982_v48, %v2046_v54 }
 0x4df   : > { %v1856_v43 = vpop.xlane.xlu1 %1855  ;;  %v2117_v59 = vmul.f32 %v4406_v57, %v2078_v14  ;;  %vm2013_vm5 = vcmp.ge.f32.partialorder %v1981_v19, 0.0  ;;  %v2045_v33 = vmul.f32 0.01, %v1981_v19 }
 0x4e0   : > { %v1892_v50 = vmul.f32 0.0078125, %v1856_v43 }
 0x4e1   : > { %v3261_v56 = vpop.eup %3260  ;;  %2170 = vadd.xlane.f32.xlu1 %v2117_v59  ;;  %v1854_v51 = vpop.xlane.xlu0 %1853  ;;  %v2077_v35 = vsel %vm2013_vm5, %v1981_v19, %v2045_v33 }
 0x4e2   : > { %v1924_v9 = vadd.f32 1e-05, %v1892_v50  ;;  %v1891_v60 = vmul.f32 0.0078125, %v1854_v51  ;;  %v2116_v7 = vmul.f32 %v4406_v57, %v2077_v35  ;;  %v1984_v6 = vmul.f32 %v3261_v56, %v4353_v23 }
 0x4e3   : > { %v3263_v53 = vpop.eup %3262 }
 0x4e4   : > { %3268 = vrsqrt.f32 %v1924_v9  ;;  %v1923_v13 = vadd.f32 1e-05, %v1891_v60  ;;  %2168 = vadd.xlane.f32.xlu0 %v2116_v7  ;;  %vm2016_vm6 = vcmp.ge.f32.partialorder %v1984_v6, 0.0  ;;  %v2048_v40 = vmul.f32 0.01, %v1984_v6 }
 0x4e5   : > { %v1983_v0 = vmul.f32 %v3263_v53, %v4356_v25  ;;  %v4471_v53 = vld [vmem:[#allocation2] ss:$0 sm:$0xff] }
 0x4e6   : > { %3270 = vrsqrt.f32 %v1923_v13  ;;  %v2080_v46 = vsel %vm2016_vm6, %v1984_v6, %v2048_v40 }
 0x4e7   : > { %v1860_v32 = vpop.xlane.xlu1 %1859  ;;  %v2119_v22 = vmul.f32 %v4406_v57, %v2080_v46  ;;  %vm2015_vm7 = vcmp.ge.f32.partialorder %v1983_v0, 0.0  ;;  %v2047_v2 = vmul.f32 0.01, %v1983_v0 }
 0x4e8   : > { %v1894_v29 = vmul.f32 0.0078125, %v1860_v32 }
 0x4e9   : > { %v3265_v3 = vpop.eup %3264  ;;  %2174 = vadd.xlane.f32.xlu1 %v2119_v22  ;;  %v1858_v11 = vpop.xlane.xlu0 %1857  ;;  %v2079_v23 = vsel %vm2015_vm7, %v1983_v0, %v2047_v2 }
 0x4ea   : > { %v1926_v61 = vadd.f32 1e-05, %v1894_v29  ;;  %v1893_v62 = vmul.f32 0.0078125, %v1858_v11  ;;  %v2118_v52 = vmul.f32 %v4406_v57, %v2079_v23  ;;  %v1986_v21 = vmul.f32 %v3265_v3, %v4363_v20 }
 0x4eb   : > { %v3267_v12 = vpop.eup %3266 }
 0x4ec   : > { %3272 = vrsqrt.f32 %v1926_v61  ;;  %v1925_v25 = vadd.f32 1e-05, %v1893_v62  ;;  %2172 = vadd.xlane.f32.xlu0 %v2118_v52  ;;  %vm2018_vm8 = vcmp.ge.f32.partialorder %v1986_v21, 0.0  ;;  %v2050_v1 = vmul.f32 0.01, %v1986_v21 }
 0x4ed   : > { %v1985_v18 = vmul.f32 %v3267_v12, %v4366_v30 }
 0x4ee   : > { %3274 = vrsqrt.f32 %v1925_v25  ;;  %v2082_v16 = vsel %vm2018_vm8, %v1986_v21, %v2050_v1 }
 0x4ef   : > { %v1864_v49 = vpop.xlane.xlu1 %1863  ;;  %v2121_v47 = vmul.f32 %v4406_v57, %v2082_v16  ;;  %vm2017_vm9 = vcmp.ge.f32.partialorder %v1985_v18, 0.0  ;;  %v2049_v17 = vmul.f32 0.01, %v1985_v18 }
 0x4f0   : > { %v1896_v8 = vmul.f32 0.0078125, %v1864_v49 }
 0x4f1   : > { %v3269_v44 = vpop.eup %3268  ;;  %2178 = vadd.xlane.f32.xlu1 %v2121_v47  ;;  %v1862_v27 = vpop.xlane.xlu0 %1861  ;;  %v2081_v20 = vsel %vm2017_vm9, %v1985_v18, %v2049_v17 }
 0x4f2   : > { %v1928_v4 = vadd.f32 1e-05, %v1896_v8  ;;  %v1895_v42 = vmul.f32 0.0078125, %v1862_v27  ;;  %v2120_v37 = vmul.f32 %v4406_v57, %v2081_v20  ;;  %v1988_v63 = vmul.f32 %v3269_v44, %v4373_v15 }
 0x4f3   : > { %v3271_v5 = vpop.eup %3270 }
 0x4f4   : > { %3276 = vrsqrt.f32 %v1928_v4  ;;  %v1927_v30 = vadd.f32 1e-05, %v1895_v42  ;;  %2176 = vadd.xlane.f32.xlu0 %v2120_v37  ;;  %vm2020_vm10 = vcmp.ge.f32.partialorder %v1988_v63, 0.0  ;;  %v2052_v26 = vmul.f32 0.01, %v1988_v63 }
 0x4f5   : > { %v1987_v28 = vmul.f32 %v3271_v5, %v4376_v31 }
 0x4f6   : > { %3278 = vrsqrt.f32 %v1927_v30  ;;  %v2084_v45 = vsel %vm2020_vm10, %v1988_v63, %v2052_v26 }
 0x4f7   : > { %v2123_v24 = vmul.f32 %v4406_v57, %v2084_v45  ;;  %vm2019_vm11 = vcmp.ge.f32.partialorder %v1987_v28, 0.0  ;;  %v2051_v58 = vmul.f32 0.01, %v1987_v28 }
 0x4f9   : > { %v3273_v34 = vpop.eup %3272  ;;  %2182 = vadd.xlane.f32.xlu1 %v2123_v24  ;;  %v2083_v48 = vsel %vm2019_vm11, %v1987_v28, %v2051_v58 }
 0x4fa   : > { %v2122_v10 = vmul.f32 %v4406_v57, %v2083_v48  ;;  %v1990_v15 = vmul.f32 %v3273_v34, %v4383_v38 }
 0x4fb   : > { %v3275_v39 = vpop.eup %3274 }
 0x4fc   : > { %2180 = vadd.xlane.f32.xlu0 %v2122_v10  ;;  %vm2022_vm12 = vcmp.ge.f32.partialorder %v1990_v15, 0.0  ;;  %v2054_v54 = vmul.f32 0.01, %v1990_v15  ;;  %v1989_v19 = vmul.f32 %v3275_v39, %v4386_v55 }
 0x4fe   : > { %v2086_v31 = vsel %vm2022_vm12, %v1990_v15, %v2054_v54  ;;  %vm2021_vm13 = vcmp.ge.f32.partialorder %v1989_v19, 0.0  ;;  %v2053_v14 = vmul.f32 0.01, %v1989_v19 }
 0x4ff   : > { %v2125_v43 = vmul.f32 %v4406_v57, %v2086_v31 }
 0x500   : > { %v2085_v59 = vsel %vm2021_vm13, %v1989_v19, %v2053_v14 }
 0x501   : > { %v3277_v33 = vpop.eup %3276  ;;  %2186 = vadd.xlane.f32.xlu1 %v2125_v43  ;;  %v2124_v50 = vmul.f32 %v4406_v57, %v2085_v59 }
 0x502   : > { %v1992_v56 = vmul.f32 %v3277_v33, %v4393_v41 }
 0x503   : > { %v3279_v38 = vpop.eup %3278  ;;  %2184 = vadd.xlane.f32.xlu0 %v2124_v50 }
 0x504   : > { %vm2024_vm14 = vcmp.ge.f32.partialorder %v1992_v56, 0.0  ;;  %v2056_v51 = vmul.f32 0.01, %v1992_v56  ;;  %v1991_v35 = vmul.f32 %v3279_v38, %v4396_v36 }
 0x506   : > { %v2088_v55 = vsel %vm2024_vm14, %v1992_v56, %v2056_v51  ;;  %vm2023_vm15 = vcmp.ge.f32.partialorder %v1991_v35, 0.0  ;;  %v2055_v9 = vmul.f32 0.01, %v1991_v35 }
 0x507   : > { %v2127_v60 = vmul.f32 %v4406_v57, %v2088_v55 }
 0x508   : > { %v2087_v7 = vsel %vm2023_vm15, %v1991_v35, %v2055_v9 }
 0x509   : > { %2190 = vadd.xlane.f32.xlu1 %v2127_v60  ;;  %v2126_v6 = vmul.f32 %v4406_v57, %v2087_v7 }
 0x50b   : > { %2188 = vadd.xlane.f32.xlu0 %v2126_v6 }
 0x51a   : > { %v2131_v41 = vpop.xlane.xlu1 %2130 }
 0x51b   : > { %v2200_v13 = vadd.f32 %v4471_v53, %v2131_v41 }
 0x51d   : > { %vm2232_vm1 = vcmp.ge.f32.partialorder %v2200_v13, 0.0  ;;  %v2264_v40 = vmul.f32 0.01, %v2200_v13  ;;  %v2129_v36 = vpop.xlane.xlu0 %2128 }
 0x51e   : > { %v2199_v0 = vadd.f32 %v4471_v53, %v2129_v36 }
 0x51f   : > { %v2296_v46 = vsel %vm2232_vm1, %v2200_v13, %v2264_v40 }
 0x520   : > { %2329 = vst.msk [vmem:[%s4476_s16 + $0x8] sm:$0xff] %vm2327_vm0, %v2296_v46  ;;  %vm2231_vm2 = vcmp.ge.f32.partialorder %v2199_v0, 0.0  ;;  %v2263_v57 = vmul.f32 0.01, %v2199_v0 }
 0x522   : > { %v2295_v32 = vsel %vm2231_vm2, %v2199_v0, %v2263_v57  ;;  %v2135_v22 = vpop.xlane.xlu1 %2134 }
 0x523   : > { %2328 = vst.msk [vmem:[%s4476_s16] sm:$0xff] %vm2327_vm0, %v2295_v32  ;;  %v2202_v2 = vadd.f32 %v4471_v53, %v2135_v22 }
 0x525   : > { %vm2234_vm3 = vcmp.ge.f32.partialorder %v2202_v2, 0.0  ;;  %v2266_v29 = vmul.f32 0.01, %v2202_v2  ;;  %v2133_v3 = vpop.xlane.xlu0 %2132 }
 0x526   : > { %v2201_v11 = vadd.f32 %v4471_v53, %v2133_v3 }
 0x527   : > { %v2298_v23 = vsel %vm2234_vm3, %v2202_v2, %v2266_v29 }
 0x528   : > { %2331 = vst.msk [vmem:[%s4476_s16 + $0x18] sm:$0xff] %vm2327_vm0, %v2298_v23  ;;  %vm2233_vm4 = vcmp.ge.f32.partialorder %v2201_v11, 0.0  ;;  %v2265_v61 = vmul.f32 0.01, %v2201_v11 }
 0x52a   : > { %v2297_v62 = vsel %vm2233_vm4, %v2201_v11, %v2265_v61  ;;  %v2139_v52 = vpop.xlane.xlu1 %2138 }
 0x52b   : > { %2330 = vst.msk [vmem:[%s4476_s16 + $0x10] sm:$0xff] %vm2327_vm0, %v2297_v62  ;;  %v2204_v21 = vadd.f32 %v4471_v53, %v2139_v52 }
 0x52d   : > { %vm2236_vm5 = vcmp.ge.f32.partialorder %v2204_v21, 0.0  ;;  %v2268_v12 = vmul.f32 0.01, %v2204_v21  ;;  %v2137_v25 = vpop.xlane.xlu0 %2136 }
 0x52e   : > { %v2203_v1 = vadd.f32 %v4471_v53, %v2137_v25 }
 0x52f   : > { %v2300_v18 = vsel %vm2236_vm5, %v2204_v21, %v2268_v12 }
 0x530   : > { %2333 = vst.msk [vmem:[%s4476_s16 + $0x28] sm:$0xff] %vm2327_vm0, %v2300_v18  ;;  %vm2235_vm6 = vcmp.ge.f32.partialorder %v2203_v1, 0.0  ;;  %v2267_v16 = vmul.f32 0.01, %v2203_v1 }
 0x532   : > { %v2299_v49 = vsel %vm2235_vm6, %v2203_v1, %v2267_v16  ;;  %v2143_v47 = vpop.xlane.xlu1 %2142 }
 0x533   : > { %2332 = vst.msk [vmem:[%s4476_s16 + $0x20] sm:$0xff] %vm2327_vm0, %v2299_v49  ;;  %v2206_v17 = vadd.f32 %v4471_v53, %v2143_v47 }
 0x535   : > { %vm2238_vm7 = vcmp.ge.f32.partialorder %v2206_v17, 0.0  ;;  %v2270_v8 = vmul.f32 0.01, %v2206_v17  ;;  %v2141_v44 = vpop.xlane.xlu0 %2140 }
 0x536   : > { %v2205_v27 = vadd.f32 %v4471_v53, %v2141_v44 }
 0x537   : > { %v2302_v20 = vsel %vm2238_vm7, %v2206_v17, %v2270_v8 }
 0x538   : > { %2335 = vst.msk [vmem:[%s4476_s16 + $0x38] sm:$0xff] %vm2327_vm0, %v2302_v20  ;;  %vm2237_vm8 = vcmp.ge.f32.partialorder %v2205_v27, 0.0  ;;  %v2269_v4 = vmul.f32 0.01, %v2205_v27 }
 0x53a   : > { %v2301_v42 = vsel %vm2237_vm8, %v2205_v27, %v2269_v4  ;;  %v2147_v37 = vpop.xlane.xlu1 %2146 }
 0x53b   : > { %2334 = vst.msk [vmem:[%s4476_s16 + $0x30] sm:$0xff] %vm2327_vm0, %v2301_v42  ;;  %v2208_v63 = vadd.f32 %v4471_v53, %v2147_v37 }
 0x53d   : > { %vm2240_vm9 = vcmp.ge.f32.partialorder %v2208_v63, 0.0  ;;  %v2272_v5 = vmul.f32 0.01, %v2208_v63  ;;  %v2145_v30 = vpop.xlane.xlu0 %2144 }
 0x53e   : > { %v2207_v26 = vadd.f32 %v4471_v53, %v2145_v30 }
 0x53f   : > { %v2304_v28 = vsel %vm2240_vm9, %v2208_v63, %v2272_v5 }
 0x540   : > { %2337 = vst.msk [vmem:[%s4476_s16 + $0x48] sm:$0xff] %vm2327_vm0, %v2304_v28  ;;  %vm2239_vm10 = vcmp.ge.f32.partialorder %v2207_v26, 0.0  ;;  %v2271_v45 = vmul.f32 0.01, %v2207_v26 }
 0x542   : > { %v2303_v24 = vsel %vm2239_vm10, %v2207_v26, %v2271_v45  ;;  %v2151_v58 = vpop.xlane.xlu1 %2150 }
 0x543   : > { %2336 = vst.msk [vmem:[%s4476_s16 + $0x40] sm:$0xff] %vm2327_vm0, %v2303_v24  ;;  %v2210_v34 = vadd.f32 %v4471_v53, %v2151_v58 }
 0x545   : > { %vm2242_vm11 = vcmp.ge.f32.partialorder %v2210_v34, 0.0  ;;  %v2274_v48 = vmul.f32 0.01, %v2210_v34  ;;  %v2149_v10 = vpop.xlane.xlu0 %2148 }
 0x546   : > { %v2209_v15 = vadd.f32 %v4471_v53, %v2149_v10 }
 0x547   : > { %v2306_v39 = vsel %vm2242_vm11, %v2210_v34, %v2274_v48 }
 0x548   : > { %2339 = vst.msk [vmem:[%s4476_s16 + $0x58] sm:$0xff] %vm2327_vm0, %v2306_v39  ;;  %vm2241_vm12 = vcmp.ge.f32.partialorder %v2209_v15, 0.0  ;;  %v2273_v54 = vmul.f32 0.01, %v2209_v15 }
 0x54a   : > { %v2305_v19 = vsel %vm2241_vm12, %v2209_v15, %v2273_v54  ;;  %v2155_v31 = vpop.xlane.xlu1 %2154 }
 0x54b   : > { %2338 = vst.msk [vmem:[%s4476_s16 + $0x50] sm:$0xff] %vm2327_vm0, %v2305_v19  ;;  %v2212_v14 = vadd.f32 %v4471_v53, %v2155_v31 }
 0x54d   : > { %vm2244_vm13 = vcmp.ge.f32.partialorder %v2212_v14, 0.0  ;;  %v2276_v43 = vmul.f32 0.01, %v2212_v14  ;;  %v2153_v59 = vpop.xlane.xlu0 %2152 }
 0x54e   : > { %v2211_v33 = vadd.f32 %v4471_v53, %v2153_v59 }
 0x54f   : > { %v2308_v50 = vsel %vm2244_vm13, %v2212_v14, %v2276_v43 }
 0x550   : > { %2341 = vst.msk [vmem:[%s4476_s16 + $0x68] sm:$0xff] %vm2327_vm0, %v2308_v50  ;;  %vm2243_vm14 = vcmp.ge.f32.partialorder %v2211_v33, 0.0  ;;  %v2275_v56 = vmul.f32 0.01, %v2211_v33 }
 0x552   : > { %v2307_v38 = vsel %vm2243_vm14, %v2211_v33, %v2275_v56  ;;  %v2159_v51 = vpop.xlane.xlu1 %2158 }
 0x553   : > { %2340 = vst.msk [vmem:[%s4476_s16 + $0x60] sm:$0xff] %vm2327_vm0, %v2307_v38  ;;  %v2214_v35 = vadd.f32 %v4471_v53, %v2159_v51 }
 0x555   : > { %vm2246_vm15 = vcmp.ge.f32.partialorder %v2214_v35, 0.0  ;;  %v2278_v55 = vmul.f32 0.01, %v2214_v35  ;;  %v2157_v9 = vpop.xlane.xlu0 %2156 }
 0x556   : > { %v2213_v60 = vadd.f32 %v4471_v53, %v2157_v9 }
 0x557   : > { %v2310_v7 = vsel %vm2246_vm15, %v2214_v35, %v2278_v55 }
 0x558   : > { %2343 = vst.msk [vmem:[%s4476_s16 + $0x78] sm:$0xff] %vm2327_vm0, %v2310_v7  ;;  %vm2245_vm1 = vcmp.ge.f32.partialorder %v2213_v60, 0.0  ;;  %v2277_v6 = vmul.f32 0.01, %v2213_v60 }
 0x55a   : > { %v2309_v41 = vsel %vm2245_vm1, %v2213_v60, %v2277_v6  ;;  %v2163_v13 = vpop.xlane.xlu1 %2162 }
 0x55b   : > { %2342 = vst.msk [vmem:[%s4476_s16 + $0x70] sm:$0xff] %vm2327_vm0, %v2309_v41  ;;  %v2216_v40 = vadd.f32 %v4471_v53, %v2163_v13 }
 0x55d   : > { %vm2248_vm2 = vcmp.ge.f32.partialorder %v2216_v40, 0.0  ;;  %v2280_v36 = vmul.f32 0.01, %v2216_v40  ;;  %v2161_v0 = vpop.xlane.xlu0 %2160 }
 0x55e   : > { %v2215_v46 = vadd.f32 %v4471_v53, %v2161_v0 }
 0x55f   : > { %v2312_v57 = vsel %vm2248_vm2, %v2216_v40, %v2280_v36 }
 0x560   : > { %2345 = vst.msk [vmem:[%s4476_s16 + $0x88] sm:$0xff] %vm2327_vm0, %v2312_v57  ;;  %vm2247_vm3 = vcmp.ge.f32.partialorder %v2215_v46, 0.0  ;;  %v2279_v32 = vmul.f32 0.01, %v2215_v46 }
 0x562   : > { %v2311_v22 = vsel %vm2247_vm3, %v2215_v46, %v2279_v32  ;;  %v2167_v2 = vpop.xlane.xlu1 %2166 }
 0x563   : > { %2344 = vst.msk [vmem:[%s4476_s16 + $0x80] sm:$0xff] %vm2327_vm0, %v2311_v22  ;;  %v2218_v29 = vadd.f32 %v4471_v53, %v2167_v2 }
 0x565   : > { %vm2250_vm4 = vcmp.ge.f32.partialorder %v2218_v29, 0.0  ;;  %v2282_v3 = vmul.f32 0.01, %v2218_v29  ;;  %v2165_v11 = vpop.xlane.xlu0 %2164 }
 0x566   : > { %v2217_v23 = vadd.f32 %v4471_v53, %v2165_v11 }
 0x567   : > { %v2314_v61 = vsel %vm2250_vm4, %v2218_v29, %v2282_v3 }
 0x568   : > { %2347 = vst.msk [vmem:[%s4476_s16 + $0x98] sm:$0xff] %vm2327_vm0, %v2314_v61  ;;  %vm2249_vm5 = vcmp.ge.f32.partialorder %v2217_v23, 0.0  ;;  %v2281_v62 = vmul.f32 0.01, %v2217_v23 }
 0x56a   : > { %v2313_v52 = vsel %vm2249_vm5, %v2217_v23, %v2281_v62  ;;  %v2171_v21 = vpop.xlane.xlu1 %2170 }
 0x56b   : > { %2346 = vst.msk [vmem:[%s4476_s16 + $0x90] sm:$0xff] %vm2327_vm0, %v2313_v52  ;;  %v2220_v12 = vadd.f32 %v4471_v53, %v2171_v21 }
 0x56d   : > { %vm2252_vm6 = vcmp.ge.f32.partialorder %v2220_v12, 0.0  ;;  %v2284_v25 = vmul.f32 0.01, %v2220_v12  ;;  %v2169_v1 = vpop.xlane.xlu0 %2168 }
 0x56e   : > { %v2219_v18 = vadd.f32 %v4471_v53, %v2169_v1 }
 0x56f   : > { %v2316_v16 = vsel %vm2252_vm6, %v2220_v12, %v2284_v25 }
 0x570   : > { %2349 = vst.msk [vmem:[%s4476_s16 + $0xa8] sm:$0xff] %vm2327_vm0, %v2316_v16  ;;  %vm2251_vm7 = vcmp.ge.f32.partialorder %v2219_v18, 0.0  ;;  %v2283_v49 = vmul.f32 0.01, %v2219_v18 }
 0x572   : > { %v2315_v47 = vsel %vm2251_vm7, %v2219_v18, %v2283_v49  ;;  %v2175_v17 = vpop.xlane.xlu1 %2174 }
 0x573   : > { %2348 = vst.msk [vmem:[%s4476_s16 + $0xa0] sm:$0xff] %vm2327_vm0, %v2315_v47  ;;  %v2222_v8 = vadd.f32 %v4471_v53, %v2175_v17 }
 0x575   : > { %vm2254_vm8 = vcmp.ge.f32.partialorder %v2222_v8, 0.0  ;;  %v2286_v44 = vmul.f32 0.01, %v2222_v8  ;;  %v2173_v27 = vpop.xlane.xlu0 %2172 }
 0x576   : > { %v2221_v20 = vadd.f32 %v4471_v53, %v2173_v27 }
 0x577   : > { %v2318_v4 = vsel %vm2254_vm8, %v2222_v8, %v2286_v44 }
 0x578   : > { %2351 = vst.msk [vmem:[%s4476_s16 + $0xb8] sm:$0xff] %vm2327_vm0, %v2318_v4  ;;  %vm2253_vm9 = vcmp.ge.f32.partialorder %v2221_v20, 0.0  ;;  %v2285_v42 = vmul.f32 0.01, %v2221_v20 }
 0x57a   : > { %v2317_v37 = vsel %vm2253_vm9, %v2221_v20, %v2285_v42  ;;  %v2179_v63 = vpop.xlane.xlu1 %2178 }
 0x57b   : > { %2350 = vst.msk [vmem:[%s4476_s16 + $0xb0] sm:$0xff] %vm2327_vm0, %v2317_v37  ;;  %v2224_v5 = vadd.f32 %v4471_v53, %v2179_v63 }
 0x57d   : > { %vm2256_vm10 = vcmp.ge.f32.partialorder %v2224_v5, 0.0  ;;  %v2288_v30 = vmul.f32 0.01, %v2224_v5  ;;  %v2177_v26 = vpop.xlane.xlu0 %2176 }
 0x57e   : > { %v2223_v28 = vadd.f32 %v4471_v53, %v2177_v26 }
 0x57f   : > { %v2320_v45 = vsel %vm2256_vm10, %v2224_v5, %v2288_v30 }
 0x580   : > { %2353 = vst.msk [vmem:[%s4476_s16 + $0xc8] sm:$0xff] %vm2327_vm0, %v2320_v45  ;;  %vm2255_vm11 = vcmp.ge.f32.partialorder %v2223_v28, 0.0  ;;  %v2287_v24 = vmul.f32 0.01, %v2223_v28 }
 0x582   : > { %v2319_v58 = vsel %vm2255_vm11, %v2223_v28, %v2287_v24  ;;  %v2183_v34 = vpop.xlane.xlu1 %2182 }
 0x583   : > { %2352 = vst.msk [vmem:[%s4476_s16 + $0xc0] sm:$0xff] %vm2327_vm0, %v2319_v58  ;;  %v2226_v48 = vadd.f32 %v4471_v53, %v2183_v34 }
 0x585   : > { %vm2258_vm12 = vcmp.ge.f32.partialorder %v2226_v48, 0.0  ;;  %v2290_v10 = vmul.f32 0.01, %v2226_v48  ;;  %v2181_v15 = vpop.xlane.xlu0 %2180 }
 0x586   : > { %v2225_v39 = vadd.f32 %v4471_v53, %v2181_v15 }
 0x587   : > { %v2322_v54 = vsel %vm2258_vm12, %v2226_v48, %v2290_v10 }
 0x588   : > { %2355 = vst.msk [vmem:[%s4476_s16 + $0xd8] sm:$0xff] %vm2327_vm0, %v2322_v54  ;;  %vm2257_vm13 = vcmp.ge.f32.partialorder %v2225_v39, 0.0  ;;  %v2289_v19 = vmul.f32 0.01, %v2225_v39 }
 0x58a   : > { %v2321_v31 = vsel %vm2257_vm13, %v2225_v39, %v2289_v19  ;;  %v2187_v14 = vpop.xlane.xlu1 %2186 }
 0x58b   : > { %2354 = vst.msk [vmem:[%s4476_s16 + $0xd0] sm:$0xff] %vm2327_vm0, %v2321_v31  ;;  %v2228_v43 = vadd.f32 %v4471_v53, %v2187_v14 }
 0x58c   : > { %v2185_v59 = vpop.xlane.xlu0 %2184 }
 0x58d   : > { %vm2260_vm14 = vcmp.ge.f32.partialorder %v2228_v43, 0.0  ;;  %v2292_v33 = vmul.f32 0.01, %v2228_v43  ;;  %v2227_v50 = vadd.f32 %v4471_v53, %v2185_v59 }
 0x58f   : > { %v2324_v56 = vsel %vm2260_vm14, %v2228_v43, %v2292_v33  ;;  %vm2259_vm15 = vcmp.ge.f32.partialorder %v2227_v50, 0.0  ;;  %v2291_v38 = vmul.f32 0.01, %v2227_v50 }
 0x590   : > { %2357 = vst.msk [vmem:[%s4476_s16 + $0xe8] sm:$0xff] %vm2327_vm0, %v2324_v56 }
 0x591   : > { %v2323_v51 = vsel %vm2259_vm15, %v2227_v50, %v2291_v38 }
 0x592   : > { %2356 = vst.msk [vmem:[%s4476_s16 + $0xe0] sm:$0xff] %vm2327_vm0, %v2323_v51  ;;  %v2191_v35 = vpop.xlane.xlu1 %2190 }
 0x593   : > { %v2230_v55 = vadd.f32 %v4471_v53, %v2191_v35 }
 0x594   : > { %v2189_v9 = vpop.xlane.xlu0 %2188 }
 0x595   : > { %vm2262_vm1 = vcmp.ge.f32.partialorder %v2230_v55, 0.0  ;;  %v2294_v60 = vmul.f32 0.01, %v2230_v55  ;;  %v2229_v7 = vadd.f32 %v4471_v53, %v2189_v9 }
 0x596   : > { %2366 = sbr.rel (!%p4732_p0) target bundleno = 1483 (0x5cb), region = 64 }
 0x597   : > { %v2326_v6 = vsel %vm2262_vm1, %v2230_v55, %v2294_v60  ;;  %vm2261_vm2 = vcmp.ge.f32.partialorder %v2229_v7, 0.0  ;;  %v2293_v41 = vmul.f32 0.01, %v2229_v7 }
 0x598   : > { %2359 = vst.msk [vmem:[%s4476_s16 + $0xf8] sm:$0xff] %vm2327_vm0, %v2326_v6 }
 0x599   : > { %v2325_v13 = vsel %vm2261_vm2, %v2229_v7, %v2293_v41 }
 0x59a   : > { %2358 = vst.msk [vmem:[%s4476_s16 + $0xf0] sm:$0xff] %vm2327_vm0, %v2325_v13 }
 0x59b   : > { %s4745_s19 = smov (!%p2369_p9, %s2368_s19), 32 }
 0x59c   : > { %s2752_s26 = sshll.u32 %s4745_s19, 7 }
 0x59d   : > { %p2755_p12 = scmp.eq.s32.totalorder %s2752_s26, 0 }
 0x59e   : > { %s4585_s13 = sshrl.u32 (!%p2755_p12), %s4745_s19, 5 }
 0x59f   : > { %2377 = sbr.rel (%p2755_p12) target bundleno = 1483 (0x5cb), region = 68  ;;  %p2756_p1 = scmp.le.s32.totalorder (!%p2755_p12), %s4585_s13, 0 }
 0x5a4   : > { %2665 = sbr.rel (%p2756_p1) target bundleno = 1466 (0x5ba), region = 150  ;;  %s4733_s6 = smov (!%p2756_p1), %s4579_s24 }
 0x5a5   : > { %s4734_s8 = smov (!%p2756_p1), %s4476_s16  ;;  %s4594_s9 = smov (!%p2756_p1), 0  }
 0x5a6   : > { %s4596_s29 = smov (!%p2756_p1), 0  }
 0x5a9 LB: >> { %v2502_v53 = vld [vmem:[%s3436_s8] sm:$0xff]  ;;  %v2504_v40 = vld [vmem:[%s3436_s8 + $0x8] sm:$0xff]  ;;  %v2506_v36 = vld [vmem:[%s3436_s8 + $0x10] sm:$0xff]  ;;  %s2566_s12 = sadd.s32 1, %s3440_s9  ;;  %s2496_s29 = sadd.s32 1, %s3444_s29   ;;  %s3444_s29 = sphi %s4596_s29, %s2496_s29   ;;  %s3440_s9 = sphi %s4594_s9, %s4737_s9   ;;  %s3436_s8 = sphi %s4734_s8, %s4736_s8   ;;  %s3432_s6 = sphi %s4733_s6, %s4735_s6  }
 0x5aa   : >> { %2503 = vst [vmem:[%s3432_s6] sm:$0xff] %v2502_v53  ;;  %2505 = vst [vmem:[%s3432_s6 + $0x8] sm:$0xff] %v2504_v40  ;;  %v2508_v0 = vld [vmem:[%s3436_s8 + $0x18] sm:$0xff]  ;;  %v2510_v46 = vld [vmem:[%s3436_s8 + $0x20] sm:$0xff]  ;;  %p2567_p2 = scmp.ge.s32.totalorder %s2566_s12, %s4585_s13  ;;  %p2495_p6 = scmp.ge.s32.totalorder %s2496_s29, %s4585_s13 }
 0x5ab   : >> { %2507 = vst [vmem:[%s3432_s6 + $0x10] sm:$0xff] %v2506_v36  ;;  %v2512_v57 = vld [vmem:[%s3436_s8 + $0x28] sm:$0xff]  ;;  %2509 = vst [vmem:[%s3432_s6 + $0x18] sm:$0xff] %v2508_v0  ;;  %v2514_v32 = vld [vmem:[%s3436_s8 + $0x30] sm:$0xff] }
 0x5ac   : >> { %2511 = vst [vmem:[%s3432_s6 + $0x20] sm:$0xff] %v2510_v46  ;;  %2513 = vst [vmem:[%s3432_s6 + $0x28] sm:$0xff] %v2512_v57  ;;  %v2516_v22 = vld [vmem:[%s3436_s8 + $0x38] sm:$0xff]  ;;  %v2518_v2 = vld [vmem:[%s3436_s8 + $0x40] sm:$0xff]  ;;  %s4747_s12 = smov (%p2567_p2, %s2566_s12), 0 }
 0x5ad   : >> { %2515 = vst [vmem:[%s3432_s6 + $0x30] sm:$0xff] %v2514_v32  ;;  %2517 = vst [vmem:[%s3432_s6 + $0x38] sm:$0xff] %v2516_v22  ;;  %v2520_v29 = vld [vmem:[%s3436_s8 + $0x48] sm:$0xff]  ;;  %v2522_v3 = vld [vmem:[%s3436_s8 + $0x50] sm:$0xff]  ;;  %s2757_s14 = sshll.u32 %s4747_s12, 8  ;;  %s4737_s9 = smov %s4747_s12 }
 0x5ae   : >> { %2519 = vst [vmem:[%s3432_s6 + $0x40] sm:$0xff] %v2518_v2  ;;  %v2524_v11 = vld [vmem:[%s3436_s8 + $0x58] sm:$0xff]  ;;  %2521 = vst [vmem:[%s3432_s6 + $0x48] sm:$0xff] %v2520_v29  ;;  %v2526_v23 = vld [vmem:[%s3436_s8 + $0x60] sm:$0xff]  ;;  %s4652_s20 = scalar_lea.vmem %s4476_s16, %s2757_s14 [#allocation8]   ;;  %s2572_s23 = scalar_lea.vmem %s4579_s24, %s2757_s14  }
 0x5af   : >> { %2523 = vst [vmem:[%s3432_s6 + $0x50] sm:$0xff] %v2522_v3  ;;  %2525 = vst [vmem:[%s3432_s6 + $0x58] sm:$0xff] %v2524_v11  ;;  %v2528_v61 = vld [vmem:[%s3436_s8 + $0x68] sm:$0xff]  ;;  %v2530_v62 = vld [vmem:[%s3436_s8 + $0x70] sm:$0xff] }
 0x5b0   : >> { %2527 = vst [vmem:[%s3432_s6 + $0x60] sm:$0xff] %v2526_v23  ;;  %2529 = vst [vmem:[%s3432_s6 + $0x68] sm:$0xff] %v2528_v61  ;;  %v2532_v52 = vld [vmem:[%s3436_s8 + $0x78] sm:$0xff]  ;;  %v2534_v21 = vld [vmem:[%s3436_s8 + $0x80] sm:$0xff] }
 0x5b1   : >> { %2531 = vst [vmem:[%s3432_s6 + $0x70] sm:$0xff] %v2530_v62  ;;  %v2536_v12 = vld [vmem:[%s3436_s8 + $0x88] sm:$0xff]  ;;  %2533 = vst [vmem:[%s3432_s6 + $0x78] sm:$0xff] %v2532_v52  ;;  %v2538_v25 = vld [vmem:[%s3436_s8 + $0x90] sm:$0xff] }
 0x5b2   : >> { %2535 = vst [vmem:[%s3432_s6 + $0x80] sm:$0xff] %v2534_v21  ;;  %2537 = vst [vmem:[%s3432_s6 + $0x88] sm:$0xff] %v2536_v12  ;;  %v2540_v1 = vld [vmem:[%s3436_s8 + $0x98] sm:$0xff]  ;;  %v2542_v18 = vld [vmem:[%s3436_s8 + $0xa0] sm:$0xff] }
 0x5b3   : >> { %2539 = vst [vmem:[%s3432_s6 + $0x90] sm:$0xff] %v2538_v25  ;;  %2541 = vst [vmem:[%s3432_s6 + $0x98] sm:$0xff] %v2540_v1  ;;  %v2544_v16 = vld [vmem:[%s3436_s8 + $0xa8] sm:$0xff]  ;;  %v2546_v49 = vld [vmem:[%s3436_s8 + $0xb0] sm:$0xff] }
 0x5b4   : >> { %2543 = vst [vmem:[%s3432_s6 + $0xa0] sm:$0xff] %v2542_v18  ;;  %v2548_v47 = vld [vmem:[%s3436_s8 + $0xb8] sm:$0xff]  ;;  %2545 = vst [vmem:[%s3432_s6 + $0xa8] sm:$0xff] %v2544_v16  ;;  %v2550_v17 = vld [vmem:[%s3436_s8 + $0xc0] sm:$0xff] }
 0x5b5   : >> { %2547 = vst [vmem:[%s3432_s6 + $0xb0] sm:$0xff] %v2546_v49  ;;  %2549 = vst [vmem:[%s3432_s6 + $0xb8] sm:$0xff] %v2548_v47  ;;  %v2552_v8 = vld [vmem:[%s3436_s8 + $0xc8] sm:$0xff]  ;;  %v2554_v44 = vld [vmem:[%s3436_s8 + $0xd0] sm:$0xff]  ;;  %2498 = sbr.rel (!%p2495_p6) target bundleno = 1449 (0x5a9), region = 156 }
 0x5b6   : >> { %2551 = vst [vmem:[%s3432_s6 + $0xc0] sm:$0xff] %v2550_v17  ;;  %2553 = vst [vmem:[%s3432_s6 + $0xc8] sm:$0xff] %v2552_v8  ;;  %v2556_v27 = vld [vmem:[%s3436_s8 + $0xd8] sm:$0xff]  ;;  %v2558_v20 = vld [vmem:[%s3436_s8 + $0xe0] sm:$0xff] }
 0x5b7   : >> { %2555 = vst [vmem:[%s3432_s6 + $0xd0] sm:$0xff] %v2554_v44  ;;  %v2560_v4 = vld [vmem:[%s3436_s8 + $0xe8] sm:$0xff]  ;;  %2557 = vst [vmem:[%s3432_s6 + $0xd8] sm:$0xff] %v2556_v27  ;;  %v2562_v42 = vld [vmem:[%s3436_s8 + $0xf0] sm:$0xff] }
 0x5b8   : >> { %2559 = vst [vmem:[%s3432_s6 + $0xe0] sm:$0xff] %v2558_v20  ;;  %2561 = vst [vmem:[%s3432_s6 + $0xe8] sm:$0xff] %v2560_v4  ;;  %v2564_v37 = vld [vmem:[%s3436_s8 + $0xf8] sm:$0xff]  ;;  %s4736_s8 = smov %s4652_s20 }
 0x5b9   : >> { %2563 = vst [vmem:[%s3432_s6 + $0xf0] sm:$0xff] %v2562_v42  ;;  %2565 = vst [vmem:[%s3432_s6 + $0xf8] sm:$0xff] %v2564_v37  ;;  %s4735_s6 = smov %s2572_s23 }
 0x5ba PF: > { %s4693_s21 = sand.u32 31, %s4745_s19   ;;  %s2768_s25 = sshll.u32 %s4585_s13, 8 }
 0x5bb   : > { %s2577_s15 = scalar_lea.vmem %s4476_s16, %s2768_s25 [#allocation8]   ;;  %s2579_s18 = scalar_lea.vmem %s4579_s24, %s2768_s25  }
 0x5bc   : > { %p2762_p3 = scmp.le.s32.totalorder %s4693_s21, 0 }
 0x5bd   : > { %s3446_s17 = smov (!%p2762_p3), %s2579_s18   ;;  %s3450_s11 = smov (!%p2762_p3), %s2577_s15  }
 0x5be   : > { %2679 = sbr.rel (%p2762_p3) target bundleno = 1483 (0x5cb), region = 161  ;;  %s3454_s22 = smov (!%p2762_p3), 0  }
 0x5bf   : > { %s3458_s26 = smov (!%p2762_p3), 0  }
 0x5c3 LB: >> { %v2589_v63 = vld [vmem:[%s3452_s11] sm:$0xff]  ;;  %s2591_s19 = sadd.s32 1, %s3456_s22  ;;  %s2583_s26 = sadd.s32 1, %s3460_s26   ;;  %s3460_s26 = sphi %s3458_s26, %s2583_s26   ;;  %s3456_s22 = sphi %s3454_s22, %s3455_s22   ;;  %s3452_s11 = sphi %s3450_s11, %s2596_s11   ;;  %s3448_s17 = sphi %s3446_s17, %s2597_s17  }
 0x5c4   : >> { %2590 = vst [vmem:[%s3448_s17] sm:$0xff] %v2589_v63  ;;  %p2592_p7 = scmp.ge.s32.totalorder %s2591_s19, %s4693_s21  ;;  %p2582_p5 = scmp.ge.s32.totalorder %s2583_s26, %s4693_s21 }
 0x5c6   : >> { %s4749_s19 = smov (%p2592_p7, %s2591_s19), 0  ;;  %2585 = sbr.rel (!%p2582_p5) target bundleno = 1475 (0x5c3), region = 167 }
 0x5c7   : >> { %s2763_s16 = sshll.u32 %s4749_s19, 3  ;;  %s3455_s22 = smov %s4749_s19  }
 0x5c8   : >> { %s2596_s11 = scalar_lea.vmem %s2577_s15, %s2763_s16 [#allocation8]   ;;  %s2597_s17 = scalar_lea.vmem %s2579_s18, %s2763_s16  }
 0x5cb PF: > { %p20_p8 = scmp.ge.s32.totalorder %s3535_s30, 4   ;;  %s4738_s26 = smov %s3420_s27 }
 0x5cc   : > { %s4739_s27 = smov %s3424_s28  ;;  %s4740_s28 = smov %s3545_s10 }
 0x5cd   : > { %s4741_s29 = smov %s3535_s30  ;;  %22 = sbr.rel (!%p20_p8) target bundleno = 7 (0x7), region = 178 }
 0x5d2   :  { %2613 = vsyncpa [#allocation4], 1 }
 0x5d3   :  { %2615 = vsyncpa [#allocation4 + $0x1], 1 }
 0x5d4   :  { %2616 = vsyncpa [#allocation6], 1 }

</bundles_post_ra>
